<compile_context>
chip_gen: v5e
topology: v5e:2x2
jax: 0.10.0
libtpu: 0.0.40
codegen_flags: <defaults>
</compile_context>

<pallas_src>
import jax
import jax.numpy as jnp
from jax.experimental import pallas as pl
from jax.experimental.pallas import tpu as pltpu


_H1, _W1 = 32, 32          # conv1 spatial
_H2, _W2 = 16, 16          # conv2 spatial (after pool1)
_C0, _C1, _C2 = 3, 6, 12   # channels
_F = (_H2 // 2) * (_W2 // 2)   # 64 spatial positions feeding the classifier per channel
_MARGIN = 128              # lane margin around the flattened image (>= W+1, vreg aligned)


# ----------------------------- fused per-image kernel -----------------------------------

def _conv_relu_pool(xs_ref, x_flat, wt_ref, b_ref, H, W):
    """3x3 'same' conv + bias + ReLU + 2x2/2 max-pool in flattened-spatial layout.

    xs_ref : VMEM scratch (Cin, 2*MARGIN + H*W) bf16 (zero margins = 'same' padding)
    x_flat : (Cin, H*W) bf16 value, row-major flatten (p = y*W + x)
    wt_ref : (9, Cout, Cin) bf16 per-tap transposed conv weights
    b_ref  : (Cout, 1) f32
    Returns (Cout, H*W) f32 whose lane p = 2*(y'*W + x') holds the 2x2 max for pooled
    output (y', x'); other lanes are junk discarded by the following selection matmul.
    """
    HW = H * W
    M = _MARGIN
    Cout = wt_ref.shape[1]

    # in-kernel zero padding: zero the scratch, drop the image into the interior lanes
    xs_ref[...] = jnp.zeros_like(xs_ref)
    xs_ref[:, M:M + HW] = x_flat

    # masks killing the row-wraparound reads of the dx=0 / dx=2 taps (output columns 0 / W-1)
    col = jax.lax.broadcasted_iota(jnp.int32, (1, HW), 1) % W
    mask_l = (col != 0).astype(jnp.float32)
    mask_r = (col != (W - 1)).astype(jnp.float32)

    acc = jnp.zeros((Cout, HW), jnp.float32)
    for t in range(9):                                   # static unroll: 9 shifted MXU dots
        dy, dx = divmod(t, 3)
        off = (dy - 1) * W + (dx - 1)
        patch = xs_ref[:, M + off:M + off + HW]          # (Cin, HW) bf16, shifted view
        contrib = jnp.dot(wt_ref[t], patch, preferred_element_type=jnp.float32)
        if dx == 0:
            contrib = contrib * mask_l
        elif dx == 2:
            contrib = contrib * mask_r
        acc = acc + contrib

    acc = jnp.maximum(acc + b_ref[...], 0.0)             # bias + ReLU (f32, lane-dense)

    # fused 2x2 stride-2 max-pool, still flattened: pair (p, p+1) then (p, p+W)
    mh = jnp.maximum(acc, pltpu.roll(acc, HW - 1, 1))    # roll(-1) == roll(HW-1)
    mv = jnp.maximum(mh, pltpu.roll(mh, HW - W, 1))      # roll(-W) == roll(HW-W)
    return mv


def _cifar_kernel(x_ref, wc1_ref, bc1_ref, wc2_ref, bc2_ref, s1_ref, s2_ref,
                  w1_ref, b1_ref, w2_ref, b2_ref, w3_ref, b3_ref,
                  o_ref, xs1_ref, xs2_ref):
    bf16 = jnp.bfloat16
    f32 = jnp.float32

    # ---- conv block 1: (3, 32*32) -> pooled (6, 16*16) ----
    x0 = x_ref[0].astype(bf16)                                           # (3, 1024)
    mv1 = _conv_relu_pool(xs1_ref, x0, wc1_ref, bc1_ref, _H1, _W1)       # (6, 1024)
    p1 = jnp.dot(mv1.astype(bf16), s1_ref[...], preferred_element_type=f32)   # (6, 256)

    # ---- conv block 2: (6, 16*16) -> pooled (12, 8*8) ----
    mv2 = _conv_relu_pool(xs2_ref, p1.astype(bf16), wc2_ref, bc2_ref, _H2, _W2)
    feat = jnp.dot(mv2.astype(bf16), s2_ref[...], preferred_element_type=f32)  # (12, 64)
    feat = feat.astype(bf16)   # rows = channels, cols = y'*8+x'  (== torch CHW flatten)

    # ---- classifier: flatten folded into 12 row-chunk matmuls (no in-kernel reshape) ----
    h = jnp.zeros((1, w1_ref.shape[1]), f32)
    for c in range(_C2):
        h = h + jnp.dot(feat[c:c + 1, :], w1_ref[_F * c:_F * (c + 1), :],
                        preferred_element_type=f32)
    h = jnp.maximum(h + b1_ref[...], 0.0)
    h = jnp.dot(h.astype(bf16), w2_ref[...], preferred_element_type=f32)
    h = jnp.maximum(h + b2_ref[...], 0.0)
    h = jnp.dot(h.astype(bf16), w3_ref[...], preferred_element_type=f32)
    o_ref[0] = (h + b3_ref[...]).astype(o_ref.dtype)


# ----------------------------------- wrapper ---------------------------------------------

def _pool_select(H, W):
    """0/1 (H*W, H/2*W/2) matrix: column (y', x') selects flat source index 2*(y'*W + x')."""
    Ho, Wo = H // 2, W // 2
    q = jnp.arange(Ho * Wo, dtype=jnp.int32)
    src = 2 * ((q // Wo) * W + (q % Wo))
    rows = jnp.arange(H * W, dtype=jnp.int32)[:, None]
    return (rows == src[None, :]).astype(jnp.bfloat16)


@jax.jit
def cifar10_cnn_forward(params, x_nchw):
    """x_nchw: (N, 3, 32, 32) f32 (PyTorch NCHW). Returns (N, 10) logits."""
    N = x_nchw.shape[0]
    xf = x_nchw.astype(jnp.float32).reshape(N, _C0, _H1 * _W1)   # free bitcast of NCHW

    def prep_conv_w(w):                     # HWIO (3,3,Cin,Cout) -> (9, Cout, Cin) bf16
        kh, kw, cin, cout = w.shape
        return jnp.transpose(w, (0, 1, 3, 2)).reshape(kh * kw, cout, cin).astype(jnp.bfloat16)

    wc1 = prep_conv_w(params["w_conv1"])
    wc2 = prep_conv_w(params["w_conv2"])
    bc1 = params["b_conv1"].reshape(_C1, 1).astype(jnp.float32)
    bc2 = params["b_conv2"].reshape(_C2, 1).astype(jnp.float32)
    s1 = _pool_select(_H1, _W1)                                  # (1024, 256) bf16
    s2 = _pool_select(_H2, _W2)                                  # (256, 64)  bf16
    w1 = params["w1"].astype(jnp.bfloat16)
    w2 = params["w2"].astype(jnp.bfloat16)
    w3 = params["w3"].astype(jnp.bfloat16)
    b1 = params["b1"].astype(jnp.float32)
    b2 = params["b2"].astype(jnp.float32)
    b3 = params["b3"].astype(jnp.float32)

    ins = (xf, wc1, bc1, wc2, bc2, s1, s2, w1, b1, w2, b2, w3, b3)

    def const_spec(a):                       # grid-invariant: stays resident in VMEM
        nd = a.ndim
        return pl.BlockSpec(a.shape, lambda n, _nd=nd: (0,) * _nd)

    in_specs = [pl.BlockSpec((1, _C0, _H1 * _W1), lambda n: (n, 0, 0))]
    in_specs += [const_spec(a) for a in ins[1:]]

    out = pl.pallas_call(
        _cifar_kernel,
        out_shape=jax.ShapeDtypeStruct((N, 1, 10), jnp.float32),
        grid=(N,),
        in_specs=in_specs,
        out_specs=pl.BlockSpec((1, 1, 10), lambda n: (n, 0, 0)),
        scratch_shapes=[
            pltpu.VMEM((_C0, _H1 * _W1 + 2 * _MARGIN), jnp.bfloat16),
            pltpu.VMEM((_C1, _H2 * _W2 + 2 * _MARGIN), jnp.bfloat16),
        ],
        compiler_params=pltpu.CompilerParams(dimension_semantics=("parallel",)),
    )(*ins)
    return out.reshape(N, 10)


# ----------------------------------- params / reference ----------------------------------

def init_params(key):
    """Deterministic synthetic parameters (PyTorch-default-style uniform init)."""
    ks = jax.random.split(key, 10)

    def u(k, shape, fan_in):
        bound = 1.0 / jnp.sqrt(jnp.float32(fan_in))
        return jax.random.uniform(k, shape, jnp.float32, -bound, bound)

    p = {}
    p["w_conv1"] = u(ks[0], (3, 3, 3, 6), 3 * 9)      # HWIO
    p["b_conv1"] = u(ks[1], (1, 6), 3 * 9)
    p["w_conv2"] = u(ks[2], (3, 3, 6, 12), 6 * 9)
    p["b_conv2"] = u(ks[3], (1, 12), 6 * 9)
    p["w1"] = u(ks[4], (768, 384), 768)
    p["b1"] = u(ks[5], (1, 384), 768)
    p["w2"] = u(ks[6], (384, 192), 384)
    p["b2"] = u(ks[7], (1, 192), 384)
    p["w3"] = u(ks[8], (192, 10), 192)
    p["b3"] = u(ks[9], (1, 10), 192)
    return p


def _ref_conv_relu_pool(x, w, b):
    y = jax.lax.conv_general_dilated(
        x, w, (1, 1), "SAME",
        dimension_numbers=("NHWC", "HWIO", "NHWC"),
        precision=jax.lax.Precision.HIGHEST)
    y = jnp.maximum(y + b.reshape(1, 1, 1, -1), 0.0)
    return jax.lax.reduce_window(y, -jnp.inf, jax.lax.max,
                                 (1, 2, 2, 1), (1, 2, 2, 1), "VALID")


def reference_forward(params, x_nchw):
    hi = jax.lax.Precision.HIGHEST
    x = jnp.transpose(x_nchw, (0, 2, 3, 1))
    x = _ref_conv_relu_pool(x, params["w_conv1"], params["b_conv1"])
    x = _ref_conv_relu_pool(x, params["w_conv2"], params["b_conv2"])
    x = jnp.transpose(x, (0, 3, 1, 2)).reshape(x.shape[0], -1)      # torch.flatten (CHW)
    h = jnp.maximum(jnp.dot(x, params["w1"], precision=hi) + params["b1"], 0.0)
    h = jnp.maximum(jnp.dot(h, params["w2"], precision=hi) + params["b2"], 0.0)
    return jnp.dot(h, params["w3"], precision=hi) + params["b3"]


# ------------------------------------------ main -----------------------------------------

if __name__ == "__main__":
    key = jax.random.PRNGKey(0)
    pkey, xkey = jax.random.split(key)
    params = init_params(pkey)

    # The classifier hard-codes 12*8*8 = 768 features, so the input must be 32x32 (CIFAR-10).
    x = jax.random.normal(xkey, (2, 3, 32, 32), jnp.float32)

    logits = cifar10_cnn_forward(params, x)
    logits = jax.block_until_ready(logits)
    assert logits.shape == (2, 10), logits.shape

    ref = reference_forward(params, x)
    max_err = float(jnp.max(jnp.abs(logits - ref)))
    assert jnp.allclose(logits, ref, atol=2e-2, rtol=2e-2), max_err

    print("KERNEL_OK")
</pallas_src>

<mosaic_0001>
module attributes {stable_mosaic.version = 11 : i64} {
  func.func @_cifar_kernel(%arg0: i32, %arg1: memref<1x3x1024xf32, #tpu.memory_space<vmem>>, %arg2: memref<9x6x3xbf16, #tpu.memory_space<vmem>>, %arg3: memref<6x1xf32, #tpu.memory_space<vmem>>, %arg4: memref<9x12x6xbf16, #tpu.memory_space<vmem>>, %arg5: memref<12x1xf32, #tpu.memory_space<vmem>>, %arg6: memref<1024x256xbf16, #tpu.memory_space<vmem>>, %arg7: memref<256x64xbf16, #tpu.memory_space<vmem>>, %arg8: memref<768x384xbf16, #tpu.memory_space<vmem>>, %arg9: memref<1x384xf32, #tpu.memory_space<vmem>>, %arg10: memref<384x192xbf16, #tpu.memory_space<vmem>>, %arg11: memref<1x192xf32, #tpu.memory_space<vmem>>, %arg12: memref<192x10xbf16, #tpu.memory_space<vmem>>, %arg13: memref<1x10xf32, #tpu.memory_space<vmem>>, %arg14: memref<1x1x10xf32, #tpu.memory_space<vmem>>, %arg15: memref<3x1280xbf16, #tpu.memory_space<vmem>>, %arg16: memref<6x512xbf16, #tpu.memory_space<vmem>>) attributes {dimension_semantics = [#tpu.dimension_semantics<parallel>], iteration_bounds = array<i64: 2>, scalar_prefetch = 0 : i64, scratch_operands = 2 : i64, tpu.core_type = #tpu.core_type<tc>, window_params = [{transform_indices = @transform_0, window_bounds = array<i64: 1, 3, 1024>}, {pipeline_mode = #tpu.pipeline_mode<synchronous>, transform_indices = @transform_1, window_bounds = array<i64: 9, 6, 3>}, {pipeline_mode = #tpu.pipeline_mode<synchronous>, transform_indices = @transform_2, window_bounds = array<i64: 6, 1>}, {pipeline_mode = #tpu.pipeline_mode<synchronous>, transform_indices = @transform_3, window_bounds = array<i64: 9, 12, 6>}, {pipeline_mode = #tpu.pipeline_mode<synchronous>, transform_indices = @transform_4, window_bounds = array<i64: 12, 1>}, {pipeline_mode = #tpu.pipeline_mode<synchronous>, transform_indices = @transform_5, window_bounds = array<i64: 1024, 256>}, {pipeline_mode = #tpu.pipeline_mode<synchronous>, transform_indices = @transform_6, window_bounds = array<i64: 256, 64>}, {pipeline_mode = #tpu.pipeline_mode<synchronous>, transform_indices = @transform_7, window_bounds = array<i64: 768, 384>}, {pipeline_mode = #tpu.pipeline_mode<synchronous>, transform_indices = @transform_8, window_bounds = array<i64: 1, 384>}, {pipeline_mode = #tpu.pipeline_mode<synchronous>, transform_indices = @transform_9, window_bounds = array<i64: 384, 192>}, {pipeline_mode = #tpu.pipeline_mode<synchronous>, transform_indices = @transform_10, window_bounds = array<i64: 1, 192>}, {pipeline_mode = #tpu.pipeline_mode<synchronous>, transform_indices = @transform_11, window_bounds = array<i64: 192, 10>}, {pipeline_mode = #tpu.pipeline_mode<synchronous>, transform_indices = @transform_12, window_bounds = array<i64: 1, 10>}, {transform_indices = @transform_13, window_bounds = array<i64: 1, 1, 10>}]} {
    %c0 = arith.constant 0 : index
    %c0_0 = arith.constant 0 : index
    %c0_1 = arith.constant 0 : index
    %0 = vector.load %arg1[%c0, %c0_0, %c0_1] : memref<1x3x1024xf32, #tpu.memory_space<vmem>>, vector<1x3x1024xf32>
    %1 = vector.shape_cast %0 : vector<1x3x1024xf32> to vector<3x1024xf32>
    %2 = arith.truncf %1 : vector<3x1024xf32> to vector<3x1024xbf16>
    %cst = arith.constant 0.000000e+00 : bf16
    %3 = vector.broadcast %cst : bf16 to vector<3x1280xbf16>
    %c0_2 = arith.constant 0 : index
    %c0_3 = arith.constant 0 : index
    %4 = vector.load %arg15[%c0_2, %c0_3] : memref<3x1280xbf16, #tpu.memory_space<vmem>>, vector<3x1280xbf16>
    tpu.vector_store %arg15[%c0_2, %c0_3], %3 {strides = array<i32>} : memref<3x1280xbf16, #tpu.memory_space<vmem>>, vector<3x1280xbf16>,
    %c0_4 = arith.constant 0 : index
    %c128 = arith.constant 128 : index
    %5 = vector.load %arg15[%c0_4, %c128] : memref<3x1280xbf16, #tpu.memory_space<vmem>>, vector<3x1024xbf16>
    tpu.vector_store %arg15[%c0_4, %c128], %2 {strides = array<i32>} : memref<3x1280xbf16, #tpu.memory_space<vmem>>, vector<3x1024xbf16>,
    %6 = tpu.iota {dimensions = array<i32: 1>} : vector<1x1024xi32>
    %c32_i32 = arith.constant 32 : i32
    %c0_i32 = arith.constant 0 : i32
    %7 = arith.cmpi eq, %c32_i32, %c0_i32 : i32
    %c1_i32 = arith.constant 1 : i32
    %8 = arith.select %7, %c1_i32, %c32_i32 : i32
    %9 = vector.broadcast %8 : i32 to vector<1x1024xi32>
    %10 = arith.remsi %6, %9 : vector<1x1024xi32>
    %c0_i32_5 = arith.constant 0 : i32
    %11 = vector.broadcast %c0_i32_5 : i32 to vector<1x1024xi32>
    %12 = arith.cmpi ne, %10, %11 : vector<1x1024xi32>
    %c0_i32_6 = arith.constant 0 : i32
    %13 = vector.broadcast %c0_i32_6 : i32 to vector<1x1024xi32>
    %14 = arith.cmpi slt, %10, %13 : vector<1x1024xi32>
    %c0_i32_7 = arith.constant 0 : i32
    %15 = arith.cmpi slt, %8, %c0_i32_7 : i32
    %16 = vector.broadcast %15 : i1 to vector<1x1024xi1>
    %17 = vector.broadcast %16 : vector<1x1024xi1> to vector<1x1024xi1>
    %18 = arith.xori %14, %17 : vector<1x1024xi1>
    %19 = arith.andi %18, %12 : vector<1x1024xi1>
    %20 = vector.broadcast %8 : i32 to vector<1x1024xi32>
    %21 = arith.addi %10, %20 : vector<1x1024xi32>
    %22 = arith.select %19, %21, %10 : vector<1x1024xi1>, vector<1x1024xi32>
    %c0_i32_8 = arith.constant 0 : i32
    %23 = vector.broadcast %c0_i32_8 : i32 to vector<1x1024xi32>
    %24 = arith.cmpi ne, %22, %23 : vector<1x1024xi32>
    %25 = arith.extui %24 : vector<1x1024xi1> to vector<1x1024xi32>
    %26 = arith.sitofp %25 : vector<1x1024xi32> to vector<1x1024xf32>
    %c31_i32 = arith.constant 31 : i32
    %27 = vector.broadcast %c31_i32 : i32 to vector<1x1024xi32>
    %28 = arith.cmpi ne, %22, %27 : vector<1x1024xi32>
    %29 = arith.extui %28 : vector<1x1024xi1> to vector<1x1024xi32>
    %30 = arith.sitofp %29 : vector<1x1024xi32> to vector<1x1024xf32>
    %cst_9 = arith.constant 0.000000e+00 : f32
    %31 = vector.broadcast %cst_9 : f32 to vector<6x1024xf32>
    %c0_10 = arith.constant 0 : index
    %c95 = arith.constant 95 : index
    %32 = vector.load %arg15[%c0_10, %c95] : memref<3x1280xbf16, #tpu.memory_space<vmem>>, vector<3x1024xbf16>
    %c0_11 = arith.constant 0 : index
    %c0_12 = arith.constant 0 : index
    %c0_13 = arith.constant 0 : index
    %33 = vector.load %arg2[%c0_11, %c0_12, %c0_13] : memref<9x6x3xbf16, #tpu.memory_space<vmem>>, vector<1x6x3xbf16>
    %34 = vector.shape_cast %33 : vector<1x6x3xbf16> to vector<6x3xbf16>
    %cst_14 = arith.constant dense<0.000000e+00> : vector<6x1024xf32>
    %35 = tpu.matmul %34, %32, %cst_14 {dimension_numbers = #tpu.dot_dimension_numbers<[1], [0], [0], [1], [0, 0, 1, 1], [], []>} : vector<6x3xbf16>, vector<3x1024xbf16>, vector<6x1024xf32> -> vector<6x1024xf32>
    %36 = vector.broadcast %26 : vector<1x1024xf32> to vector<6x1024xf32>
    %37 = arith.mulf %35, %36 : vector<6x1024xf32>
    %38 = arith.addf %31, %37 : vector<6x1024xf32>
    %c0_15 = arith.constant 0 : index
    %c96 = arith.constant 96 : index
    %39 = vector.load %arg15[%c0_15, %c96] : memref<3x1280xbf16, #tpu.memory_space<vmem>>, vector<3x1024xbf16>
    %c1 = arith.constant 1 : index
    %c0_16 = arith.constant 0 : index
    %c0_17 = arith.constant 0 : index
    %40 = vector.load %arg2[%c1, %c0_16, %c0_17] : memref<9x6x3xbf16, #tpu.memory_space<vmem>>, vector<1x6x3xbf16>
    %41 = vector.shape_cast %40 : vector<1x6x3xbf16> to vector<6x3xbf16>
    %cst_18 = arith.constant dense<0.000000e+00> : vector<6x1024xf32>
    %42 = tpu.matmul %41, %39, %cst_18 {dimension_numbers = #tpu.dot_dimension_numbers<[1], [0], [0], [1], [0, 0, 1, 1], [], []>} : vector<6x3xbf16>, vector<3x1024xbf16>, vector<6x1024xf32> -> vector<6x1024xf32>
    %43 = arith.addf %38, %42 : vector<6x1024xf32>
    %c0_19 = arith.constant 0 : index
    %c97 = arith.constant 97 : index
    %44 = vector.load %arg15[%c0_19, %c97] : memref<3x1280xbf16, #tpu.memory_space<vmem>>, vector<3x1024xbf16>
    %c2 = arith.constant 2 : index
    %c0_20 = arith.constant 0 : index
    %c0_21 = arith.constant 0 : index
    %45 = vector.load %arg2[%c2, %c0_20, %c0_21] : memref<9x6x3xbf16, #tpu.memory_space<vmem>>, vector<1x6x3xbf16>
    %46 = vector.shape_cast %45 : vector<1x6x3xbf16> to vector<6x3xbf16>
    %cst_22 = arith.constant dense<0.000000e+00> : vector<6x1024xf32>
    %47 = tpu.matmul %46, %44, %cst_22 {dimension_numbers = #tpu.dot_dimension_numbers<[1], [0], [0], [1], [0, 0, 1, 1], [], []>} : vector<6x3xbf16>, vector<3x1024xbf16>, vector<6x1024xf32> -> vector<6x1024xf32>
    %48 = vector.broadcast %30 : vector<1x1024xf32> to vector<6x1024xf32>
    %49 = arith.mulf %47, %48 : vector<6x1024xf32>
    %50 = arith.addf %43, %49 : vector<6x1024xf32>
    %c0_23 = arith.constant 0 : index
    %c127 = arith.constant 127 : index
    %51 = vector.load %arg15[%c0_23, %c127] : memref<3x1280xbf16, #tpu.memory_space<vmem>>, vector<3x1024xbf16>
    %c3 = arith.constant 3 : index
    %c0_24 = arith.constant 0 : index
    %c0_25 = arith.constant 0 : index
    %52 = vector.load %arg2[%c3, %c0_24, %c0_25] : memref<9x6x3xbf16, #tpu.memory_space<vmem>>, vector<1x6x3xbf16>
    %53 = vector.shape_cast %52 : vector<1x6x3xbf16> to vector<6x3xbf16>
    %cst_26 = arith.constant dense<0.000000e+00> : vector<6x1024xf32>
    %54 = tpu.matmul %53, %51, %cst_26 {dimension_numbers = #tpu.dot_dimension_numbers<[1], [0], [0], [1], [0, 0, 1, 1], [], []>} : vector<6x3xbf16>, vector<3x1024xbf16>, vector<6x1024xf32> -> vector<6x1024xf32>
    %55 = vector.broadcast %26 : vector<1x1024xf32> to vector<6x1024xf32>
    %56 = arith.mulf %54, %55 : vector<6x1024xf32>
    %57 = arith.addf %50, %56 : vector<6x1024xf32>
    %c0_27 = arith.constant 0 : index
    %c128_28 = arith.constant 128 : index
    %58 = vector.load %arg15[%c0_27, %c128_28] : memref<3x1280xbf16, #tpu.memory_space<vmem>>, vector<3x1024xbf16>
    %c4 = arith.constant 4 : index
    %c0_29 = arith.constant 0 : index
    %c0_30 = arith.constant 0 : index
    %59 = vector.load %arg2[%c4, %c0_29, %c0_30] : memref<9x6x3xbf16, #tpu.memory_space<vmem>>, vector<1x6x3xbf16>
    %60 = vector.shape_cast %59 : vector<1x6x3xbf16> to vector<6x3xbf16>
    %cst_31 = arith.constant dense<0.000000e+00> : vector<6x1024xf32>
    %61 = tpu.matmul %60, %58, %cst_31 {dimension_numbers = #tpu.dot_dimension_numbers<[1], [0], [0], [1], [0, 0, 1, 1], [], []>} : vector<6x3xbf16>, vector<3x1024xbf16>, vector<6x1024xf32> -> vector<6x1024xf32>
    %62 = arith.addf %57, %61 : vector<6x1024xf32>
    %c0_32 = arith.constant 0 : index
    %c129 = arith.constant 129 : index
    %63 = vector.load %arg15[%c0_32, %c129] : memref<3x1280xbf16, #tpu.memory_space<vmem>>, vector<3x1024xbf16>
    %c5 = arith.constant 5 : index
    %c0_33 = arith.constant 0 : index
    %c0_34 = arith.constant 0 : index
    %64 = vector.load %arg2[%c5, %c0_33, %c0_34] : memref<9x6x3xbf16, #tpu.memory_space<vmem>>, vector<1x6x3xbf16>
    %65 = vector.shape_cast %64 : vector<1x6x3xbf16> to vector<6x3xbf16>
    %cst_35 = arith.constant dense<0.000000e+00> : vector<6x1024xf32>
    %66 = tpu.matmul %65, %63, %cst_35 {dimension_numbers = #tpu.dot_dimension_numbers<[1], [0], [0], [1], [0, 0, 1, 1], [], []>} : vector<6x3xbf16>, vector<3x1024xbf16>, vector<6x1024xf32> -> vector<6x1024xf32>
    %67 = vector.broadcast %30 : vector<1x1024xf32> to vector<6x1024xf32>
    %68 = arith.mulf %66, %67 : vector<6x1024xf32>
    %69 = arith.addf %62, %68 : vector<6x1024xf32>
    %c0_36 = arith.constant 0 : index
    %c159 = arith.constant 159 : index
    %70 = vector.load %arg15[%c0_36, %c159] : memref<3x1280xbf16, #tpu.memory_space<vmem>>, vector<3x1024xbf16>
    %c6 = arith.constant 6 : index
    %c0_37 = arith.constant 0 : index
    %c0_38 = arith.constant 0 : index
    %71 = vector.load %arg2[%c6, %c0_37, %c0_38] : memref<9x6x3xbf16, #tpu.memory_space<vmem>>, vector<1x6x3xbf16>
    %72 = vector.shape_cast %71 : vector<1x6x3xbf16> to vector<6x3xbf16>
    %cst_39 = arith.constant dense<0.000000e+00> : vector<6x1024xf32>
    %73 = tpu.matmul %72, %70, %cst_39 {dimension_numbers = #tpu.dot_dimension_numbers<[1], [0], [0], [1], [0, 0, 1, 1], [], []>} : vector<6x3xbf16>, vector<3x1024xbf16>, vector<6x1024xf32> -> vector<6x1024xf32>
    %74 = vector.broadcast %26 : vector<1x1024xf32> to vector<6x1024xf32>
    %75 = arith.mulf %73, %74 : vector<6x1024xf32>
    %76 = arith.addf %69, %75 : vector<6x1024xf32>
    %c0_40 = arith.constant 0 : index
    %c160 = arith.constant 160 : index
    %77 = vector.load %arg15[%c0_40, %c160] : memref<3x1280xbf16, #tpu.memory_space<vmem>>, vector<3x1024xbf16>
    %c7 = arith.constant 7 : index
    %c0_41 = arith.constant 0 : index
    %c0_42 = arith.constant 0 : index
    %78 = vector.load %arg2[%c7, %c0_41, %c0_42] : memref<9x6x3xbf16, #tpu.memory_space<vmem>>, vector<1x6x3xbf16>
    %79 = vector.shape_cast %78 : vector<1x6x3xbf16> to vector<6x3xbf16>
    %cst_43 = arith.constant dense<0.000000e+00> : vector<6x1024xf32>
    %80 = tpu.matmul %79, %77, %cst_43 {dimension_numbers = #tpu.dot_dimension_numbers<[1], [0], [0], [1], [0, 0, 1, 1], [], []>} : vector<6x3xbf16>, vector<3x1024xbf16>, vector<6x1024xf32> -> vector<6x1024xf32>
    %81 = arith.addf %76, %80 : vector<6x1024xf32>
    %c0_44 = arith.constant 0 : index
    %c161 = arith.constant 161 : index
    %82 = vector.load %arg15[%c0_44, %c161] : memref<3x1280xbf16, #tpu.memory_space<vmem>>, vector<3x1024xbf16>
    %c8 = arith.constant 8 : index
    %c0_45 = arith.constant 0 : index
    %c0_46 = arith.constant 0 : index
    %83 = vector.load %arg2[%c8, %c0_45, %c0_46] : memref<9x6x3xbf16, #tpu.memory_space<vmem>>, vector<1x6x3xbf16>
    %84 = vector.shape_cast %83 : vector<1x6x3xbf16> to vector<6x3xbf16>
    %cst_47 = arith.constant dense<0.000000e+00> : vector<6x1024xf32>
    %85 = tpu.matmul %84, %82, %cst_47 {dimension_numbers = #tpu.dot_dimension_numbers<[1], [0], [0], [1], [0, 0, 1, 1], [], []>} : vector<6x3xbf16>, vector<3x1024xbf16>, vector<6x1024xf32> -> vector<6x1024xf32>
    %86 = vector.broadcast %30 : vector<1x1024xf32> to vector<6x1024xf32>
    %87 = arith.mulf %85, %86 : vector<6x1024xf32>
    %88 = arith.addf %81, %87 : vector<6x1024xf32>
    %c0_48 = arith.constant 0 : index
    %c0_49 = arith.constant 0 : index
    %89 = vector.load %arg3[%c0_48, %c0_49] : memref<6x1xf32, #tpu.memory_space<vmem>>, vector<6x1xf32>
    %90 = vector.broadcast %89 : vector<6x1xf32> to vector<6x1024xf32>
    %91 = arith.addf %88, %90 : vector<6x1024xf32>
    %cst_50 = arith.constant 0.000000e+00 : f32
    %92 = vector.broadcast %cst_50 : f32 to vector<6x1024xf32>
    %93 = arith.maximumf %91, %92 : vector<6x1024xf32>
    %c1023_i32 = arith.constant 1023 : i32
    %94 = tpu.dynamic_rotate %93 by %c1023_i32 dim 1 : vector<6x1024xf32>, i32 -> vector<6x1024xf32>
    %95 = arith.maximumf %93, %94 : vector<6x1024xf32>
    %c992_i32 = arith.constant 992 : i32
    %96 = tpu.dynamic_rotate %95 by %c992_i32 dim 1 : vector<6x1024xf32>, i32 -> vector<6x1024xf32>
    %97 = arith.maximumf %95, %96 : vector<6x1024xf32>
    %98 = arith.truncf %97 : vector<6x1024xf32> to vector<6x1024xbf16>
    %c0_51 = arith.constant 0 : index
    %c0_52 = arith.constant 0 : index
    %99 = vector.load %arg6[%c0_51, %c0_52] : memref<1024x256xbf16, #tpu.memory_space<vmem>>, vector<1024x256xbf16>
    %cst_53 = arith.constant dense<0.000000e+00> : vector<6x256xf32>
    %100 = tpu.matmul %98, %99, %cst_53 {dimension_numbers = #tpu.dot_dimension_numbers<[1], [0], [0], [1], [0, 0, 1, 1], [], []>} : vector<6x1024xbf16>, vector<1024x256xbf16>, vector<6x256xf32> -> vector<6x256xf32>
    %101 = arith.truncf %100 : vector<6x256xf32> to vector<6x256xbf16>
    %cst_54 = arith.constant 0.000000e+00 : bf16
    %102 = vector.broadcast %cst_54 : bf16 to vector<6x512xbf16>
    %c0_55 = arith.constant 0 : index
    %c0_56 = arith.constant 0 : index
    %103 = vector.load %arg16[%c0_55, %c0_56] : memref<6x512xbf16, #tpu.memory_space<vmem>>, vector<6x512xbf16>
    tpu.vector_store %arg16[%c0_55, %c0_56], %102 {strides = array<i32>} : memref<6x512xbf16, #tpu.memory_space<vmem>>, vector<6x512xbf16>,
    %c0_57 = arith.constant 0 : index
    %c128_58 = arith.constant 128 : index
    %104 = vector.load %arg16[%c0_57, %c128_58] : memref<6x512xbf16, #tpu.memory_space<vmem>>, vector<6x256xbf16>
    tpu.vector_store %arg16[%c0_57, %c128_58], %101 {strides = array<i32>} : memref<6x512xbf16, #tpu.memory_space<vmem>>, vector<6x256xbf16>,
    %105 = tpu.iota {dimensions = array<i32: 1>} : vector<1x256xi32>
    %c16_i32 = arith.constant 16 : i32
    %c0_i32_59 = arith.constant 0 : i32
    %106 = arith.cmpi eq, %c16_i32, %c0_i32_59 : i32
    %c1_i32_60 = arith.constant 1 : i32
    %107 = arith.select %106, %c1_i32_60, %c16_i32 : i32
    %108 = vector.broadcast %107 : i32 to vector<1x256xi32>
    %109 = arith.remsi %105, %108 : vector<1x256xi32>
    %c0_i32_61 = arith.constant 0 : i32
    %110 = vector.broadcast %c0_i32_61 : i32 to vector<1x256xi32>
    %111 = arith.cmpi ne, %109, %110 : vector<1x256xi32>
    %c0_i32_62 = arith.constant 0 : i32
    %112 = vector.broadcast %c0_i32_62 : i32 to vector<1x256xi32>
    %113 = arith.cmpi slt, %109, %112 : vector<1x256xi32>
    %c0_i32_63 = arith.constant 0 : i32
    %114 = arith.cmpi slt, %107, %c0_i32_63 : i32
    %115 = vector.broadcast %114 : i1 to vector<1x256xi1>
    %116 = vector.broadcast %115 : vector<1x256xi1> to vector<1x256xi1>
    %117 = arith.xori %113, %116 : vector<1x256xi1>
    %118 = arith.andi %117, %111 : vector<1x256xi1>
    %119 = vector.broadcast %107 : i32 to vector<1x256xi32>
    %120 = arith.addi %109, %119 : vector<1x256xi32>
    %121 = arith.select %118, %120, %109 : vector<1x256xi1>, vector<1x256xi32>
    %c0_i32_64 = arith.constant 0 : i32
    %122 = vector.broadcast %c0_i32_64 : i32 to vector<1x256xi32>
    %123 = arith.cmpi ne, %121, %122 : vector<1x256xi32>
    %124 = arith.extui %123 : vector<1x256xi1> to vector<1x256xi32>
    %125 = arith.sitofp %124 : vector<1x256xi32> to vector<1x256xf32>
    %c15_i32 = arith.constant 15 : i32
    %126 = vector.broadcast %c15_i32 : i32 to vector<1x256xi32>
    %127 = arith.cmpi ne, %121, %126 : vector<1x256xi32>
    %128 = arith.extui %127 : vector<1x256xi1> to vector<1x256xi32>
    %129 = arith.sitofp %128 : vector<1x256xi32> to vector<1x256xf32>
    %cst_65 = arith.constant 0.000000e+00 : f32
    %130 = vector.broadcast %cst_65 : f32 to vector<12x256xf32>
    %c0_66 = arith.constant 0 : index
    %c111 = arith.constant 111 : index
    %131 = vector.load %arg16[%c0_66, %c111] : memref<6x512xbf16, #tpu.memory_space<vmem>>, vector<6x256xbf16>
    %c0_67 = arith.constant 0 : index
    %c0_68 = arith.constant 0 : index
    %c0_69 = arith.constant 0 : index
    %132 = vector.load %arg4[%c0_67, %c0_68, %c0_69] : memref<9x12x6xbf16, #tpu.memory_space<vmem>>, vector<1x12x6xbf16>
    %133 = vector.shape_cast %132 : vector<1x12x6xbf16> to vector<12x6xbf16>
    %cst_70 = arith.constant dense<0.000000e+00> : vector<12x256xf32>
    %134 = tpu.matmul %133, %131, %cst_70 {dimension_numbers = #tpu.dot_dimension_numbers<[1], [0], [0], [1], [0, 0, 1, 1], [], []>} : vector<12x6xbf16>, vector<6x256xbf16>, vector<12x256xf32> -> vector<12x256xf32>
    %135 = vector.broadcast %125 : vector<1x256xf32> to vector<12x256xf32>
    %136 = arith.mulf %134, %135 : vector<12x256xf32>
    %137 = arith.addf %130, %136 : vector<12x256xf32>
    %c0_71 = arith.constant 0 : index
    %c112 = arith.constant 112 : index
    %138 = vector.load %arg16[%c0_71, %c112] : memref<6x512xbf16, #tpu.memory_space<vmem>>, vector<6x256xbf16>
    %c1_72 = arith.constant 1 : index
    %c0_73 = arith.constant 0 : index
    %c0_74 = arith.constant 0 : index
    %139 = vector.load %arg4[%c1_72, %c0_73, %c0_74] : memref<9x12x6xbf16, #tpu.memory_space<vmem>>, vector<1x12x6xbf16>
    %140 = vector.shape_cast %139 : vector<1x12x6xbf16> to vector<12x6xbf16>
    %cst_75 = arith.constant dense<0.000000e+00> : vector<12x256xf32>
    %141 = tpu.matmul %140, %138, %cst_75 {dimension_numbers = #tpu.dot_dimension_numbers<[1], [0], [0], [1], [0, 0, 1, 1], [], []>} : vector<12x6xbf16>, vector<6x256xbf16>, vector<12x256xf32> -> vector<12x256xf32>
    %142 = arith.addf %137, %141 : vector<12x256xf32>
    %c0_76 = arith.constant 0 : index
    %c113 = arith.constant 113 : index
    %143 = vector.load %arg16[%c0_76, %c113] : memref<6x512xbf16, #tpu.memory_space<vmem>>, vector<6x256xbf16>
    %c2_77 = arith.constant 2 : index
    %c0_78 = arith.constant 0 : index
    %c0_79 = arith.constant 0 : index
    %144 = vector.load %arg4[%c2_77, %c0_78, %c0_79] : memref<9x12x6xbf16, #tpu.memory_space<vmem>>, vector<1x12x6xbf16>
    %145 = vector.shape_cast %144 : vector<1x12x6xbf16> to vector<12x6xbf16>
    %cst_80 = arith.constant dense<0.000000e+00> : vector<12x256xf32>
    %146 = tpu.matmul %145, %143, %cst_80 {dimension_numbers = #tpu.dot_dimension_numbers<[1], [0], [0], [1], [0, 0, 1, 1], [], []>} : vector<12x6xbf16>, vector<6x256xbf16>, vector<12x256xf32> -> vector<12x256xf32>
    %147 = vector.broadcast %129 : vector<1x256xf32> to vector<12x256xf32>
    %148 = arith.mulf %146, %147 : vector<12x256xf32>
    %149 = arith.addf %142, %148 : vector<12x256xf32>
    %c0_81 = arith.constant 0 : index
    %c127_82 = arith.constant 127 : index
    %150 = vector.load %arg16[%c0_81, %c127_82] : memref<6x512xbf16, #tpu.memory_space<vmem>>, vector<6x256xbf16>
    %c3_83 = arith.constant 3 : index
    %c0_84 = arith.constant 0 : index
    %c0_85 = arith.constant 0 : index
    %151 = vector.load %arg4[%c3_83, %c0_84, %c0_85] : memref<9x12x6xbf16, #tpu.memory_space<vmem>>, vector<1x12x6xbf16>
    %152 = vector.shape_cast %151 : vector<1x12x6xbf16> to vector<12x6xbf16>
    %cst_86 = arith.constant dense<0.000000e+00> : vector<12x256xf32>
    %153 = tpu.matmul %152, %150, %cst_86 {dimension_numbers = #tpu.dot_dimension_numbers<[1], [0], [0], [1], [0, 0, 1, 1], [], []>} : vector<12x6xbf16>, vector<6x256xbf16>, vector<12x256xf32> -> vector<12x256xf32>
    %154 = vector.broadcast %125 : vector<1x256xf32> to vector<12x256xf32>
    %155 = arith.mulf %153, %154 : vector<12x256xf32>
    %156 = arith.addf %149, %155 : vector<12x256xf32>
    %c0_87 = arith.constant 0 : index
    %c128_88 = arith.constant 128 : index
    %157 = vector.load %arg16[%c0_87, %c128_88] : memref<6x512xbf16, #tpu.memory_space<vmem>>, vector<6x256xbf16>
    %c4_89 = arith.constant 4 : index
    %c0_90 = arith.constant 0 : index
    %c0_91 = arith.constant 0 : index
    %158 = vector.load %arg4[%c4_89, %c0_90, %c0_91] : memref<9x12x6xbf16, #tpu.memory_space<vmem>>, vector<1x12x6xbf16>
    %159 = vector.shape_cast %158 : vector<1x12x6xbf16> to vector<12x6xbf16>
    %cst_92 = arith.constant dense<0.000000e+00> : vector<12x256xf32>
    %160 = tpu.matmul %159, %157, %cst_92 {dimension_numbers = #tpu.dot_dimension_numbers<[1], [0], [0], [1], [0, 0, 1, 1], [], []>} : vector<12x6xbf16>, vector<6x256xbf16>, vector<12x256xf32> -> vector<12x256xf32>
    %161 = arith.addf %156, %160 : vector<12x256xf32>
    %c0_93 = arith.constant 0 : index
    %c129_94 = arith.constant 129 : index
    %162 = vector.load %arg16[%c0_93, %c129_94] : memref<6x512xbf16, #tpu.memory_space<vmem>>, vector<6x256xbf16>
    %c5_95 = arith.constant 5 : index
    %c0_96 = arith.constant 0 : index
    %c0_97 = arith.constant 0 : index
    %163 = vector.load %arg4[%c5_95, %c0_96, %c0_97] : memref<9x12x6xbf16, #tpu.memory_space<vmem>>, vector<1x12x6xbf16>
    %164 = vector.shape_cast %163 : vector<1x12x6xbf16> to vector<12x6xbf16>
    %cst_98 = arith.constant dense<0.000000e+00> : vector<12x256xf32>
    %165 = tpu.matmul %164, %162, %cst_98 {dimension_numbers = #tpu.dot_dimension_numbers<[1], [0], [0], [1], [0, 0, 1, 1], [], []>} : vector<12x6xbf16>, vector<6x256xbf16>, vector<12x256xf32> -> vector<12x256xf32>
    %166 = vector.broadcast %129 : vector<1x256xf32> to vector<12x256xf32>
    %167 = arith.mulf %165, %166 : vector<12x256xf32>
    %168 = arith.addf %161, %167 : vector<12x256xf32>
    %c0_99 = arith.constant 0 : index
    %c143 = arith.constant 143 : index
    %169 = vector.load %arg16[%c0_99, %c143] : memref<6x512xbf16, #tpu.memory_space<vmem>>, vector<6x256xbf16>
    %c6_100 = arith.constant 6 : index
    %c0_101 = arith.constant 0 : index
    %c0_102 = arith.constant 0 : index
    %170 = vector.load %arg4[%c6_100, %c0_101, %c0_102] : memref<9x12x6xbf16, #tpu.memory_space<vmem>>, vector<1x12x6xbf16>
    %171 = vector.shape_cast %170 : vector<1x12x6xbf16> to vector<12x6xbf16>
    %cst_103 = arith.constant dense<0.000000e+00> : vector<12x256xf32>
    %172 = tpu.matmul %171, %169, %cst_103 {dimension_numbers = #tpu.dot_dimension_numbers<[1], [0], [0], [1], [0, 0, 1, 1], [], []>} : vector<12x6xbf16>, vector<6x256xbf16>, vector<12x256xf32> -> vector<12x256xf32>
    %173 = vector.broadcast %125 : vector<1x256xf32> to vector<12x256xf32>
    %174 = arith.mulf %172, %173 : vector<12x256xf32>
    %175 = arith.addf %168, %174 : vector<12x256xf32>
    %c0_104 = arith.constant 0 : index
    %c144 = arith.constant 144 : index
    %176 = vector.load %arg16[%c0_104, %c144] : memref<6x512xbf16, #tpu.memory_space<vmem>>, vector<6x256xbf16>
    %c7_105 = arith.constant 7 : index
    %c0_106 = arith.constant 0 : index
    %c0_107 = arith.constant 0 : index
    %177 = vector.load %arg4[%c7_105, %c0_106, %c0_107] : memref<9x12x6xbf16, #tpu.memory_space<vmem>>, vector<1x12x6xbf16>
    %178 = vector.shape_cast %177 : vector<1x12x6xbf16> to vector<12x6xbf16>
    %cst_108 = arith.constant dense<0.000000e+00> : vector<12x256xf32>
    %179 = tpu.matmul %178, %176, %cst_108 {dimension_numbers = #tpu.dot_dimension_numbers<[1], [0], [0], [1], [0, 0, 1, 1], [], []>} : vector<12x6xbf16>, vector<6x256xbf16>, vector<12x256xf32> -> vector<12x256xf32>
    %180 = arith.addf %175, %179 : vector<12x256xf32>
    %c0_109 = arith.constant 0 : index
    %c145 = arith.constant 145 : index
    %181 = vector.load %arg16[%c0_109, %c145] : memref<6x512xbf16, #tpu.memory_space<vmem>>, vector<6x256xbf16>
    %c8_110 = arith.constant 8 : index
    %c0_111 = arith.constant 0 : index
    %c0_112 = arith.constant 0 : index
    %182 = vector.load %arg4[%c8_110, %c0_111, %c0_112] : memref<9x12x6xbf16, #tpu.memory_space<vmem>>, vector<1x12x6xbf16>
    %183 = vector.shape_cast %182 : vector<1x12x6xbf16> to vector<12x6xbf16>
    %cst_113 = arith.constant dense<0.000000e+00> : vector<12x256xf32>
    %184 = tpu.matmul %183, %181, %cst_113 {dimension_numbers = #tpu.dot_dimension_numbers<[1], [0], [0], [1], [0, 0, 1, 1], [], []>} : vector<12x6xbf16>, vector<6x256xbf16>, vector<12x256xf32> -> vector<12x256xf32>
    %185 = vector.broadcast %129 : vector<1x256xf32> to vector<12x256xf32>
    %186 = arith.mulf %184, %185 : vector<12x256xf32>
    %187 = arith.addf %180, %186 : vector<12x256xf32>
    %c0_114 = arith.constant 0 : index
    %c0_115 = arith.constant 0 : index
    %188 = vector.load %arg5[%c0_114, %c0_115] : memref<12x1xf32, #tpu.memory_space<vmem>>, vector<12x1xf32>
    %189 = vector.broadcast %188 : vector<12x1xf32> to vector<12x256xf32>
    %190 = arith.addf %187, %189 : vector<12x256xf32>
    %cst_116 = arith.constant 0.000000e+00 : f32
    %191 = vector.broadcast %cst_116 : f32 to vector<12x256xf32>
    %192 = arith.maximumf %190, %191 : vector<12x256xf32>
    %c255_i32 = arith.constant 255 : i32
    %193 = tpu.dynamic_rotate %192 by %c255_i32 dim 1 : vector<12x256xf32>, i32 -> vector<12x256xf32>
    %194 = arith.maximumf %192, %193 : vector<12x256xf32>
    %c240_i32 = arith.constant 240 : i32
    %195 = tpu.dynamic_rotate %194 by %c240_i32 dim 1 : vector<12x256xf32>, i32 -> vector<12x256xf32>
    %196 = arith.maximumf %194, %195 : vector<12x256xf32>
    %197 = arith.truncf %196 : vector<12x256xf32> to vector<12x256xbf16>
    %c0_117 = arith.constant 0 : index
    %c0_118 = arith.constant 0 : index
    %198 = vector.load %arg7[%c0_117, %c0_118] : memref<256x64xbf16, #tpu.memory_space<vmem>>, vector<256x64xbf16>
    %cst_119 = arith.constant dense<0.000000e+00> : vector<12x64xf32>
    %199 = tpu.matmul %197, %198, %cst_119 {dimension_numbers = #tpu.dot_dimension_numbers<[1], [0], [0], [1], [0, 0, 1, 1], [], []>} : vector<12x256xbf16>, vector<256x64xbf16>, vector<12x64xf32> -> vector<12x64xf32>
    %200 = arith.truncf %199 : vector<12x64xf32> to vector<12x64xbf16>
    %cst_120 = arith.constant 0.000000e+00 : f32
    %201 = vector.broadcast %cst_120 : f32 to vector<1x384xf32>
    %202 = vector.extract_strided_slice %200 {offsets = [0, 0], sizes = [1, 64], strides = [1, 1]} : vector<12x64xbf16> to vector<1x64xbf16>
    %c0_121 = arith.constant 0 : index
    %c0_122 = arith.constant 0 : index
    %203 = vector.load %arg8[%c0_121, %c0_122] : memref<768x384xbf16, #tpu.memory_space<vmem>>, vector<64x384xbf16>
    %cst_123 = arith.constant dense<0.000000e+00> : vector<1x384xf32>
    %204 = tpu.matmul %202, %203, %cst_123 {dimension_numbers = #tpu.dot_dimension_numbers<[1], [0], [0], [1], [0, 0, 1, 1], [], []>} : vector<1x64xbf16>, vector<64x384xbf16>, vector<1x384xf32> -> vector<1x384xf32>
    %205 = arith.addf %201, %204 : vector<1x384xf32>
    %206 = vector.extract_strided_slice %200 {offsets = [1, 0], sizes = [1, 64], strides = [1, 1]} : vector<12x64xbf16> to vector<1x64xbf16>
    %c64 = arith.constant 64 : index
    %c0_124 = arith.constant 0 : index
    %207 = vector.load %arg8[%c64, %c0_124] : memref<768x384xbf16, #tpu.memory_space<vmem>>, vector<64x384xbf16>
    %cst_125 = arith.constant dense<0.000000e+00> : vector<1x384xf32>
    %208 = tpu.matmul %206, %207, %cst_125 {dimension_numbers = #tpu.dot_dimension_numbers<[1], [0], [0], [1], [0, 0, 1, 1], [], []>} : vector<1x64xbf16>, vector<64x384xbf16>, vector<1x384xf32> -> vector<1x384xf32>
    %209 = arith.addf %205, %208 : vector<1x384xf32>
    %210 = vector.extract_strided_slice %200 {offsets = [2, 0], sizes = [1, 64], strides = [1, 1]} : vector<12x64xbf16> to vector<1x64xbf16>
    %c128_126 = arith.constant 128 : index
    %c0_127 = arith.constant 0 : index
    %211 = vector.load %arg8[%c128_126, %c0_127] : memref<768x384xbf16, #tpu.memory_space<vmem>>, vector<64x384xbf16>
    %cst_128 = arith.constant dense<0.000000e+00> : vector<1x384xf32>
    %212 = tpu.matmul %210, %211, %cst_128 {dimension_numbers = #tpu.dot_dimension_numbers<[1], [0], [0], [1], [0, 0, 1, 1], [], []>} : vector<1x64xbf16>, vector<64x384xbf16>, vector<1x384xf32> -> vector<1x384xf32>
    %213 = arith.addf %209, %212 : vector<1x384xf32>
    %214 = vector.extract_strided_slice %200 {offsets = [3, 0], sizes = [1, 64], strides = [1, 1]} : vector<12x64xbf16> to vector<1x64xbf16>
    %c192 = arith.constant 192 : index
    %c0_129 = arith.constant 0 : index
    %215 = vector.load %arg8[%c192, %c0_129] : memref<768x384xbf16, #tpu.memory_space<vmem>>, vector<64x384xbf16>
    %cst_130 = arith.constant dense<0.000000e+00> : vector<1x384xf32>
    %216 = tpu.matmul %214, %215, %cst_130 {dimension_numbers = #tpu.dot_dimension_numbers<[1], [0], [0], [1], [0, 0, 1, 1], [], []>} : vector<1x64xbf16>, vector<64x384xbf16>, vector<1x384xf32> -> vector<1x384xf32>
    %217 = arith.addf %213, %216 : vector<1x384xf32>
    %218 = vector.extract_strided_slice %200 {offsets = [4, 0], sizes = [1, 64], strides = [1, 1]} : vector<12x64xbf16> to vector<1x64xbf16>
    %c256 = arith.constant 256 : index
    %c0_131 = arith.constant 0 : index
    %219 = vector.load %arg8[%c256, %c0_131] : memref<768x384xbf16, #tpu.memory_space<vmem>>, vector<64x384xbf16>
    %cst_132 = arith.constant dense<0.000000e+00> : vector<1x384xf32>
    %220 = tpu.matmul %218, %219, %cst_132 {dimension_numbers = #tpu.dot_dimension_numbers<[1], [0], [0], [1], [0, 0, 1, 1], [], []>} : vector<1x64xbf16>, vector<64x384xbf16>, vector<1x384xf32> -> vector<1x384xf32>
    %221 = arith.addf %217, %220 : vector<1x384xf32>
    %222 = vector.extract_strided_slice %200 {offsets = [5, 0], sizes = [1, 64], strides = [1, 1]} : vector<12x64xbf16> to vector<1x64xbf16>
    %c320 = arith.constant 320 : index
    %c0_133 = arith.constant 0 : index
    %223 = vector.load %arg8[%c320, %c0_133] : memref<768x384xbf16, #tpu.memory_space<vmem>>, vector<64x384xbf16>
    %cst_134 = arith.constant dense<0.000000e+00> : vector<1x384xf32>
    %224 = tpu.matmul %222, %223, %cst_134 {dimension_numbers = #tpu.dot_dimension_numbers<[1], [0], [0], [1], [0, 0, 1, 1], [], []>} : vector<1x64xbf16>, vector<64x384xbf16>, vector<1x384xf32> -> vector<1x384xf32>
    %225 = arith.addf %221, %224 : vector<1x384xf32>
    %226 = vector.extract_strided_slice %200 {offsets = [6, 0], sizes = [1, 64], strides = [1, 1]} : vector<12x64xbf16> to vector<1x64xbf16>
    %c384 = arith.constant 384 : index
    %c0_135 = arith.constant 0 : index
    %227 = vector.load %arg8[%c384, %c0_135] : memref<768x384xbf16, #tpu.memory_space<vmem>>, vector<64x384xbf16>
    %cst_136 = arith.constant dense<0.000000e+00> : vector<1x384xf32>
    %228 = tpu.matmul %226, %227, %cst_136 {dimension_numbers = #tpu.dot_dimension_numbers<[1], [0], [0], [1], [0, 0, 1, 1], [], []>} : vector<1x64xbf16>, vector<64x384xbf16>, vector<1x384xf32> -> vector<1x384xf32>
    %229 = arith.addf %225, %228 : vector<1x384xf32>
    %230 = vector.extract_strided_slice %200 {offsets = [7, 0], sizes = [1, 64], strides = [1, 1]} : vector<12x64xbf16> to vector<1x64xbf16>
    %c448 = arith.constant 448 : index
    %c0_137 = arith.constant 0 : index
    %231 = vector.load %arg8[%c448, %c0_137] : memref<768x384xbf16, #tpu.memory_space<vmem>>, vector<64x384xbf16>
    %cst_138 = arith.constant dense<0.000000e+00> : vector<1x384xf32>
    %232 = tpu.matmul %230, %231, %cst_138 {dimension_numbers = #tpu.dot_dimension_numbers<[1], [0], [0], [1], [0, 0, 1, 1], [], []>} : vector<1x64xbf16>, vector<64x384xbf16>, vector<1x384xf32> -> vector<1x384xf32>
    %233 = arith.addf %229, %232 : vector<1x384xf32>
    %234 = vector.extract_strided_slice %200 {offsets = [8, 0], sizes = [1, 64], strides = [1, 1]} : vector<12x64xbf16> to vector<1x64xbf16>
    %c512 = arith.constant 512 : index
    %c0_139 = arith.constant 0 : index
    %235 = vector.load %arg8[%c512, %c0_139] : memref<768x384xbf16, #tpu.memory_space<vmem>>, vector<64x384xbf16>
    %cst_140 = arith.constant dense<0.000000e+00> : vector<1x384xf32>
    %236 = tpu.matmul %234, %235, %cst_140 {dimension_numbers = #tpu.dot_dimension_numbers<[1], [0], [0], [1], [0, 0, 1, 1], [], []>} : vector<1x64xbf16>, vector<64x384xbf16>, vector<1x384xf32> -> vector<1x384xf32>
    %237 = arith.addf %233, %236 : vector<1x384xf32>
    %238 = vector.extract_strided_slice %200 {offsets = [9, 0], sizes = [1, 64], strides = [1, 1]} : vector<12x64xbf16> to vector<1x64xbf16>
    %c576 = arith.constant 576 : index
    %c0_141 = arith.constant 0 : index
    %239 = vector.load %arg8[%c576, %c0_141] : memref<768x384xbf16, #tpu.memory_space<vmem>>, vector<64x384xbf16>
    %cst_142 = arith.constant dense<0.000000e+00> : vector<1x384xf32>
    %240 = tpu.matmul %238, %239, %cst_142 {dimension_numbers = #tpu.dot_dimension_numbers<[1], [0], [0], [1], [0, 0, 1, 1], [], []>} : vector<1x64xbf16>, vector<64x384xbf16>, vector<1x384xf32> -> vector<1x384xf32>
    %241 = arith.addf %237, %240 : vector<1x384xf32>
    %242 = vector.extract_strided_slice %200 {offsets = [10, 0], sizes = [1, 64], strides = [1, 1]} : vector<12x64xbf16> to vector<1x64xbf16>
    %c640 = arith.constant 640 : index
    %c0_143 = arith.constant 0 : index
    %243 = vector.load %arg8[%c640, %c0_143] : memref<768x384xbf16, #tpu.memory_space<vmem>>, vector<64x384xbf16>
    %cst_144 = arith.constant dense<0.000000e+00> : vector<1x384xf32>
    %244 = tpu.matmul %242, %243, %cst_144 {dimension_numbers = #tpu.dot_dimension_numbers<[1], [0], [0], [1], [0, 0, 1, 1], [], []>} : vector<1x64xbf16>, vector<64x384xbf16>, vector<1x384xf32> -> vector<1x384xf32>
    %245 = arith.addf %241, %244 : vector<1x384xf32>
    %246 = vector.extract_strided_slice %200 {offsets = [11, 0], sizes = [1, 64], strides = [1, 1]} : vector<12x64xbf16> to vector<1x64xbf16>
    %c704 = arith.constant 704 : index
    %c0_145 = arith.constant 0 : index
    %247 = vector.load %arg8[%c704, %c0_145] : memref<768x384xbf16, #tpu.memory_space<vmem>>, vector<64x384xbf16>
    %cst_146 = arith.constant dense<0.000000e+00> : vector<1x384xf32>
    %248 = tpu.matmul %246, %247, %cst_146 {dimension_numbers = #tpu.dot_dimension_numbers<[1], [0], [0], [1], [0, 0, 1, 1], [], []>} : vector<1x64xbf16>, vector<64x384xbf16>, vector<1x384xf32> -> vector<1x384xf32>
    %249 = arith.addf %245, %248 : vector<1x384xf32>
    %c0_147 = arith.constant 0 : index
    %c0_148 = arith.constant 0 : index
    %250 = vector.load %arg9[%c0_147, %c0_148] : memref<1x384xf32, #tpu.memory_space<vmem>>, vector<1x384xf32>
    %251 = arith.addf %249, %250 : vector<1x384xf32>
    %cst_149 = arith.constant 0.000000e+00 : f32
    %252 = vector.broadcast %cst_149 : f32 to vector<1x384xf32>
    %253 = arith.maximumf %251, %252 : vector<1x384xf32>
    %254 = arith.truncf %253 : vector<1x384xf32> to vector<1x384xbf16>
    %c0_150 = arith.constant 0 : index
    %c0_151 = arith.constant 0 : index
    %255 = vector.load %arg10[%c0_150, %c0_151] : memref<384x192xbf16, #tpu.memory_space<vmem>>, vector<384x192xbf16>
    %cst_152 = arith.constant dense<0.000000e+00> : vector<1x192xf32>
    %256 = tpu.matmul %254, %255, %cst_152 {dimension_numbers = #tpu.dot_dimension_numbers<[1], [0], [0], [1], [0, 0, 1, 1], [], []>} : vector<1x384xbf16>, vector<384x192xbf16>, vector<1x192xf32> -> vector<1x192xf32>
    %c0_153 = arith.constant 0 : index
    %c0_154 = arith.constant 0 : index
    %257 = vector.load %arg11[%c0_153, %c0_154] : memref<1x192xf32, #tpu.memory_space<vmem>>, vector<1x192xf32>
    %258 = arith.addf %256, %257 : vector<1x192xf32>
    %cst_155 = arith.constant 0.000000e+00 : f32
    %259 = vector.broadcast %cst_155 : f32 to vector<1x192xf32>
    %260 = arith.maximumf %258, %259 : vector<1x192xf32>
    %261 = arith.truncf %260 : vector<1x192xf32> to vector<1x192xbf16>
    %c0_156 = arith.constant 0 : index
    %c0_157 = arith.constant 0 : index
    %262 = vector.load %arg12[%c0_156, %c0_157] : memref<192x10xbf16, #tpu.memory_space<vmem>>, vector<192x10xbf16>
    %cst_158 = arith.constant dense<0.000000e+00> : vector<1x10xf32>
    %263 = tpu.matmul %261, %262, %cst_158 {dimension_numbers = #tpu.dot_dimension_numbers<[1], [0], [0], [1], [0, 0, 1, 1], [], []>} : vector<1x192xbf16>, vector<192x10xbf16>, vector<1x10xf32> -> vector<1x10xf32>
    %c0_159 = arith.constant 0 : index
    %c0_160 = arith.constant 0 : index
    %264 = vector.load %arg13[%c0_159, %c0_160] : memref<1x10xf32, #tpu.memory_space<vmem>>, vector<1x10xf32>
    %265 = arith.addf %263, %264 : vector<1x10xf32>
    %c0_161 = arith.constant 0 : index
    %c0_162 = arith.constant 0 : index
    %c0_163 = arith.constant 0 : index
    %266 = vector.load %arg14[%c0_161, %c0_162, %c0_163] : memref<1x1x10xf32, #tpu.memory_space<vmem>>, vector<1x1x10xf32>
    %267 = vector.shape_cast %266 : vector<1x1x10xf32> to vector<1x10xf32>
    %268 = vector.shape_cast %265 : vector<1x10xf32> to vector<1x1x10xf32>
    tpu.vector_store %arg14[%c0_161, %c0_162, %c0_163], %268 {strides = array<i32>} : memref<1x1x10xf32, #tpu.memory_space<vmem>>, vector<1x1x10xf32>,
    return
  }
  func.func @transform_0(%arg0: i32) -> (i32, i32, i32) {
    %c0_i32 = arith.constant 0 : i32
    %c0_i32_0 = arith.constant 0 : i32
    %c0_i32_1 = arith.constant 0 : i32
    return %arg0, %c0_i32, %c0_i32_0 : i32, i32, i32
  }
  func.func @transform_1(%arg0: i32) -> (i32, i32, i32) {
    %c0_i32 = arith.constant 0 : i32
    %c0_i32_0 = arith.constant 0 : i32
    %c0_i32_1 = arith.constant 0 : i32
    %c0_i32_2 = arith.constant 0 : i32
    return %c0_i32, %c0_i32_0, %c0_i32_1 : i32, i32, i32
  }
  func.func @transform_2(%arg0: i32) -> (i32, i32) {
    %c0_i32 = arith.constant 0 : i32
    %c0_i32_0 = arith.constant 0 : i32
    %c0_i32_1 = arith.constant 0 : i32
    return %c0_i32, %c0_i32_0 : i32, i32
  }
  func.func @transform_3(%arg0: i32) -> (i32, i32, i32) {
    %c0_i32 = arith.constant 0 : i32
    %c0_i32_0 = arith.constant 0 : i32
    %c0_i32_1 = arith.constant 0 : i32
    %c0_i32_2 = arith.constant 0 : i32
    return %c0_i32, %c0_i32_0, %c0_i32_1 : i32, i32, i32
  }
  func.func @transform_4(%arg0: i32) -> (i32, i32) {
    %c0_i32 = arith.constant 0 : i32
    %c0_i32_0 = arith.constant 0 : i32
    %c0_i32_1 = arith.constant 0 : i32
    return %c0_i32, %c0_i32_0 : i32, i32
  }
  func.func @transform_5(%arg0: i32) -> (i32, i32) {
    %c0_i32 = arith.constant 0 : i32
    %c0_i32_0 = arith.constant 0 : i32
    %c0_i32_1 = arith.constant 0 : i32
    return %c0_i32, %c0_i32_0 : i32, i32
  }
  func.func @transform_6(%arg0: i32) -> (i32, i32) {
    %c0_i32 = arith.constant 0 : i32
    %c0_i32_0 = arith.constant 0 : i32
    %c0_i32_1 = arith.constant 0 : i32
    return %c0_i32, %c0_i32_0 : i32, i32
  }
  func.func @transform_7(%arg0: i32) -> (i32, i32) {
    %c0_i32 = arith.constant 0 : i32
    %c0_i32_0 = arith.constant 0 : i32
    %c0_i32_1 = arith.constant 0 : i32
    return %c0_i32, %c0_i32_0 : i32, i32
  }
  func.func @transform_8(%arg0: i32) -> (i32, i32) {
    %c0_i32 = arith.constant 0 : i32
    %c0_i32_0 = arith.constant 0 : i32
    %c0_i32_1 = arith.constant 0 : i32
    return %c0_i32, %c0_i32_0 : i32, i32
  }
  func.func @transform_9(%arg0: i32) -> (i32, i32) {
    %c0_i32 = arith.constant 0 : i32
    %c0_i32_0 = arith.constant 0 : i32
    %c0_i32_1 = arith.constant 0 : i32
    return %c0_i32, %c0_i32_0 : i32, i32
  }
  func.func @transform_10(%arg0: i32) -> (i32, i32) {
    %c0_i32 = arith.constant 0 : i32
    %c0_i32_0 = arith.constant 0 : i32
    %c0_i32_1 = arith.constant 0 : i32
    return %c0_i32, %c0_i32_0 : i32, i32
  }
  func.func @transform_11(%arg0: i32) -> (i32, i32) {
    %c0_i32 = arith.constant 0 : i32
    %c0_i32_0 = arith.constant 0 : i32
    %c0_i32_1 = arith.constant 0 : i32
    return %c0_i32, %c0_i32_0 : i32, i32
  }
  func.func @transform_12(%arg0: i32) -> (i32, i32) {
    %c0_i32 = arith.constant 0 : i32
    %c0_i32_0 = arith.constant 0 : i32
    %c0_i32_1 = arith.constant 0 : i32
    return %c0_i32, %c0_i32_0 : i32, i32
  }
  func.func @transform_13(%arg0: i32) -> (i32, i32, i32) {
    %c0_i32 = arith.constant 0 : i32
    %c0_i32_0 = arith.constant 0 : i32
    %c0_i32_1 = arith.constant 0 : i32
    return %arg0, %c0_i32, %c0_i32_0 : i32, i32, i32
  }
}

</mosaic_0001>

<bundles_post_ra>
// kernel: cifar10_cnn_forward.1
= control target key start
LH: loop header
LB: loop body
LE: loop exit
PB: predicated region body
PF: predicated region fallthrough
CT: control target
= control target key end

     0   :  { %s11871_s0 = inlined_call_operand.vmem [shape: f32[2,3,1024], index: 0, kind: input, shape index: {}]   ;;  %s11872_s1 = inlined_call_operand.vmem [shape: bf16[9,6,3], index: 1, kind: input, shape index: {}]   ;;  %s11873_s2 = inlined_call_operand.vmem [shape: f32[6,1], index: 2, kind: input, shape index: {}]   ;;  %s11874_s3 = inlined_call_operand.vmem [shape: bf16[9,12,6], index: 3, kind: input, shape index: {}]   ;;  %s11875_s4 = inlined_call_operand.vmem [shape: f32[12,1], index: 4, kind: input, shape index: {}]   ;;  %s11876_s5 = inlined_call_operand.vmem [shape: bf16[1024,256], index: 5, kind: input, shape index: {}]   ;;  %s11877_s6 = inlined_call_operand.vmem [shape: bf16[256,64], index: 6, kind: input, shape index: {}]   ;;  %s11878_s7 = inlined_call_operand.vmem [shape: bf16[768,384], index: 7, kind: input, shape index: {}]   ;;  %s11879_s8 = inlined_call_operand.vmem [shape: f32[1,384], index: 8, kind: input, shape index: {}]   ;;  %s11880_s9 = inlined_call_operand.vmem [shape: bf16[384,192], index: 9, kind: input, shape index: {}]   ;;  %s11881_s10 = inlined_call_operand.vmem [shape: f32[1,192], index: 10, kind: input, shape index: {}]   ;;  %s11882_s11 = inlined_call_operand.vmem [shape: bf16[192,10], index: 11, kind: input, shape index: {}]   ;;  %s11883_s12 = inlined_call_operand.vmem [shape: f32[1,10], index: 12, kind: input, shape index: {}]   ;;  %s11884_s13 = inlined_call_operand.hbm [shape: f32[2,1,10], index: 13, kind: output, shape index: {}]  }
   0x1   :  { %11891 = sst [smem:[#allocation8_spill]] %s11871_s0 }
   0x2   :  { %11892 = sst [smem:[#allocation9_spill]] %s11872_s1 }
   0x3   :  { %11893 = sst [smem:[#allocation10_spill]] %s11873_s2 }
   0x4   :  { %18 = vsyncpa [#allocation5], 0 }
   0x5   :  { %20 = vsyncpa [#allocation5 + $0x1], 0  ;;  %s8673_s25 = smov 0   ;;  %s8675_s26 = smov 0  }
   0x6   :  { %s8677_s27 = smov 0   ;;  %s8679_s28 = smov 0  }
   0x7 LB: > { %s8694_s29 = sadd.s32 4294967295, %s8584_s28   ;;  %s6444_s30 = sadd.s32 4294967294, %s8584_s28   ;;  %s8584_s28 = sphi %s8679_s28, %s11911_s28   ;;  %s8580_s27 = sphi %s8677_s27, %s11910_s27   ;;  %s8576_s26 = sphi %s8675_s26, %s11909_s26   ;;  %s8572_s25 = sphi %s8673_s25, %s11908_s25  }
   0x8   : > { %s8698_s14 = sadd.s32 1, %s8584_s28   ;;  %s311_s15 = sadd.s32 1, %s8580_s27 }
   0x9   : > { %s308_s16 = ssub.s32 %s8584_s28, %s8698_s14  ;;  %p321_p0 = scmp.ne.s32.totalorder %s8580_s27, %s8576_s26 }
   0xa   : > { %p309_p1 = scmp.eq.s32.totalorder %s308_s16, 0  ;;  %p322_p2 = scmp.eq.s32.totalorder %s8694_s29, 1 }
   0xb   : > { %p327_p3 = scmp.ne.s32.totalorder %s8576_s26, %s8572_s25  ;;  %p328_p4 = scmp.eq.s32.totalorder %s6444_s30, 1 }
   0xc   : > { %s8709_s17 = scalar_select %p309_p1, %s8580_s27, %s311_s15  }
   0xd   : > { %p8711_p5 = por %p322_p2, %p321_p0  ;;  %p8715_p6 = por %p328_p4, %p327_p3 }
   0xe   : > { %11894 = sst [smem:[#allocation7_spill]] %s8709_s17  ;;  %p6447_p7 = scmp.ge.s32.totalorder %s8584_s28, 1 }
   0xf   : > { %p390_p8 = scmp.lt.s32.totalorder %s8584_s28, 3 }
  0x11   : > { %p391_p9 = pnand %p6447_p7, %p390_p8 }
  0x12   : > { %p433_p10 = scmp.lt.s32.totalorder (!%p391_p9), %s8694_s29, 1  ;;  %s11899_s0 = sld [smem:[#allocation8_spill]] (!%p391_p9) }
  0x13   : > { %394 = sbr.rel (%p391_p9) target bundleno = 2337 (0x921), region = 72  ;;  %s8586_s30 = smov (!%p391_p9), 33  }
  0x14   : > { %s8587_s15 = smov (!%p391_p9), 32   ;;  %s8588_s16 = smov (!%p391_p9), 31  }
  0x15   : > { %s11902_s1 = sld [smem:[#allocation9_spill]] (!%p391_p9)  ;;  %s11887_s23 = smov (!%p391_p9), 96  }
  0x16   : > { %s11903_s2 = sld [smem:[#allocation10_spill]] (!%p391_p9)  ;;  %s8597_s17 = smov (!%p391_p9), 17  }
  0x18   : > { %vm474_vm0 = vcmask 1041408   ;;  %vm475_vm1 = vsmask.f32 1280  ;;  %vm477_vm2 = vcmask 1043458   ;;  %vm478_vm4 = vsmask.f32 3328 }
  0x19   : > { %vm8723_vm3 = vmand %vm474_vm0, %vm475_vm1  ;;  %vm481_vm5 = vcmask 1045508   ;;  %vm482_vm6 = vsmask.f32 5376  ;;  %s434_s20 = scalar_select %p433_p10, %s8694_s29, 1  ;;  %vm485_vm9 = vcmask 1047558   ;;  %v489_v3 = vld [vmem:[#allocation2] sm:$0xff] }
  0x1a   : > { %vm479_vm7 = vmand %vm477_vm2, %vm478_vm4  ;;  %vm486_vm10 = vsmask.f32 7424  ;;  %v495_v1 = vld [vmem:[#allocation2 + $0x10] sm:$0xf]  ;;  %v492_v4 = vld [vmem:[#allocation2 + $0x8] sm:$0xff]  ;;  %vm516_vm15 = vcmask 1043456  }
  0x1b   : > { %vm480_vm8 = vmor %vm479_vm7, %vm8723_vm3  ;;  %s8051_s21 = sshll.u32 %s434_s20, 5  ;;  %s11885_s20 = smov 1   ;;  %vm746_vm1 = vcmask 1040384   ;;  %vm733_vm2 = vcmask 269312   ;;  %vm941_vm3 = vcmask 261120   ;;  %vm1137_vm4 = vcmask 252928  }
  0x1c   : > { %vm483_vm11 = vmand %vm481_vm5, %vm482_vm6  ;;  %v496_v2 = vsel %vm480_vm8, 0, %v495_v1  ;;  %s437_s24 = scalar_lea.vmem %s11899_s0, %s8051_s21  ;;  %s11889_s21 = smov 127   ;;  %vm1693_vm6 = vcmask 1039360  }
  0x1d   : > { %vm484_vm12 = vmor %vm483_vm11, %vm480_vm8  ;;  %497 = vst [vmem:[#allocation2 + $0x10] sm:$0xf] %v496_v2  ;;  %v439_v5 = vld [vmem:[%s437_s24] sm:$0x77]  ;;  %v440_v6 = vld [vmem:[%s437_s24 + $0x8] sm:$0x77] }
  0x1e   : > { %vm487_vm13 = vmand %vm485_vm9, %vm486_vm10  ;;  %447 = vst [vmem:[#allocation1] ss:$2 sm:$0xff] %v439_v5  ;;  %v441_v10 = vld [vmem:[%s437_s24 + $0x10] sm:$0x77]  ;;  %v442_v11 = vld [vmem:[%s437_s24 + $0x18] sm:$0x77] }
  0x1f   : > { %vm8734_vm14 = vmor %vm487_vm13, %vm484_vm12  ;;  %449 = vst [vmem:[#allocation1 + $0x10] ss:$2 sm:$0xff] %v440_v6  ;;  %vm1897_vm9 = vcmask 793600   ;;  %s11904_s0 = smov 96   ;;  %s11906_s24 = smov 127  }
  0x20   : > { %v490_v8 = vsel %vm8734_vm14, 0, %v489_v3  ;;  %v493_v9 = vsel %vm8734_vm14, 0, %v492_v4  ;;  %451 = vst [vmem:[#allocation1 + $0x20] ss:$2 sm:$0xff] %v441_v10 }
  0x21   : > { %491 = vst [vmem:[#allocation2] sm:$0xff] %v490_v8 }
  0x22   : > { %494 = vst [vmem:[#allocation2 + $0x8] sm:$0xff] %v493_v9 }
  0x23   : > { %453 = vst [vmem:[#allocation1 + $0x30] ss:$2 sm:$0xff] %v442_v11 }
  0x25   : > { %v454_v12 = vld.sshfl [vmem:[#allocation1] sm:$0xff pattern:$0x75316420]  ;;  %v455_v13 = vld.sshfl [vmem:[#allocation1 + $0x8] sm:$0xff pattern:$0x75316420] }
  0x26   : > { %v456_v14 = vld.sshfl [vmem:[#allocation1 + $0x10] sm:$0xff pattern:$0x75316420]  ;;  %v457_v15 = vld.sshfl [vmem:[#allocation1 + $0x18] sm:$0xff pattern:$0x75316420]  ;;  %v470_v16 = vpack.c.bf16 %v455_v13, %v454_v12 }
  0x27   : > { %v471_v17 = vpack.c.bf16 %v457_v15, %v456_v14  ;;  %v458_v22 = vld.sshfl [vmem:[#allocation1 + $0x20] sm:$0xff pattern:$0x75316420]  ;;  %v459_v24 = vld.sshfl [vmem:[#allocation1 + $0x28] sm:$0xff pattern:$0x75316420] }
  0x28   : > { %v502_v18 = vrot.slane %v470_v16, 2  ;;  %v472_v28 = vpack.c.bf16 %v459_v24, %v458_v22 }
  0x29   : > { %v503_v19 = vrot.slane %v471_v17, 4  ;;  %v504_v20 = vrot.slane %v471_v17, 6  ;;  %v527_v21 = vld [vmem:[#allocation2 + $0x2] sm:$0xff]  ;;  %v530_v36 = vld [vmem:[#allocation2 + $0xa] sm:$0xff] }
  0x2a   : > { %v511_v23 = vsel %vm474_vm0, %v470_v16, %v502_v18  ;;  %v460_v25 = vld.sshfl [vmem:[#allocation1 + $0x30] sm:$0xff pattern:$0x75316420]  ;;  %v461_v27 = vld.sshfl [vmem:[#allocation1 + $0x38] sm:$0xff pattern:$0x75316420] }
  0x2b   : > { %v515_v26 = vsel %vm481_vm5, %v503_v19, %v504_v20  ;;  %v473_v30 = vpack.c.bf16 %v461_v27, %v460_v25  ;;  %v505_v32 = vrot.slane %v472_v28, 2 }
  0x2c   : > { %v517_v29 = vsel %vm516_vm15, %v511_v23, %v515_v26 }
  0x2d   : > { %v8747_v31 = vsel %vm8734_vm14, %v517_v29, %v527_v21  ;;  %v506_v33 = vrot.slane %v473_v30, 4  ;;  %v507_v34 = vrot.slane %v473_v30, 6  ;;  %v520_v35 = vsel %vm474_vm0, %v472_v28, %v505_v32 }
  0x2e   : > { %529 = vst [vmem:[#allocation2 + $0x2] sm:$0xff] %v8747_v31  ;;  %v8590_v30 = vmov 65535  }
  0x2f   : > { %v523_v37 = vsel %vm481_vm5, %v506_v33, %v507_v34  ;;  %v747_v32 = vsel %vm746_vm1, 4294967295, %v8590_v30  ;;  %vm1341_vm5 = vcmask 7168  }
  0x30   : > { %v524_v38 = vsel %vm516_vm15, %v520_v35, %v523_v37 }
  0x31   : > { %v8755_v39 = vsel %vm8734_vm14, %v524_v38, %v530_v36  ;;  %v8789_v36 = vsel %vm474_vm0, %v747_v32, 0  ;;  %vm742_vm0 = vcmask 23552  }
  0x32   : > { %532 = vst [vmem:[#allocation2 + $0xa] sm:$0xff] %v8755_v39 }
  0x35   : > { %v686_v40 = vld [vmem:[#allocation2] sm:$0xff] }
  0x36   : > { %691 = vst [vmem:[#allocation1] ss:$4 sm:$0xff] %v686_v40 }
  0x39   : > { %v687_v41 = vld [vmem:[#allocation2 + $0x8] sm:$0xff]  ;;  %v688_v42 = vld [vmem:[#allocation2 + $0x10] sm:$0x3] }
  0x3a   : > { %694 = vst [vmem:[#allocation1 + $0x20] ss:$4 sm:$0xff] %v687_v41  ;;  %v895_v52 = vld [vmem:[#allocation2 + $0x10] sm:$0x3] }
  0x3b   : > { %v1091_v62 = vld [vmem:[#allocation2 + $0x10] sm:$0x3] }
  0x3c   : > { %v1295_v14 = vld [vmem:[#allocation2 + $0x10] sm:$0x3] }
  0x3d   : > { %v699_v43 = vld.sshfl [vmem:[#allocation1 + $0x10] sm:$0xff pattern:$0x73625140]  ;;  %v695_v44 = vld.sshfl [vmem:[#allocation1] sm:$0xff pattern:$0x73625140] }
  0x3e   : > { %719 = vrot.lane.b32.xlu1 %v699_v43, %s8586_s30  ;;  %715 = vrot.lane.b32.xlu0 %v695_v44, %s8586_s30  ;;  %v701_v45 = vld.sshfl [vmem:[#allocation1 + $0x18] sm:$0xff pattern:$0x73625140]  ;;  %v697_v46 = vld.sshfl [vmem:[#allocation1 + $0x8] sm:$0xff pattern:$0x73625140] }
  0x3f   : > { %712 = vst [vmem:[#allocation1] ss:$4 sm:$0xff] %v688_v42 }
  0x41   : > { %v707_v47 = vld.sshfl [vmem:[#allocation1 + $0x30] sm:$0xff pattern:$0x73625140]  ;;  %v709_v48 = vld.sshfl [vmem:[#allocation1 + $0x38] sm:$0xff pattern:$0x73625140] }
  0x42   : > { %v703_v49 = vld.sshfl [vmem:[#allocation1 + $0x20] sm:$0xff pattern:$0x73625140]  ;;  %v705_v50 = vld.sshfl [vmem:[#allocation1 + $0x28] sm:$0xff pattern:$0x73625140] }
  0x43   : > { %723 = vrot.lane.b32.xlu2 %v703_v49, %s8586_s30  ;;  %902 = vst [vmem:[#allocation1 + $0x20] ss:$4 sm:$0xff] %v687_v41 }
  0x46   : > { %721 = vrot.lane.b32.xlu1 %v701_v45, %s8586_s30  ;;  %717 = vrot.lane.b32.xlu0 %v697_v46, %s8586_s30  ;;  %v713_v51 = vld.sshfl [vmem:[#allocation1] sm:$0xff pattern:$0x73625140] }
  0x47   : > { %899 = vst [vmem:[#allocation1] ss:$4 sm:$0xff] %v686_v40 }
  0x4a   : > { %v911_v55 = vld.sshfl [vmem:[#allocation1 + $0x20] sm:$0xff pattern:$0x73625140]  ;;  %v915_v56 = vld.sshfl [vmem:[#allocation1 + $0x30] sm:$0xff pattern:$0x73625140] }
  0x4b   : > { %725 = vrot.lane.b32.xlu2 %v705_v50, %s8586_s30  ;;  %v917_v57 = vld.sshfl [vmem:[#allocation1 + $0x38] sm:$0xff pattern:$0x73625140]  ;;  %v913_v60 = vld.sshfl [vmem:[#allocation1 + $0x28] sm:$0xff pattern:$0x73625140] }
  0x4c   : > { %1098 = vst [vmem:[#allocation1 + $0x20] ss:$4 sm:$0xff] %v687_v41  ;;  %v689_v50 = vld [vmem:[%s11902_s1] sm:$0x7] }
  0x4e   : > { %727 = vrot.lane.b32.xlu0 %v707_v47, %s8586_s30  ;;  %729 = vrot.lane.b32.xlu1 %v709_v48, %s8586_s30  ;;  %v905_v53 = vld.sshfl [vmem:[#allocation1 + $0x8] sm:$0xff pattern:$0x73625140]  ;;  %v903_v54 = vld.sshfl [vmem:[#allocation1] sm:$0xff pattern:$0x73625140] }
  0x4f   : > { %v909_v58 = vld.sshfl [vmem:[#allocation1 + $0x18] sm:$0xff pattern:$0x73625140]  ;;  %v907_v59 = vld.sshfl [vmem:[#allocation1 + $0x10] sm:$0xff pattern:$0x73625140] }
  0x50   : > { %920 = vst [vmem:[#allocation1] ss:$4 sm:$0xff] %v895_v52 }
  0x53   : > { %731 = vrot.lane.b32.xlu2 %v713_v51, %s8586_s30  ;;  %v1107_v3 = vld.sshfl [vmem:[#allocation1 + $0x20] sm:$0xff pattern:$0x73625140]  ;;  %v1111_v4 = vld.sshfl [vmem:[#allocation1 + $0x30] sm:$0xff pattern:$0x73625140] }
  0x54   : > { %v1113_v5 = vld.sshfl [vmem:[#allocation1 + $0x38] sm:$0xff pattern:$0x73625140]  ;;  %v1109_v6 = vld.sshfl [vmem:[#allocation1 + $0x28] sm:$0xff pattern:$0x73625140] }
  0x55   : > { %1302 = vst [vmem:[#allocation1 + $0x20] ss:$4 sm:$0xff] %v687_v41  ;;  %s8600_s30 = smov 113  }
  0x56   : > { %925 = vrot.lane.b32.xlu1 %v905_v53, %s8587_s15  ;;  %923 = vrot.lane.b32.xlu0 %v903_v54, %s8587_s15 }
  0x57   : > { %v921_v61 = vld.sshfl [vmem:[#allocation1] sm:$0xff pattern:$0x73625140] }
  0x58   : > { %1095 = vst [vmem:[#allocation1] ss:$4 sm:$0xff] %v686_v40 }
  0x5b   : > { %927 = vrot.lane.b32.xlu2 %v907_v59, %s8587_s15 }
  0x5c   : > { %v1311_v10 = vld.sshfl [vmem:[#allocation1 + $0x20] sm:$0xff pattern:$0x73625140]  ;;  %v1315_v12 = vld.sshfl [vmem:[#allocation1 + $0x30] sm:$0xff pattern:$0x73625140] }
  0x5d   : > { %v1317_v13 = vld.sshfl [vmem:[#allocation1 + $0x38] sm:$0xff pattern:$0x73625140]  ;;  %v1313_v16 = vld.sshfl [vmem:[#allocation1 + $0x28] sm:$0xff pattern:$0x73625140] }
  0x5e   : > { %931 = vrot.lane.b32.xlu1 %v911_v55, %s8587_s15  ;;  %929 = vrot.lane.b32.xlu0 %v909_v58, %s8587_s15  ;;  %1505 = vst [vmem:[#allocation1 + $0x20] ss:$4 sm:$0xff] %v8755_v39 }
  0x5f   : > { %v1101_v63 = vld.sshfl [vmem:[#allocation1 + $0x8] sm:$0xff pattern:$0x73625140]  ;;  %v1099_v0 = vld.sshfl [vmem:[#allocation1] sm:$0xff pattern:$0x73625140] }
  0x60   : > { %v1105_v1 = vld.sshfl [vmem:[#allocation1 + $0x18] sm:$0xff pattern:$0x73625140]  ;;  %v1103_v2 = vld.sshfl [vmem:[#allocation1 + $0x10] sm:$0xff pattern:$0x73625140] }
  0x61   : > { %1116 = vst [vmem:[#allocation1] ss:$4 sm:$0xff] %v1091_v62 }
  0x63   : > { %933 = vrot.lane.b32.xlu2 %v913_v60, %s8587_s15 }
  0x65   : > { %v8768_v19 = vld.sshfl [vmem:[#allocation1 + $0x20] sm:$0xff pattern:$0x73625140]  ;;  %v8770_v20 = vld.sshfl [vmem:[#allocation1 + $0x28] sm:$0xff pattern:$0x73625140] }
  0x66   : > { %935 = vrot.lane.b32.xlu0 %v915_v56, %s8587_s15  ;;  %937 = vrot.lane.b32.xlu1 %v917_v57, %s8587_s15  ;;  %v8772_v21 = vld.sshfl [vmem:[#allocation1 + $0x30] sm:$0xff pattern:$0x73625140]  ;;  %v8774_v22 = vld.sshfl [vmem:[#allocation1 + $0x38] sm:$0xff pattern:$0x73625140] }
  0x67   : > { %1654 = vst [vmem:[#allocation1 + $0x20] ss:$4 sm:$0xff] %v8755_v39 }
  0x68   : > { %v1117_v7 = vld.sshfl [vmem:[#allocation1] sm:$0xff pattern:$0x73625140] }
  0x69   : > { %1299 = vst [vmem:[#allocation1] ss:$4 sm:$0xff] %v686_v40 }
  0x6b   : > { %939 = vrot.lane.b32.xlu2 %v921_v61, %s8587_s15  ;;  %s8592_s15 = smov 97  }
  0x6e   : > { %1121 = vrot.lane.b32.xlu1 %v1101_v63, %s8588_s16  ;;  %1119 = vrot.lane.b32.xlu0 %v1099_v0, %s8588_s16  ;;  %v1663_v53 = vld.sshfl [vmem:[#allocation1 + $0x20] sm:$0xff pattern:$0x73625140] }
  0x70   : > { %v1305_v8 = vld.sshfl [vmem:[#allocation1 + $0x8] sm:$0xff pattern:$0x73625140]  ;;  %v1303_v9 = vld.sshfl [vmem:[#allocation1] sm:$0xff pattern:$0x73625140] }
  0x71   : > { %v1309_v11 = vld.sshfl [vmem:[#allocation1 + $0x18] sm:$0xff pattern:$0x73625140]  ;;  %v1307_v15 = vld.sshfl [vmem:[#allocation1 + $0x10] sm:$0xff pattern:$0x73625140] }
  0x72   : > { %1320 = vst [vmem:[#allocation1] ss:$4 sm:$0xff] %v1295_v14 }
  0x73   : > { %1123 = vrot.lane.b32.xlu2 %v1103_v2, %s8588_s16 }
  0x76   : > { %1127 = vrot.lane.b32.xlu1 %v1107_v3, %s8588_s16  ;;  %1125 = vrot.lane.b32.xlu0 %v1105_v1, %s8588_s16 }
  0x79   : > { %v1321_v17 = vld.sshfl [vmem:[#allocation1] sm:$0xff pattern:$0x73625140] }
  0x7a   : > { %1502 = vst [vmem:[#allocation1] ss:$4 sm:$0xff] %v8747_v31 }
  0x7b   : > { %1129 = vrot.lane.b32.xlu2 %v1109_v6, %s8588_s16 }
  0x7e   : > { %1131 = vrot.lane.b32.xlu0 %v1111_v4, %s8588_s16  ;;  %1133 = vrot.lane.b32.xlu1 %v1113_v5, %s8588_s16  ;;  %v1647_v5 = vld [vmem:[#allocation2 + $0x12] sm:$0x3] }
  0x81   : > { %v8778_v23 = vld.sshfl [vmem:[#allocation1] sm:$0xff pattern:$0x73625140]  ;;  %v8780_v24 = vld.sshfl [vmem:[#allocation1 + $0x8] sm:$0xff pattern:$0x73625140] }
  0x82   : > { %v8782_v25 = vld.sshfl [vmem:[#allocation1 + $0x10] sm:$0xff pattern:$0x73625140]  ;;  %v8784_v26 = vld.sshfl [vmem:[#allocation1 + $0x18] sm:$0xff pattern:$0x73625140] }
  0x83   : > { %1135 = vrot.lane.b32.xlu2 %v1117_v7, %s8588_s16  ;;  %1651 = vst [vmem:[#allocation1] ss:$4 sm:$0xff] %v8747_v31 }
  0x86   : > { %1325 = vrot.lane.b32.xlu1 %v1305_v8, %s11885_s20  ;;  %1323 = vrot.lane.b32.xlu0 %v1303_v9, %s11885_s20  ;;  %v1667_v9 = vld.sshfl [vmem:[#allocation1 + $0x30] sm:$0xff pattern:$0x73625140] }
  0x8a   : > { %v1657_v34 = vld.sshfl [vmem:[#allocation1 + $0x8] sm:$0xff pattern:$0x73625140]  ;;  %v1655_v35 = vld.sshfl [vmem:[#allocation1] sm:$0xff pattern:$0x73625140] }
  0x8b   : > { %1327 = vrot.lane.b32.xlu2 %v1307_v15, %s11885_s20  ;;  %v1661_v54 = vld.sshfl [vmem:[#allocation1 + $0x18] sm:$0xff pattern:$0x73625140]  ;;  %v1659_v6 = vld.sshfl [vmem:[#allocation1 + $0x10] sm:$0xff pattern:$0x73625140] }
  0x8c   : > { %1672 = vst [vmem:[#allocation1] ss:$4 sm:$0xff] %v1647_v5 }
  0x8e   : > { %1331 = vrot.lane.b32.xlu1 %v1311_v10, %s11885_s20  ;;  %1329 = vrot.lane.b32.xlu0 %v1309_v11, %s11885_s20 }
  0x93   : > { %1333 = vrot.lane.b32.xlu2 %v1313_v16, %s11885_s20 }
  0x96   : > { %1335 = vrot.lane.b32.xlu0 %v1315_v12, %s11885_s20  ;;  %1337 = vrot.lane.b32.xlu1 %v1317_v13, %s11885_s20  ;;  %v1669_v13 = vld.sshfl [vmem:[#allocation1 + $0x38] sm:$0xff pattern:$0x73625140] }
  0x9b   : > { %1339 = vrot.lane.b32.xlu2 %v1321_v17, %s11885_s20  ;;  %s8602_s20 = smov 111  }
  0x9d   : > { %v724_v18 = vpop.permute.xlu2 %723 }
  0x9e   : > { %1677 = vrot.lane.b32.xlu1 %v1657_v34, %s11889_s21  ;;  %1675 = vrot.lane.b32.xlu0 %v1655_v35, %s11889_s21 }
  0xa3   : > { %1679 = vrot.lane.b32.xlu2 %v1659_v6, %s11889_s21 }
  0xa5   : > { %v726_v29 = vpop.permute.xlu2 %725 }
  0xa6   : > { %v738_v33 = vsel %vm733_vm2, %v724_v18, %v726_v29  ;;  %1683 = vrot.lane.b32.xlu1 %v1663_v53, %s11889_s21  ;;  %1681 = vrot.lane.b32.xlu0 %v1661_v54, %s11889_s21 }
  0xa7   : > { %v762_v40 = vand.u32 %v8789_v36, %v738_v33 }
  0xad   : > { %v732_v45 = vpop.permute.xlu2 %731 }
  0xae   : > { %1687 = vrot.lane.b32.xlu0 %v1667_v9, %s11889_s21  ;;  %1689 = vrot.lane.b32.xlu1 %v1669_v13, %s11889_s21 }
  0xb0   : > { %v720_v27 = vpop.permute.xlu1 %719  ;;  %v716_v28 = vpop.permute.xlu0 %715 }
  0xb5   : > { %v928_v58 = vpop.permute.xlu2 %927 }
  0xb8   : > { %v722_v37 = vpop.permute.xlu1 %721  ;;  %v718_v38 = vpop.permute.xlu0 %717 }
  0xb9   : > { %v734_v41 = vsel %vm733_vm2, %v716_v28, %v718_v38  ;;  %v735_v42 = vsel %vm733_vm2, %v718_v38, %v720_v27  ;;  %v736_v43 = vsel %vm733_vm2, %v720_v27, %v722_v37  ;;  %v737_v44 = vsel %vm733_vm2, %v722_v37, %v724_v18  ;;  %v1673_v18 = vld.sshfl [vmem:[#allocation1] sm:$0xff pattern:$0x73625140] }
  0xba   : > { %v750_v46 = vand.u32 %v8789_v36, %v734_v41  ;;  %v753_v47 = vand.u32 %v8789_v36, %v735_v42  ;;  %v756_v48 = vand.u32 %v8789_v36, %v736_v43  ;;  %v759_v49 = vand.u32 %v8789_v36, %v737_v44  ;;  %1855 = vst [vmem:[#allocation1] ss:$4 sm:$0xff] %v8747_v31  ;;  %v6474_v38 = vld [vmem:[%s11902_s1 + $0x4] sm:$0x7] }
  0xbb   : > { %v1665_v42 = vld.sshfl [vmem:[#allocation1 + $0x28] sm:$0xff pattern:$0x73625140] }
  0xbc   : > { %780 = vmatpush.bf16.msra.mxu0 %v750_v46  ;;  %793 = vmatpush.bf16.msra.mxu1 %v753_v47  ;;  %1858 = vst [vmem:[#allocation1 + $0x20] ss:$4 sm:$0xff] %v8755_v39 }
  0xbd   : > { %806 = vmatpush.bf16.msra.mxu2 %v756_v48  ;;  %819 = vmatpush.bf16.msra.mxu3 %v759_v49  ;;  %v934_v4 = vpop.permute.xlu2 %933 }
  0xbe   : > { %1685 = vrot.lane.b32.xlu2 %v1665_v42, %s11889_s21 }
  0xbf   : > { %6466 = vmatmul.msk.bf16.vlgmr.msra.gmra.mxu0 %vm742_vm0, %v689_v50  ;;  %6467 = vmatmul.msk.bf16.vlgmr.msra.gmra.mxu1 %vm742_vm0, %v689_v50 }
  0xc0   : > { %832 = vmatpush.bf16.msrb.mxu0 %v762_v40  ;;  %6468 = vmatmul.msk.bf16.vlgmr.msra.gmra.mxu2 %vm742_vm0, %v689_v50  ;;  %v728_v51 = vpop.permute.xlu0 %727  ;;  %v730_v52 = vpop.permute.xlu1 %729 }
  0xc1   : > { %6469 = vmatmul.msk.bf16.vlgmr.msra.gmra.mxu3 %vm742_vm0, %v689_v50  ;;  %v739_v55 = vsel %vm733_vm2, %v726_v29, %v728_v51  ;;  %v740_v56 = vsel %vm733_vm2, %v728_v51, %v730_v52  ;;  %v741_v57 = vsel %vm733_vm2, %v730_v52, %v732_v45  ;;  %v1861_v40 = vld.sshfl [vmem:[#allocation1 + $0x8] sm:$0xff pattern:$0x73625140]  ;;  %v1859_v41 = vld.sshfl [vmem:[#allocation1] sm:$0xff pattern:$0x73625140] }
  0xc2   : > { %v765_v59 = vand.u32 %v8789_v36, %v739_v55  ;;  %v768_v60 = vand.u32 %v8789_v36, %v740_v56  ;;  %v771_v61 = vand.u32 %v8789_v36, %v741_v57  ;;  %1881 = vrot.lane.b32.xlu1 %v1861_v40, %s8592_s15  ;;  %1879 = vrot.lane.b32.xlu0 %v1859_v41, %s8592_s15 }
  0xc3   : > { %v1867_v51 = vld.sshfl [vmem:[#allocation1 + $0x20] sm:$0xff pattern:$0x73625140]  ;;  %v1873_v5 = vld.sshfl [vmem:[#allocation1 + $0x38] sm:$0xff pattern:$0x73625140] }
  0xc4   : > { %845 = vmatpush.bf16.msrb.mxu1 %v765_v59  ;;  %858 = vmatpush.bf16.msrb.mxu2 %v768_v60  ;;  %v1851_v59 = vld [vmem:[#allocation2 + $0x12] sm:$0x3] }
  0xc5   : > { %871 = vmatpush.bf16.msrb.mxu3 %v771_v61  ;;  %v940_v17 = vpop.permute.xlu2 %939 }
  0xc6   : > { %1691 = vrot.lane.b32.xlu2 %v1673_v18, %s11889_s21 }
  0xc8   : > { %v926_v62 = vpop.permute.xlu1 %925  ;;  %v924_v63 = vpop.permute.xlu0 %923 }
  0xc9   : > { %v942_v0 = vsel %vm941_vm3, %v924_v63, %v926_v62  ;;  %v943_v1 = vsel %vm941_vm3, %v926_v62, %v928_v58  ;;  %v1863_v62 = vld.sshfl [vmem:[#allocation1 + $0x10] sm:$0xff pattern:$0x73625140] }
  0xca   : > { %v954_v2 = vand.u32 %v942_v0, %v8789_v36  ;;  %v957_v3 = vand.u32 %v943_v1, %v8789_v36  ;;  %1887 = vrot.lane.b32.xlu1 %v1867_v51, %s8592_s15  ;;  %v1871_v1 = vld.sshfl [vmem:[#allocation1 + $0x30] sm:$0xff pattern:$0x73625140] }
  0xcc   : > { %984 = vmatpush.bf16.msra.mxu0 %v954_v2  ;;  %997 = vmatpush.bf16.msra.mxu1 %v957_v3 }
  0xcd   : > { %v1124_v37 = vpop.permute.xlu2 %1123 }
  0xce   : > { %1883 = vrot.lane.b32.xlu2 %v1863_v62, %s8592_s15 }
  0xcf   : > { %6470 = vmatmul.msk.bf16.vlgmr.msrb.gmra.mxu0 %vm742_vm0, %v689_v50  ;;  %6471 = vmatmul.msk.bf16.vlgmr.msrb.gmra.mxu1 %vm742_vm0, %v689_v50 }
  0xd0   : > { %6472 = vmatmul.msk.bf16.vlgmr.msrb.gmra.mxu2 %vm742_vm0, %v689_v50  ;;  %v932_v7 = vpop.permute.xlu1 %931  ;;  %v930_v8 = vpop.permute.xlu0 %929 }
  0xd1   : > { %6473 = vmatmul.msk.bf16.vlgmr.msrb.gmra.mxu3 %vm742_vm0, %v689_v50  ;;  %v944_v10 = vsel %vm941_vm3, %v928_v58, %v930_v8  ;;  %v945_v11 = vsel %vm941_vm3, %v930_v8, %v932_v7  ;;  %v946_v12 = vsel %vm941_vm3, %v932_v7, %v934_v4  ;;  %v1865_v50 = vld.sshfl [vmem:[#allocation1 + $0x18] sm:$0xff pattern:$0x73625140] }
  0xd2   : > { %v960_v14 = vand.u32 %v944_v10, %v8789_v36  ;;  %v963_v15 = vand.u32 %v945_v11, %v8789_v36  ;;  %v966_v16 = vand.u32 %v946_v12, %v8789_v36  ;;  %1885 = vrot.lane.b32.xlu0 %v1865_v50, %s8592_s15  ;;  %1876 = vst [vmem:[#allocation1] ss:$4 sm:$0xff] %v1851_v59 }
  0xd3   : > { %1893 = vrot.lane.b32.xlu1 %v1873_v5, %s8592_s15  ;;  %v1519_v59 = vand.u32 %v8780_v24, %v8789_v36 }
  0xd4   : > { %1010 = vmatpush.bf16.msra.mxu2 %v960_v14  ;;  %1023 = vmatpush.bf16.msra.mxu3 %v963_v15  ;;  %v6483_v15 = vld [vmem:[%s11902_s1 + $0x8] sm:$0x7] }
  0xd5   : > { %1036 = vmatpush.bf16.msrb.mxu0 %v966_v16  ;;  %v1130_v49 = vpop.permute.xlu2 %1129 }
  0xd8   : > { %v936_v27 = vpop.permute.xlu0 %935  ;;  %v938_v28 = vpop.permute.xlu1 %937 }
  0xd9   : > { %v947_v29 = vsel %vm941_vm3, %v934_v4, %v936_v27  ;;  %v948_v30 = vsel %vm941_vm3, %v936_v27, %v938_v28  ;;  %v949_v32 = vsel %vm941_vm3, %v938_v28, %v940_v17  ;;  %v1877_v10 = vld.sshfl [vmem:[#allocation1] sm:$0xff pattern:$0x73625140]  ;;  %vm2101_vm3 = vcmask 785408  }
  0xda   : > { %v969_v33 = vand.u32 %v947_v29, %v8789_v36  ;;  %v972_v34 = vand.u32 %v948_v30, %v8789_v36  ;;  %v975_v35 = vand.u32 %v949_v32, %v8789_v36  ;;  %1891 = vrot.lane.b32.xlu0 %v1871_v1, %s8592_s15  ;;  %2059 = vst [vmem:[#allocation1] ss:$4 sm:$0xff] %v8747_v31  ;;  %v1869_v29 = vld.sshfl [vmem:[#allocation1 + $0x28] sm:$0xff pattern:$0x73625140] }
  0xdb   : > { %2062 = vst [vmem:[#allocation1 + $0x20] ss:$4 sm:$0xff] %v8755_v39  ;;  %1889 = vrot.lane.b32.xlu2 %v1869_v29, %s8592_s15 }
  0xdc   : > { %1049 = vmatpush.bf16.msrb.mxu1 %v969_v33  ;;  %1062 = vmatpush.bf16.msrb.mxu2 %v972_v34 }
  0xdd   : > { %1075 = vmatpush.bf16.msrb.mxu3 %v975_v35  ;;  %v1136_v61 = vpop.permute.xlu2 %1135 }
  0xdf   : > { %6475 = vmatmul.msk.bf16.vlgmr.msra.gmra.mxu0 %vm742_vm0, %v6474_v38  ;;  %6476 = vmatmul.msk.bf16.vlgmr.msra.gmra.mxu1 %vm742_vm0, %v6474_v38 }
  0xe0   : > { %6477 = vmatmul.msk.bf16.vlgmr.msra.gmra.mxu2 %vm742_vm0, %v6474_v38  ;;  %v1122_v43 = vpop.permute.xlu1 %1121  ;;  %v1120_v44 = vpop.permute.xlu0 %1119 }
  0xe1   : > { %6478 = vmatmul.msk.bf16.vlgmr.msra.gmra.mxu3 %vm742_vm0, %v6474_v38  ;;  %v1138_v45 = vsel %vm1137_vm4, %v1120_v44, %v1122_v43  ;;  %v1139_v46 = vsel %vm1137_vm4, %v1122_v43, %v1124_v37  ;;  %v2065_v18 = vld.sshfl [vmem:[#allocation1 + $0x8] sm:$0xff pattern:$0x73625140]  ;;  %v2063_v28 = vld.sshfl [vmem:[#allocation1] sm:$0xff pattern:$0x73625140] }
  0xe2   : > { %v1150_v47 = vand.u32 %v1138_v45, %v8789_v36  ;;  %v1153_v48 = vand.u32 %v1139_v46, %v8789_v36  ;;  %2085 = vrot.lane.b32.xlu1 %v2065_v18, %s11887_s23  ;;  %2083 = vrot.lane.b32.xlu0 %v2063_v28, %s11887_s23  ;;  %v2069_v40 = vld.sshfl [vmem:[#allocation1 + $0x18] sm:$0xff pattern:$0x73625140]  ;;  %v2073_v62 = vld.sshfl [vmem:[#allocation1 + $0x28] sm:$0xff pattern:$0x73625140] }
  0xe3   : > { %1895 = vrot.lane.b32.xlu2 %v1877_v10, %s8592_s15  ;;  %s8594_s15 = smov 95  }
  0xe4   : > { %1180 = vmatpush.bf16.msra.mxu0 %v1150_v47  ;;  %1193 = vmatpush.bf16.msra.mxu1 %v1153_v48  ;;  %v2055_v48 = vld [vmem:[#allocation2 + $0x12] sm:$0x3] }
  0xe5   : > { %v1328_v9 = vpop.permute.xlu2 %1327 }
  0xe8   : > { %v1128_v52 = vpop.permute.xlu1 %1127  ;;  %v1126_v53 = vpop.permute.xlu0 %1125 }
  0xe9   : > { %v1140_v54 = vsel %vm1137_vm4, %v1124_v37, %v1126_v53  ;;  %v1141_v55 = vsel %vm1137_vm4, %v1126_v53, %v1128_v52  ;;  %v1142_v58 = vsel %vm1137_vm4, %v1128_v52, %v1130_v49  ;;  %v2067_v53 = vld.sshfl [vmem:[#allocation1 + $0x10] sm:$0xff pattern:$0x73625140] }
  0xea   : > { %v1156_v56 = vand.u32 %v1140_v54, %v8789_v36  ;;  %v1159_v57 = vand.u32 %v1141_v55, %v8789_v36  ;;  %v1162_v60 = vand.u32 %v1142_v58, %v8789_v36  ;;  %2089 = vrot.lane.b32.xlu0 %v2069_v40, %s11887_s23  ;;  %2080 = vst [vmem:[#allocation1] ss:$4 sm:$0xff] %v2055_v48  ;;  %v2075_v54 = vld.sshfl [vmem:[#allocation1 + $0x30] sm:$0xff pattern:$0x73625140] }
  0xeb   : > { %v2077_v55 = vld.sshfl [vmem:[#allocation1 + $0x38] sm:$0xff pattern:$0x73625140]  ;;  %2087 = vrot.lane.b32.xlu2 %v2067_v53, %s11887_s23  ;;  %v1517_v58 = vand.u32 %v8778_v23, %v8789_v36 }
  0xec   : > { %1206 = vmatpush.bf16.msra.mxu2 %v1156_v56  ;;  %1219 = vmatpush.bf16.msra.mxu3 %v1159_v57  ;;  %v6492_v57 = vld [vmem:[%s11902_s1 + $0xc] sm:$0x7] }
  0xed   : > { %v1334_v27 = vpop.permute.xlu2 %1333 }
  0xef   : > { %6479 = vmatmul.msk.bf16.vlgmr.msrb.gmra.mxu0 %vm742_vm0, %v6474_v38  ;;  %6480 = vmatmul.msk.bf16.vlgmr.msrb.gmra.mxu1 %vm742_vm0, %v6474_v38 }
  0xf0   : > { %6481 = vmatmul.msk.bf16.vlgmr.msrb.gmra.mxu2 %vm742_vm0, %v6474_v38  ;;  %v1132_v63 = vpop.permute.xlu0 %1131  ;;  %v1134_v0 = vpop.permute.xlu1 %1133  ;;  %1232 = vmatpush.bf16.msrb.mxu0 %v1162_v60  ;;  %v1521_v60 = vand.u32 %v8782_v25, %v8789_v36 }
  0xf1   : > { %6482 = vmatmul.msk.bf16.vlgmr.msrb.gmra.mxu3 %vm742_vm0, %v6474_v38  ;;  %v1143_v2 = vsel %vm1137_vm4, %v1130_v49, %v1132_v63  ;;  %v1144_v3 = vsel %vm1137_vm4, %v1132_v63, %v1134_v0  ;;  %v1145_v4 = vsel %vm1137_vm4, %v1134_v0, %v1136_v61  ;;  %v2071_v38 = vld.sshfl [vmem:[#allocation1 + $0x20] sm:$0xff pattern:$0x73625140]  ;;  %v1523_v61 = vand.u32 %v8784_v26, %v8789_v36 }
  0xf2   : > { %v1165_v6 = vand.u32 %v1143_v2, %v8789_v36  ;;  %v1168_v7 = vand.u32 %v1144_v3, %v8789_v36  ;;  %v1171_v8 = vand.u32 %v1145_v4, %v8789_v36  ;;  %2091 = vrot.lane.b32.xlu1 %v2071_v38, %s11887_s23  ;;  %2095 = vrot.lane.b32.xlu0 %v2075_v54, %s11887_s23  ;;  %v2081_v56 = vld.sshfl [vmem:[#allocation1] sm:$0xff pattern:$0x73625140] }
  0xf3   : > { %2255 = vst [vmem:[#allocation1] ss:$4 sm:$0xff] %v8747_v31  ;;  %2093 = vrot.lane.b32.xlu2 %v2073_v62, %s11887_s23  ;;  %v1527_v26 = vand.u32 %v8770_v20, %v8789_v36  ;;  %v1529_v63 = vand.u32 %v8772_v21, %v8789_v36  ;;  %v1531_v0 = vand.u32 %v8774_v22, %v8789_v36 }
  0xf4   : > { %1245 = vmatpush.bf16.msrb.mxu1 %v1165_v6  ;;  %1258 = vmatpush.bf16.msrb.mxu2 %v1168_v7  ;;  %2258 = vst [vmem:[#allocation1 + $0x20] ss:$4 sm:$0xff] %v8755_v39  ;;  %v1525_v39 = vand.u32 %v8768_v19, %v8789_v36  ;;  %v2251_v19 = vld [vmem:[#allocation2 + $0x12] sm:$0x3] }
  0xf5   : > { %1271 = vmatpush.bf16.msrb.mxu3 %v1171_v8  ;;  %v1340_v41 = vpop.permute.xlu2 %1339 }
  0xf8   : > { %v1326_v11 = vpop.permute.xlu1 %1325  ;;  %v1324_v12 = vpop.permute.xlu0 %1323 }
  0xf9   : > { %v1342_v13 = vsel %vm1341_vm5, %v1324_v12, %v1326_v11  ;;  %v1343_v14 = vsel %vm1341_vm5, %v1326_v11, %v1328_v9  ;;  %v6501_v12 = vld [vmem:[%s11902_s1 + $0x10] sm:$0x7] }
  0xfa   : > { %v1354_v16 = vand.u32 %v1342_v13, %v8789_v36  ;;  %v1357_v17 = vand.u32 %v1343_v14, %v8789_v36  ;;  %2097 = vrot.lane.b32.xlu1 %v2077_v55, %s11887_s23  ;;  %v2261_v31 = vld.sshfl [vmem:[#allocation1 + $0x8] sm:$0xff pattern:$0x73625140]  ;;  %v2259_v23 = vld.sshfl [vmem:[#allocation1] sm:$0xff pattern:$0x73625140] }
  0xfb   : > { %2279 = vrot.lane.b32.xlu0 %v2259_v23, %s8594_s15  ;;  %v2267_v24 = vld.sshfl [vmem:[#allocation1 + $0x20] sm:$0xff pattern:$0x73625140]  ;;  %v2265_v25 = vld.sshfl [vmem:[#allocation1 + $0x18] sm:$0xff pattern:$0x73625140]  ;;  %2099 = vrot.lane.b32.xlu2 %v2081_v56, %s11887_s23 }
  0xfc   : > { %v2273_v20 = vld.sshfl [vmem:[#allocation1 + $0x38] sm:$0xff pattern:$0x73625140]  ;;  %v2271_v21 = vld.sshfl [vmem:[#allocation1 + $0x30] sm:$0xff pattern:$0x73625140] }
  0xfd   : > { %v1680_v22 = vpop.permute.xlu2 %1679  ;;  %v2263_v3 = vld.sshfl [vmem:[#allocation1 + $0x10] sm:$0xff pattern:$0x73625140]  ;;  %v2269_v18 = vld.sshfl [vmem:[#allocation1 + $0x28] sm:$0xff pattern:$0x73625140] }
  0xfe   : > { %2276 = vst [vmem:[#allocation1] ss:$4 sm:$0xff] %v2251_v19  ;;  %v8595_v23 = vmov 0.0   ;;  %s11905_s23 = smov 1  }
  0xff   : > { %6484 = vmatmul.msk.bf16.vlgmr.msra.gmra.mxu0 %vm742_vm0, %v6483_v15  ;;  %6485 = vmatmul.msk.bf16.vlgmr.msra.gmra.mxu1 %vm742_vm0, %v6483_v15 }
 0x100   : > { %6486 = vmatmul.msk.bf16.vlgmr.msra.gmra.mxu2 %vm742_vm0, %v6483_v15  ;;  %v1332_v30 = vpop.permute.xlu1 %1331  ;;  %v1330_v32 = vpop.permute.xlu0 %1329  ;;  %1384 = vmatpush.bf16.msra.mxu0 %v1354_v16 }
 0x101   : > { %6487 = vmatmul.msk.bf16.vlgmr.msra.gmra.mxu3 %vm742_vm0, %v6483_v15  ;;  %1397 = vmatpush.bf16.msra.mxu1 %v1357_v17  ;;  %v1344_v33 = vsel %vm1341_vm5, %v1328_v9, %v1330_v32  ;;  %v1345_v34 = vsel %vm1341_vm5, %v1330_v32, %v1332_v30  ;;  %v1346_v44 = vsel %vm1341_vm5, %v1332_v30, %v1334_v27  ;;  %v533_v32 = vlaneseq }
 0x102   : > { %v1360_v35 = vand.u32 %v1344_v33, %v8789_v36  ;;  %v1363_v37 = vand.u32 %v1345_v34, %v8789_v36  ;;  %v1366_v49 = vand.u32 %v1346_v44, %v8789_v36  ;;  %2281 = vrot.lane.b32.xlu1 %v2261_v31, %s8594_s15 }
 0x103   : > { %2285 = vrot.lane.b32.xlu0 %v2265_v25, %s8594_s15  ;;  %2283 = vrot.lane.b32.xlu2 %v2263_v3, %s8594_s15 }
 0x104   : > { %1410 = vmatpush.bf16.msra.mxu2 %v1360_v35  ;;  %1423 = vmatpush.bf16.msra.mxu3 %v1363_v37  ;;  %v8978_v37 = vand.u32 127, %v533_v32 }
 0x106   : > { %v546_v53 = vand.u32 31, %v8978_v37 }
 0x108   : > { %v1336_v42 = vpop.permute.xlu0 %1335  ;;  %v1338_v43 = vpop.permute.xlu1 %1337  ;;  %vm638_vm7 = vcmp.ne.s32.totalorder %v546_v53, 0  ;;  %vm662_vm1 = vcmp.ne.s32.totalorder %v546_v53, 31  ;;  %v6519_v53 = vld [vmem:[%s11902_s1 + $0x18] sm:$0x7] }
 0x109   : > { %v1347_v45 = vsel %vm1341_vm5, %v1334_v27, %v1336_v42  ;;  %v1348_v46 = vsel %vm1341_vm5, %v1336_v42, %v1338_v43  ;;  %v1349_v47 = vsel %vm1341_vm5, %v1338_v43, %v1340_v41 }
 0x10a   : > { %v1369_v50 = vand.u32 %v1347_v45, %v8789_v36  ;;  %v1372_v51 = vand.u32 %v1348_v46, %v8789_v36  ;;  %v1375_v52 = vand.u32 %v1349_v47, %v8789_v36  ;;  %2287 = vrot.lane.b32.xlu1 %v2267_v24, %s8594_s15  ;;  %v8989_v47 = vadd.s32 128, %v8978_v37 }
 0x10b   : > { %2291 = vrot.lane.b32.xlu0 %v2271_v21, %s8594_s15  ;;  %2289 = vrot.lane.b32.xlu2 %v2269_v18, %s8594_s15  ;;  %v9017_v24 = vsel %vm638_vm7, 1.0, %v8595_v23  ;;  %v9035_v21 = vadd.s32 512, %v8978_v37 }
 0x10c   : > { %v553_v54 = vand.u32 31, %v8989_v47 }
 0x10e   : > { %vm639_vm8 = vcmp.ne.s32.totalorder %v553_v54, 0  ;;  %vm663_vm2 = vcmp.ne.s32.totalorder %v553_v54, 31 }
 0x10f   : > { %6488 = vmatmul.msk.bf16.vlgmr.msrb.gmra.mxu0 %vm742_vm0, %v6483_v15  ;;  %6489 = vmatmul.msk.bf16.vlgmr.msrb.gmra.mxu1 %vm742_vm0, %v6483_v15  ;;  %v9020_v25 = vsel %vm639_vm8, 1.0, %v8595_v23 }
 0x110   : > { %6490 = vmatmul.msk.bf16.vlgmr.msrb.gmra.mxu2 %vm742_vm0, %v6483_v15  ;;  %1436 = vmatpush.bf16.msrb.mxu0 %v1366_v49  ;;  %v1678_v1 = vpop.permute.xlu1 %1677  ;;  %v1676_v2 = vpop.permute.xlu0 %1675 }
 0x111   : > { %6491 = vmatmul.msk.bf16.vlgmr.msrb.gmra.mxu3 %vm742_vm0, %v6483_v15  ;;  %1449 = vmatpush.bf16.msrb.mxu1 %v1369_v50  ;;  %v1694_v6 = vsel %vm1693_vm6, %v1676_v2, %v1678_v1  ;;  %v1695_v7 = vsel %vm1693_vm6, %v1678_v1, %v1680_v22  ;;  %v2277_v50 = vld.sshfl [vmem:[#allocation1] sm:$0xff pattern:$0x73625140] }
 0x112   : > { %1462 = vmatpush.bf16.msrb.mxu2 %v1372_v51  ;;  %1475 = vmatpush.bf16.msrb.mxu3 %v1375_v52  ;;  %v1706_v13 = vand.u32 %v1694_v6, %v8789_v36  ;;  %v1709_v14 = vand.u32 %v1695_v7, %v8789_v36 }
 0x113   : > { %2293 = vrot.lane.b32.xlu1 %v2273_v20, %s8594_s15  ;;  %2295 = vrot.lane.b32.xlu2 %v2277_v50, %s8594_s15  ;;  %s8601_s15 = smov 112  }
 0x118   : > { %v1684_v4 = vpop.permute.xlu1 %1683  ;;  %v1682_v5 = vpop.permute.xlu0 %1681 }
 0x119   : > { %v1696_v8 = vsel %vm1693_vm6, %v1680_v22, %v1682_v5  ;;  %v1697_v9 = vsel %vm1693_vm6, %v1682_v5, %v1684_v4  ;;  %v1686_v17 = vpop.permute.xlu2 %1685  ;;  %v9038_v22 = vadd.s32 640, %v8978_v37  ;;  %v9043_v5 = vld [vmem:[%s11902_s1 + $0x14] sm:$0x7] }
 0x11a   : > { %v1712_v15 = vand.u32 %v1696_v8, %v8789_v36  ;;  %v1715_v16 = vand.u32 %v1697_v9, %v8789_v36  ;;  %v1698_v38 = vsel %vm1693_vm6, %v1684_v4, %v1686_v17 }
 0x11b   : > { %v1718_v48 = vand.u32 %v1698_v38, %v8789_v36  ;;  %v9076_v38 = vadd.s32 768, %v8978_v37 }
 0x11f   : > { %6493 = vmatmul.msk.bf16.vlgmr.msra.gmra.mxu0 %vm742_vm0, %v6492_v57  ;;  %6494 = vmatmul.msk.bf16.vlgmr.msra.gmra.mxu1 %vm742_vm0, %v6492_v57 }
 0x120   : > { %6495 = vmatmul.msk.bf16.vlgmr.msra.gmra.mxu2 %vm742_vm0, %v6492_v57  ;;  %1540 = vmatpush.bf16.msra.mxu0 %v1517_v58  ;;  %v1688_v33 = vpop.permute.xlu0 %1687  ;;  %v1690_v34 = vpop.permute.xlu1 %1689  ;;  %v9010_v58 = vadd.s32 384, %v8978_v37 }
 0x121   : > { %6496 = vmatmul.msk.bf16.vlgmr.msra.gmra.mxu3 %vm742_vm0, %v6492_v57  ;;  %1553 = vmatpush.bf16.msra.mxu1 %v1519_v59  ;;  %v1692_v35 = vpop.permute.xlu2 %1691  ;;  %v1699_v40 = vsel %vm1693_vm6, %v1686_v17, %v1688_v33  ;;  %v1700_v43 = vsel %vm1693_vm6, %v1688_v33, %v1690_v34 }
 0x122   : > { %1566 = vmatpush.bf16.msra.mxu2 %v1521_v60  ;;  %1579 = vmatpush.bf16.msra.mxu3 %v1523_v61  ;;  %v1701_v44 = vsel %vm1693_vm6, %v1690_v34, %v1692_v35  ;;  %v1721_v49 = vand.u32 %v1699_v40, %v8789_v36  ;;  %v1724_v51 = vand.u32 %v1700_v43, %v8789_v36  ;;  %v9079_v40 = vadd.s32 896, %v8978_v37 }
 0x123   : > { %v1727_v52 = vand.u32 %v1701_v44, %v8789_v36 }
 0x124   : > { %v595_v50 = vand.u32 31, %v9079_v40 }
 0x126   : > { %vm645_vm15 = vcmp.ne.s32.totalorder %v595_v50, 0 }
 0x129   : > { %v1884_v62 = vpop.permute.xlu2 %1883 }
 0x12f   : > { %6497 = vmatmul.msk.bf16.vlgmr.msrb.gmra.mxu0 %vm742_vm0, %v6492_v57  ;;  %6498 = vmatmul.msk.bf16.vlgmr.msrb.gmra.mxu1 %vm742_vm0, %v6492_v57 }
 0x130   : > { %6499 = vmatmul.msk.bf16.vlgmr.msrb.gmra.mxu2 %vm742_vm0, %v6492_v57  ;;  %1592 = vmatpush.bf16.msrb.mxu0 %v1525_v39 }
 0x131   : > { %6500 = vmatmul.msk.bf16.vlgmr.msrb.gmra.mxu3 %vm742_vm0, %v6492_v57  ;;  %1605 = vmatpush.bf16.msrb.mxu1 %v1527_v26  ;;  %v9007_v57 = vadd.s32 256, %v8978_v37  ;;  %v567_v26 = vand.u32 31, %v9010_v58 }
 0x132   : > { %1618 = vmatpush.bf16.msrb.mxu2 %v1529_v63  ;;  %1631 = vmatpush.bf16.msrb.mxu3 %v1531_v0 }
 0x133   : > { %v560_v39 = vand.u32 31, %v9007_v57  ;;  %vm641_vm11 = vcmp.ne.s32.totalorder %v567_v26, 0  ;;  %vm665_vm7 = vcmp.ne.s32.totalorder %v567_v26, 31 }
 0x134   : > { %v1882_v61 = vpop.permute.xlu1 %1881  ;;  %v1880_v31 = vpop.permute.xlu0 %1879 }
 0x135   : > { %v1898_v63 = vsel %vm1897_vm9, %v1880_v31, %v1882_v61  ;;  %v1899_v0 = vsel %vm1897_vm9, %v1882_v61, %v1884_v62  ;;  %vm640_vm10 = vcmp.ne.s32.totalorder %v560_v39, 0  ;;  %v1890_v18 = vpop.permute.xlu2 %1889  ;;  %vm664_vm4 = vcmp.ne.s32.totalorder %v560_v39, 31 }
 0x136   : > { %v1910_v8 = vand.u32 %v1898_v63, %v8789_v36  ;;  %v1913_v9 = vand.u32 %v1899_v0, %v8789_v36  ;;  %v9177_v26 = vsel %vm664_vm4, 1.0, %v8595_v23  ;;  %vm4079_vm4 = vcmask 908288  }
 0x13c   : > { %v8958_v10 = vpop.f32.mrf.mxu0  ;;  %v8960_v11 = vpop.f32.mrf.mxu1 }
 0x13d   : > { %v877_v1 = vmul.f32 %v9017_v24, %v8958_v10  ;;  %v878_v2 = vmul.f32 %v9020_v25, %v8960_v11  ;;  %v1888_v10 = vpop.permute.xlu1 %1887 }
 0x13f   : > { %6502 = vmatmul.msk.bf16.vlgmr.msra.gmra.mxu0 %vm742_vm0, %v6501_v12  ;;  %6503 = vmatmul.msk.bf16.vlgmr.msra.gmra.mxu1 %vm742_vm0, %v6501_v12 }
 0x140   : > { %6504 = vmatmul.msk.bf16.vlgmr.msra.gmra.mxu2 %vm742_vm0, %v6501_v12  ;;  %1749 = vmatpush.bf16.msra.mxu1 %v1709_v14  ;;  %v9054_v14 = vsel %vm640_vm10, 1.0, %v8595_v23 }
 0x141   : > { %6505 = vmatmul.msk.bf16.vlgmr.msra.gmra.mxu3 %vm742_vm0, %v6501_v12  ;;  %1736 = vmatpush.bf16.msra.mxu0 %v1706_v13 }
 0x142   : > { %1762 = vmatpush.bf16.msra.mxu2 %v1712_v15  ;;  %1775 = vmatpush.bf16.msra.mxu3 %v1715_v16  ;;  %v9057_v15 = vsel %vm641_vm11, 1.0, %v8595_v23  ;;  %vm669_vm11 = vcmp.ne.s32.totalorder %v595_v50, 31 }
 0x143   : > { %v8973_v27 = vpop.f32.mrf.mxu2  ;;  %v9228_v40 = vsel %vm669_vm11, 1.0, %v8595_v23  ;;  %vm4171_vm11 = vcmp.lt.s32.totalorder %v8978_v37, 112 }
 0x144   : > { %v8975_v28 = vpop.f32.mrf.mxu3  ;;  %v784_v29 = vpop.f32.mrf.mxu0  ;;  %v879_v32 = vmul.f32 %v9054_v14, %v8973_v27 }
 0x145   : > { %v797_v30 = vpop.f32.mrf.mxu1  ;;  %v1886_v11 = vpop.permute.xlu0 %1885  ;;  %v574_v29 = vand.u32 31, %v9035_v21  ;;  %v880_v33 = vmul.f32 %v9057_v15, %v8975_v28 }
 0x146   : > { %v1901_v13 = vsel %vm1897_vm9, %v1886_v11, %v1888_v10  ;;  %v581_v30 = vand.u32 31, %v9038_v22 }
 0x147   : > { %v1919_v17 = vand.u32 %v1901_v13, %v8789_v36  ;;  %vm642_vm12 = vcmp.ne.s32.totalorder %v574_v29, 0  ;;  %vm666_vm8 = vcmp.ne.s32.totalorder %v574_v29, 31 }
 0x148   : > { %vm643_vm13 = vcmp.ne.s32.totalorder %v581_v30, 0  ;;  %v9090_v28 = vsel %vm642_vm12, 1.0, %v8595_v23  ;;  %vm2297_vm12 = vcmask 777216  }
 0x14b   : > { %v810_v41 = vpop.f32.mrf.mxu2 }
 0x14c   : > { %v823_v42 = vpop.f32.mrf.mxu3  ;;  %v8984_v45 = vpop.f32.mrf.mxu0 }
 0x14d   : > { %v8986_v46 = vpop.f32.mrf.mxu1  ;;  %v1892_v27 = vpop.permute.xlu0 %1891  ;;  %v881_v61 = vmul.f32 %v9090_v28, %v8984_v45 }
 0x14f   : > { %6506 = vmatmul.msk.bf16.vlgmr.msrb.gmra.mxu0 %vm742_vm0, %v6501_v12  ;;  %6507 = vmatmul.msk.bf16.vlgmr.msrb.gmra.mxu1 %vm742_vm0, %v6501_v12 }
 0x150   : > { %6508 = vmatmul.msk.bf16.vlgmr.msrb.gmra.mxu2 %vm742_vm0, %v6501_v12  ;;  %1788 = vmatpush.bf16.msrb.mxu0 %v1718_v48  ;;  %v9093_v48 = vsel %vm643_vm13, 1.0, %v8595_v23  ;;  %vm2524_vm13 = vcmp.lt.s32.totalorder %v8978_v37, 96 }
 0x151   : > { %6509 = vmatmul.msk.bf16.vlgmr.msrb.gmra.mxu3 %vm742_vm0, %v6501_v12  ;;  %1801 = vmatpush.bf16.msrb.mxu1 %v1721_v49  ;;  %v1900_v12 = vsel %vm1897_vm9, %v1884_v62, %v1886_v11  ;;  %v588_v49 = vand.u32 31, %v9076_v38  ;;  %v882_v31 = vmul.f32 %v9093_v48, %v8986_v46 }
 0x152   : > { %1814 = vmatpush.bf16.msrb.mxu2 %v1724_v51  ;;  %1827 = vmatpush.bf16.msrb.mxu3 %v1727_v52  ;;  %v1916_v16 = vand.u32 %v1900_v12, %v8789_v36  ;;  %v1894_v51 = vpop.permute.xlu1 %1893  ;;  %v1896_v52 = vpop.permute.xlu2 %1895 }
 0x153   : > { %v9002_v55 = vpop.f32.mrf.mxu2  ;;  %v1904_v0 = vsel %vm1897_vm9, %v1892_v27, %v1894_v51  ;;  %vm644_vm14 = vcmp.ne.s32.totalorder %v588_v49, 0  ;;  %vm668_vm10 = vcmp.ne.s32.totalorder %v588_v49, 31 }
 0x154   : > { %v9004_v56 = vpop.f32.mrf.mxu3  ;;  %v836_v59 = vpop.f32.mrf.mxu0  ;;  %v9225_v38 = vsel %vm668_vm10, 1.0, %v8595_v23 }
 0x155   : > { %v849_v60 = vpop.f32.mrf.mxu1  ;;  %v1902_v59 = vsel %vm1897_vm9, %v1888_v10, %v1890_v18  ;;  %v9121_v10 = vsel %vm645_vm15, 1.0, %v8595_v23  ;;  %vm3595_vm15 = vcmask 1042432  }
 0x156   : > { %v1903_v60 = vsel %vm1897_vm9, %v1890_v18, %v1892_v27  ;;  %v1922_v46 = vand.u32 %v1902_v59, %v8789_v36  ;;  %v884_v12 = vmul.f32 %v9121_v10, %v9004_v56  ;;  %v9147_v56 = vsel %vm663_vm2, 1.0, %v8595_v23 }
 0x157   : > { %vm3652_vm2 = vcmask 130048  }
 0x15b   : > { %v862_v19 = vpop.f32.mrf.mxu2 }
 0x15c   : > { %v875_v20 = vpop.f32.mrf.mxu3  ;;  %v986_v3 = vpop.f32.mrf.mxu0 }
 0x15d   : > { %v999_v4 = vpop.f32.mrf.mxu1  ;;  %v9045_v6 = vadd.f32 %v986_v3, %v877_v1  ;;  %v1905_v1 = vsel %vm1897_vm9, %v1894_v51, %v1896_v52  ;;  %v1925_v3 = vand.u32 %v1903_v60, %v8789_v36  ;;  %vm667_vm9 = vcmp.ne.s32.totalorder %v581_v30, 31 }
 0x15e   : > { %v9047_v7 = vadd.f32 %v999_v4, %v878_v2  ;;  %v1928_v4 = vand.u32 %v1904_v0, %v8789_v36 }
 0x15f   : > { %6511 = vmatmul.msk.bf16.vlgmr.msra.gmra.mxu0 %vm742_vm0, %v9043_v5  ;;  %6512 = vmatmul.msk.bf16.vlgmr.msra.gmra.mxu1 %vm742_vm0, %v9043_v5 }
 0x160   : > { %6513 = vmatmul.msk.bf16.vlgmr.msra.gmra.mxu2 %vm742_vm0, %v9043_v5  ;;  %1940 = vmatpush.bf16.msra.mxu0 %v1910_v8  ;;  %v1931_v8 = vand.u32 %v1905_v1, %v8789_v36 }
 0x161   : > { %6514 = vmatmul.msk.bf16.vlgmr.msra.gmra.mxu3 %vm742_vm0, %v9043_v5  ;;  %1953 = vmatpush.bf16.msra.mxu1 %v1913_v9  ;;  %v9118_v9 = vsel %vm644_vm14, 1.0, %v8595_v23  ;;  %vm3588_vm14 = vcmask 138240  }
 0x162   : > { %1966 = vmatpush.bf16.msra.mxu2 %v1916_v16  ;;  %1979 = vmatpush.bf16.msra.mxu3 %v1919_v17  ;;  %v883_v11 = vmul.f32 %v9118_v9, %v9002_v55  ;;  %v9144_v55 = vsel %vm662_vm1, 1.0, %v8595_v23  ;;  %vm3591_vm1 = vcmask 48128  }
 0x163   : > { %v1012_v34 = vpop.f32.mrf.mxu2 }
 0x164   : > { %v1025_v35 = vpop.f32.mrf.mxu3  ;;  %v9081_v41 = vadd.f32 %v1012_v34, %v879_v32  ;;  %v988_v43 = vpop.f32.mrf.mxu0 }
 0x165   : > { %v9083_v42 = vadd.f32 %v1025_v35, %v880_v33  ;;  %v1001_v44 = vpop.f32.mrf.mxu1  ;;  %v2086_v34 = vpop.permute.xlu1 %2085 }
 0x166   : > { %v2088_v35 = vpop.permute.xlu2 %2087 }
 0x167   : > { %v2103_v44 = vsel %vm2101_vm3, %v2086_v34, %v2088_v35 }
 0x16b   : > { %v1014_v62 = vpop.f32.mrf.mxu2 }
 0x16c   : > { %v1027_v63 = vpop.f32.mrf.mxu3  ;;  %v1038_v2 = vpop.f32.mrf.mxu0 }
 0x16d   : > { %v1051_v19 = vpop.f32.mrf.mxu1  ;;  %v9109_v20 = vadd.f32 %v1038_v2, %v881_v61  ;;  %v2092_v62 = vpop.permute.xlu1 %2091 }
 0x16e   : > { %v9111_v45 = vadd.f32 %v1051_v19, %v882_v31  ;;  %v2117_v31 = vand.u32 %v2103_v44, %v8789_v36  ;;  %v2094_v39 = vpop.permute.xlu2 %2093 }
 0x16f   : > { %6515 = vmatmul.msk.bf16.vlgmr.msrb.gmra.mxu0 %vm742_vm0, %v9043_v5  ;;  %6516 = vmatmul.msk.bf16.vlgmr.msrb.gmra.mxu1 %vm742_vm0, %v9043_v5 }
 0x170   : > { %6517 = vmatmul.msk.bf16.vlgmr.msrb.gmra.mxu2 %vm742_vm0, %v9043_v5  ;;  %1992 = vmatpush.bf16.msrb.mxu0 %v1922_v46 }
 0x171   : > { %6518 = vmatmul.msk.bf16.vlgmr.msrb.gmra.mxu3 %vm742_vm0, %v9043_v5  ;;  %2005 = vmatpush.bf16.msrb.mxu1 %v1925_v3  ;;  %v2084_v5 = vpop.permute.xlu0 %2083 }
 0x172   : > { %2018 = vmatpush.bf16.msrb.mxu2 %v1928_v4  ;;  %2031 = vmatpush.bf16.msrb.mxu3 %v1931_v8  ;;  %v2102_v43 = vsel %vm2101_vm3, %v2084_v5, %v2086_v34  ;;  %v9195_v34 = vsel %vm666_vm8, 1.0, %v8595_v23  ;;  %v9198_v5 = vsel %vm667_vm9, 1.0, %v8595_v23 }
 0x173   : > { %v1064_v13 = vpop.f32.mrf.mxu2  ;;  %v2114_v61 = vand.u32 %v2102_v43, %v8789_v36 }
 0x174   : > { %v1077_v16 = vpop.f32.mrf.mxu3  ;;  %v9135_v17 = vadd.f32 %v1064_v13, %v883_v11  ;;  %v1040_v32 = vpop.f32.mrf.mxu0 }
 0x175   : > { %v9137_v18 = vadd.f32 %v1077_v16, %v884_v12  ;;  %v1053_v33 = vpop.f32.mrf.mxu1  ;;  %v2098_v32 = vpop.permute.xlu1 %2097 }
 0x176   : > { %v2100_v33 = vpop.permute.xlu2 %2099 }
 0x177   : > { %v2109_v22 = vsel %vm2101_vm3, %v2098_v32, %v2100_v33 }
 0x179   : > { %v2090_v63 = vpop.permute.xlu0 %2089 }
 0x17a   : > { %v2104_v0 = vsel %vm2101_vm3, %v2088_v35, %v2090_v63  ;;  %v2105_v1 = vsel %vm2101_vm3, %v2090_v63, %v2092_v62 }
 0x17b   : > { %v1066_v27 = vpop.f32.mrf.mxu2  ;;  %v2120_v57 = vand.u32 %v2104_v0, %v8789_v36  ;;  %v2123_v58 = vand.u32 %v2105_v1, %v8789_v36 }
 0x17c   : > { %v1079_v51 = vpop.f32.mrf.mxu3  ;;  %v1182_v52 = vpop.f32.mrf.mxu0 }
 0x17d   : > { %v1195_v59 = vpop.f32.mrf.mxu1  ;;  %v1277_v54 = vmul.f32 %v9144_v55, %v1182_v52  ;;  %v2282_v63 = vpop.permute.xlu1 %2281 }
 0x17e   : > { %v1278_v60 = vmul.f32 %v9147_v56, %v1195_v59 }
 0x17f   : > { %v9165_v2 = vadd.f32 %v1277_v54, %v9045_v6  ;;  %6520 = vmatmul.msk.bf16.vlgmr.msra.gmra.mxu0 %vm742_vm0, %v6519_v53  ;;  %6521 = vmatmul.msk.bf16.vlgmr.msra.gmra.mxu1 %vm742_vm0, %v6519_v53  ;;  %v9180_v6 = vsel %vm665_vm7, 1.0, %v8595_v23  ;;  %v2135_v54 = vand.u32 %v2109_v22, %v8789_v36 }
 0x180   : > { %v9168_v19 = vadd.f32 %v1278_v60, %v9047_v7  ;;  %6522 = vmatmul.msk.bf16.vlgmr.msra.gmra.mxu2 %vm742_vm0, %v6519_v53  ;;  %2144 = vmatpush.bf16.msra.mxu0 %v2114_v61 }
 0x181   : > { %6523 = vmatmul.msk.bf16.vlgmr.msra.gmra.mxu3 %vm742_vm0, %v6519_v53  ;;  %2157 = vmatpush.bf16.msra.mxu1 %v2117_v31  ;;  %v2096_v16 = vpop.permute.xlu0 %2095 }
 0x182   : > { %2170 = vmatpush.bf16.msra.mxu2 %v2120_v57  ;;  %2183 = vmatpush.bf16.msra.mxu3 %v2123_v58  ;;  %v2108_v21 = vsel %vm2101_vm3, %v2096_v16, %v2098_v32  ;;  %v2284_v57 = vpop.permute.xlu2 %2283 }
 0x183   : > { %v1208_v7 = vpop.f32.mrf.mxu2  ;;  %v2132_v59 = vand.u32 %v2108_v21, %v8789_v36 }
 0x184   : > { %v1221_v46 = vpop.f32.mrf.mxu3  ;;  %v1279_v3 = vmul.f32 %v9177_v26, %v1208_v7  ;;  %v1184_v8 = vpop.f32.mrf.mxu0 }
 0x185   : > { %v1280_v4 = vmul.f32 %v9180_v6, %v1221_v46  ;;  %v1197_v11 = vpop.f32.mrf.mxu1  ;;  %v6528_v8 = vld [vmem:[%s11902_s1 + $0x1c] sm:$0x7]  ;;  %v2288_v32 = vpop.permute.xlu1 %2287 }
 0x186   : > { %v9185_v12 = vadd.f32 %v1279_v3, %v9081_v41  ;;  %v2106_v41 = vsel %vm2101_vm3, %v2092_v62, %v2094_v39 }
 0x187   : > { %v9188_v13 = vadd.f32 %v1280_v4, %v9083_v42  ;;  %v2107_v42 = vsel %vm2101_vm3, %v2094_v39, %v2096_v16  ;;  %v2126_v51 = vand.u32 %v2106_v41, %v8789_v36  ;;  %v2299_v39 = vsel %vm2297_vm12, %v2282_v63, %v2284_v57 }
 0x188   : > { %v2129_v52 = vand.u32 %v2107_v42, %v8789_v36  ;;  %v2313_v16 = vand.u32 %v2299_v39, %v8789_v36  ;;  %vm3710_vm3 = vcmask 121856  }
 0x18a   : > { %v2290_v21 = vpop.permute.xlu2 %2289 }
 0x18b   : > { %v1210_v35 = vpop.f32.mrf.mxu2 }
 0x18c   : > { %v1223_v43 = vpop.f32.mrf.mxu3  ;;  %v1234_v29 = vpop.f32.mrf.mxu0 }
 0x18d   : > { %v1247_v30 = vpop.f32.mrf.mxu1  ;;  %v1281_v44 = vmul.f32 %v9195_v34, %v1234_v29 }
 0x18e   : > { %v1282_v27 = vmul.f32 %v9198_v5, %v1247_v30 }
 0x18f   : > { %v9215_v60 = vadd.f32 %v1281_v44, %v9109_v20  ;;  %6524 = vmatmul.msk.bf16.vlgmr.msrb.gmra.mxu0 %vm742_vm0, %v6519_v53  ;;  %6525 = vmatmul.msk.bf16.vlgmr.msrb.gmra.mxu1 %vm742_vm0, %v6519_v53 }
 0x190   : > { %v9218_v61 = vadd.f32 %v1282_v27, %v9111_v45  ;;  %6526 = vmatmul.msk.bf16.vlgmr.msrb.gmra.mxu2 %vm742_vm0, %v6519_v53  ;;  %2196 = vmatpush.bf16.msrb.mxu0 %v2126_v51 }
 0x191   : > { %6527 = vmatmul.msk.bf16.vlgmr.msrb.gmra.mxu3 %vm742_vm0, %v6519_v53  ;;  %2209 = vmatpush.bf16.msrb.mxu1 %v2129_v52  ;;  %v2280_v53 = vpop.permute.xlu0 %2279 }
 0x192   : > { %2222 = vmatpush.bf16.msrb.mxu2 %v2132_v59  ;;  %2235 = vmatpush.bf16.msrb.mxu3 %v2135_v54  ;;  %v2298_v58 = vsel %vm2297_vm12, %v2280_v53, %v2282_v63 }
 0x193   : > { %v1260_v49 = vpop.f32.mrf.mxu2 }
 0x194   : > { %v1273_v50 = vpop.f32.mrf.mxu3  ;;  %v1283_v20 = vmul.f32 %v9225_v38, %v1260_v49  ;;  %v1236_v31 = vpop.f32.mrf.mxu0 }
 0x195   : > { %v1284_v45 = vmul.f32 %v9228_v40, %v1273_v50  ;;  %v1249_v62 = vpop.f32.mrf.mxu1  ;;  %v2294_v50 = vpop.permute.xlu1 %2293 }
 0x196   : > { %v9233_v0 = vadd.f32 %v1283_v20, %v9135_v17  ;;  %v2296_v20 = vpop.permute.xlu2 %2295 }
 0x197   : > { %v9236_v1 = vadd.f32 %v1284_v45, %v9137_v18  ;;  %v2310_v18 = vand.u32 %v2298_v58, %v8789_v36  ;;  %v2305_v53 = vsel %vm2297_vm12, %v2294_v50, %v2296_v20 }
 0x199   : > { %v2286_v33 = vpop.permute.xlu0 %2285 }
 0x19a   : > { %v2300_v41 = vsel %vm2297_vm12, %v2284_v57, %v2286_v33  ;;  %v2301_v42 = vsel %vm2297_vm12, %v2286_v33, %v2288_v32 }
 0x19b   : > { %v1262_v7 = vpop.f32.mrf.mxu2  ;;  %v2316_v35 = vand.u32 %v2300_v41, %v8789_v36  ;;  %v2319_v43 = vand.u32 %v2301_v42, %v8789_v36 }
 0x19c   : > { %v1275_v46 = vpop.f32.mrf.mxu3  ;;  %v1386_v3 = vpop.f32.mrf.mxu0 }
 0x19d   : > { %v1399_v4 = vpop.f32.mrf.mxu1  ;;  %v1481_v17 = vmul.f32 %v9017_v24, %v1386_v3  ;;  %v2331_v3 = vand.u32 %v2305_v53, %v8789_v36 }
 0x19e   : > { %v1482_v11 = vmul.f32 %v9020_v25, %v1399_v4  ;;  %v8596_v4 = vmov 0  }
 0x19f   : > { %6529 = vmatmul.msk.bf16.vlgmr.msra.gmra.mxu0 %vm742_vm0, %v6528_v8  ;;  %6530 = vmatmul.msk.bf16.vlgmr.msra.gmra.mxu1 %vm742_vm0, %v6528_v8  ;;  %v1489_v22 = vadd.f32 %v1481_v17, %v9165_v2  ;;  %3526 = vst [vmem:[#allocation3] sm:$0x77] %v8596_v4 }
 0x1a0   : > { %6531 = vmatmul.msk.bf16.vlgmr.msra.gmra.mxu2 %vm742_vm0, %v6528_v8  ;;  %v1490_v29 = vadd.f32 %v1482_v11, %v9168_v19  ;;  %2340 = vmatpush.bf16.msra.mxu0 %v2310_v18  ;;  %v2302_v19 = vsel %vm2297_vm12, %v2288_v32, %v2290_v21  ;;  %3527 = vst [vmem:[#allocation3 + $0x8] sm:$0x77] %v8596_v4 }
 0x1a1   : > { %6532 = vmatmul.msk.bf16.vlgmr.msra.gmra.mxu3 %vm742_vm0, %v6528_v8  ;;  %2353 = vmatpush.bf16.msra.mxu1 %v2313_v16  ;;  %v2292_v2 = vpop.permute.xlu0 %2291  ;;  %v2322_v39 = vand.u32 %v2302_v19, %v8789_v36 }
 0x1a2   : > { %2366 = vmatpush.bf16.msra.mxu2 %v2316_v35  ;;  %2379 = vmatpush.bf16.msra.mxu3 %v2319_v43  ;;  %v2303_v45 = vsel %vm2297_vm12, %v2290_v21, %v2292_v2  ;;  %v2304_v63 = vsel %vm2297_vm12, %v2292_v2, %v2294_v50  ;;  %vm4442_vm12 = vcmask 523264  }
 0x1a3   : > { %v1412_v30 = vpop.f32.mrf.mxu2  ;;  %v2325_v7 = vand.u32 %v2303_v45, %v8789_v36  ;;  %v2328_v46 = vand.u32 %v2304_v63, %v8789_v36  ;;  %8465 = vset.pattern.permute.xlu0 %v8596_v4  ;;  %8501 = vset.pattern.permute.xlu2 %v8596_v4  ;;  %v2453_v36 = vld [vmem:[%s11903_s2] sm:$0x3f]  ;;  %s8599_s2 = smov 15  }
 0x1a4   : > { %v1425_v44 = vpop.f32.mrf.mxu3  ;;  %v1483_v27 = vmul.f32 %v9054_v14, %v1412_v30  ;;  %v1388_v52 = vpop.f32.mrf.mxu0  ;;  %2456 = vperm.xlu0 %8465, %v2453_v36   ;;  %v6537_v30 = vld [vmem:[%s11902_s1 + $0x20] sm:$0x7] }
 0x1a5   : > { %v1484_v51 = vmul.f32 %v9057_v15, %v1425_v44  ;;  %v1401_v59 = vpop.f32.mrf.mxu1 }
 0x1a6   : > { %v1491_v54 = vadd.f32 %v1483_v27, %v9185_v12 }
 0x1a7   : > { %v1492_v49 = vadd.f32 %v1484_v51, %v9188_v13 }
 0x1ab   : > { %v1414_v31 = vpop.f32.mrf.mxu2 }
 0x1ac   : > { %v1427_v62 = vpop.f32.mrf.mxu3  ;;  %v1438_v57 = vpop.f32.mrf.mxu0 }
 0x1ad   : > { %v1451_v58 = vpop.f32.mrf.mxu1  ;;  %v1485_v12 = vmul.f32 %v9090_v28, %v1438_v57 }
 0x1ae   : > { %v1486_v13 = vmul.f32 %v9093_v48, %v1451_v58 }
 0x1af   : > { %6533 = vmatmul.msk.bf16.vlgmr.msrb.gmra.mxu0 %vm742_vm0, %v6528_v8  ;;  %6534 = vmatmul.msk.bf16.vlgmr.msrb.gmra.mxu1 %vm742_vm0, %v6528_v8  ;;  %v1493_v17 = vadd.f32 %v1485_v12, %v9215_v60 }
 0x1b0   : > { %v1494_v11 = vadd.f32 %v1486_v13, %v9218_v61  ;;  %6535 = vmatmul.msk.bf16.vlgmr.msrb.gmra.mxu2 %vm742_vm0, %v6528_v8  ;;  %2392 = vmatpush.bf16.msrb.mxu0 %v2322_v39 }
 0x1b1   : > { %6536 = vmatmul.msk.bf16.vlgmr.msrb.gmra.mxu3 %vm742_vm0, %v6528_v8  ;;  %2405 = vmatpush.bf16.msrb.mxu1 %v2325_v7 }
 0x1b2   : > { %2418 = vmatpush.bf16.msrb.mxu2 %v2328_v46  ;;  %2431 = vmatpush.bf16.msrb.mxu3 %v2331_v3 }
 0x1b3   : > { %v1464_v18 = vpop.f32.mrf.mxu2 }
 0x1b4   : > { %v1477_v16 = vpop.f32.mrf.mxu3  ;;  %v1487_v60 = vmul.f32 %v9118_v9, %v1464_v18  ;;  %v1440_v32 = vpop.f32.mrf.mxu0 }
 0x1b5   : > { %v1488_v61 = vmul.f32 %v9121_v10, %v1477_v16  ;;  %v1453_v33 = vpop.f32.mrf.mxu1 }
 0x1b6   : > { %v1495_v41 = vadd.f32 %v1487_v60, %v9233_v0 }
 0x1b7   : > { %v1496_v8 = vadd.f32 %v1488_v61, %v9236_v1 }
 0x1bb   : > { %v1466_v42 = vpop.f32.mrf.mxu2 }
 0x1bc   : > { %v1479_v35 = vpop.f32.mrf.mxu3  ;;  %v1542_v43 = vpop.f32.mrf.mxu0 }
 0x1bd   : > { %v1555_v21 = vpop.f32.mrf.mxu1  ;;  %v1637_v44 = vadd.f32 %v1542_v43, %v1489_v22 }
 0x1be   : > { %v1638_v27 = vadd.f32 %v1555_v21, %v1490_v29 }
 0x1bf   : > { %6538 = vmatmul.msk.bf16.vlgmr.msra.gmra.mxu0 %vm742_vm0, %v6537_v30  ;;  %6539 = vmatmul.msk.bf16.vlgmr.msra.gmra.mxu1 %vm742_vm0, %v6537_v30 }
 0x1c0   : > { %6540 = vmatmul.msk.bf16.vlgmr.msra.gmra.mxu2 %vm742_vm0, %v6537_v30 }
 0x1c1   : > { %6541 = vmatmul.msk.bf16.vlgmr.msra.gmra.mxu3 %vm742_vm0, %v6537_v30 }
 0x1c3   : > { %v1568_v0 = vpop.f32.mrf.mxu2 }
 0x1c4   : > { %v1581_v1 = vpop.f32.mrf.mxu3  ;;  %v1639_v51 = vadd.f32 %v1568_v0, %v1491_v54  ;;  %v1544_v59 = vpop.f32.mrf.mxu0 }
 0x1c5   : > { %v1640_v52 = vadd.f32 %v1581_v1, %v1492_v49  ;;  %v1557_v50 = vpop.f32.mrf.mxu1 }
 0x1cb   : > { %v1570_v2 = vpop.f32.mrf.mxu2 }
 0x1cc   : > { %v1583_v20 = vpop.f32.mrf.mxu3  ;;  %v1594_v19 = vpop.f32.mrf.mxu0 }
 0x1cd   : > { %v1607_v45 = vpop.f32.mrf.mxu1  ;;  %v1641_v22 = vadd.f32 %v1594_v19, %v1493_v17 }
 0x1ce   : > { %v1642_v29 = vadd.f32 %v1607_v45, %v1494_v11 }
 0x1cf   : > { %6542 = vmatmul.msk.bf16.vlgmr.msrb.gmra.mxu0 %vm742_vm0, %v6537_v30  ;;  %6543 = vmatmul.msk.bf16.vlgmr.msrb.gmra.mxu1 %vm742_vm0, %v6537_v30 }
 0x1d0   : > { %6544 = vmatmul.msk.bf16.vlgmr.msrb.gmra.mxu2 %vm742_vm0, %v6537_v30 }
 0x1d1   : > { %6545 = vmatmul.msk.bf16.vlgmr.msrb.gmra.mxu3 %vm742_vm0, %v6537_v30  ;;  %vm2491_vm0 = vcmp.lt.s32.totalorder %v8978_v37, 127 }
 0x1d3   : > { %v1620_v31 = vpop.f32.mrf.mxu2 }
 0x1d4   : > { %v1633_v62 = vpop.f32.mrf.mxu3  ;;  %v1643_v54 = vadd.f32 %v1620_v31, %v1495_v41  ;;  %v1596_v63 = vpop.f32.mrf.mxu0 }
 0x1d5   : > { %v1644_v49 = vadd.f32 %v1633_v62, %v1496_v8  ;;  %v1609_v53 = vpop.f32.mrf.mxu1 }
 0x1db   : > { %v1622_v57 = vpop.f32.mrf.mxu2 }
 0x1dc   : > { %v1635_v58 = vpop.f32.mrf.mxu3  ;;  %v1738_v39 = vpop.f32.mrf.mxu0 }
 0x1dd   : > { %v1751_v12 = vpop.f32.mrf.mxu1  ;;  %v1833_v13 = vmul.f32 %v9144_v55, %v1738_v39 }
 0x1de   : > { %v1834_v7 = vmul.f32 %v9147_v56, %v1751_v12 }
 0x1df   : > { %v1841_v46 = vadd.f32 %v1833_v13, %v1637_v44 }
 0x1e0   : > { %v1842_v3 = vadd.f32 %v1834_v7, %v1638_v27 }
 0x1e3   : > { %v1764_v4 = vpop.f32.mrf.mxu2 }
 0x1e4   : > { %v1777_v17 = vpop.f32.mrf.mxu3  ;;  %v1835_v11 = vmul.f32 %v9177_v26, %v1764_v4  ;;  %v1740_v18 = vpop.f32.mrf.mxu0 }
 0x1e5   : > { %v1836_v36 = vmul.f32 %v9180_v6, %v1777_v17  ;;  %v1753_v16 = vpop.f32.mrf.mxu1 }
 0x1e6   : > { %v1843_v60 = vadd.f32 %v1835_v11, %v1639_v51 }
 0x1e7   : > { %v1844_v61 = vadd.f32 %v1836_v36, %v1640_v52 }
 0x1eb   : > { %v1766_v32 = vpop.f32.mrf.mxu2 }
 0x1ec   : > { %v1779_v33 = vpop.f32.mrf.mxu3  ;;  %v1790_v41 = vpop.f32.mrf.mxu0 }
 0x1ed   : > { %v1803_v8 = vpop.f32.mrf.mxu1  ;;  %v1837_v42 = vmul.f32 %v9195_v34, %v1790_v41 }
 0x1ee   : > { %v1838_v35 = vmul.f32 %v9198_v5, %v1803_v8 }
 0x1ef   : > { %v9301_v43 = vadd.f32 %v1837_v42, %v1641_v22 }
 0x1f0   : > { %v9303_v21 = vadd.f32 %v1838_v35, %v1642_v29 }
 0x1f3   : > { %v1816_v30 = vpop.f32.mrf.mxu2 }
 0x1f4   : > { %v1829_v44 = vpop.f32.mrf.mxu3  ;;  %v1839_v27 = vmul.f32 %v9225_v38, %v1816_v30  ;;  %v1792_v1 = vpop.f32.mrf.mxu0 }
 0x1f5   : > { %v1840_v0 = vmul.f32 %v9228_v40, %v1829_v44  ;;  %v1805_v51 = vpop.f32.mrf.mxu1 }
 0x1f6   : > { %v9307_v52 = vadd.f32 %v1839_v27, %v1643_v54 }
 0x1f7   : > { %v9309_v59 = vadd.f32 %v1840_v0, %v1644_v49 }
 0x1fb   : > { %v1818_v50 = vpop.f32.mrf.mxu2 }
 0x1fc   : > { %v1831_v2 = vpop.f32.mrf.mxu3  ;;  %v1942_v20 = vpop.f32.mrf.mxu0 }
 0x1fd   : > { %v1955_v19 = vpop.f32.mrf.mxu1  ;;  %v2037_v45 = vmul.f32 %v9017_v24, %v1942_v20 }
 0x1fe   : > { %v2038_v22 = vmul.f32 %v9020_v25, %v1955_v19 }
 0x1ff   : > { %v2045_v29 = vadd.f32 %v2037_v45, %v1841_v46 }
 0x200   : > { %v2046_v31 = vadd.f32 %v2038_v22, %v1842_v3 }
 0x203   : > { %v1968_v62 = vpop.f32.mrf.mxu2 }
 0x204   : > { %v1981_v63 = vpop.f32.mrf.mxu3  ;;  %v1944_v53 = vpop.f32.mrf.mxu0  ;;  %v2039_v51 = vmul.f32 %v9054_v14, %v1968_v62 }
 0x205   : > { %v1957_v57 = vpop.f32.mrf.mxu1  ;;  %v2040_v50 = vmul.f32 %v9057_v15, %v1981_v63 }
 0x206   : > { %v2047_v2 = vadd.f32 %v2039_v51, %v1843_v60 }
 0x207   : > { %v2048_v20 = vadd.f32 %v2040_v50, %v1844_v61 }
 0x20b   : > { %v1970_v58 = vpop.f32.mrf.mxu2 }
 0x20c   : > { %v1983_v39 = vpop.f32.mrf.mxu3  ;;  %v1994_v54 = vpop.f32.mrf.mxu0 }
 0x20d   : > { %v2007_v12 = vpop.f32.mrf.mxu1 }
 0x20e   : > { %v2042_v14 = vmul.f32 %v9093_v48, %v2007_v12 }
 0x213   : > { %v2020_v49 = vpop.f32.mrf.mxu2 }
 0x214   : > { %v2033_v13 = vpop.f32.mrf.mxu3  ;;  %v1996_v7 = vpop.f32.mrf.mxu0 }
 0x215   : > { %v2009_v4 = vpop.f32.mrf.mxu1 }
 0x216   : > { %v2457_v61 = vpop.permute.xlu0 %2456 }
 0x21b   : > { %v2022_v17 = vpop.f32.mrf.mxu2 }
 0x21c   : > { %v2035_v11 = vpop.f32.mrf.mxu3  ;;  %v2146_v36 = vpop.f32.mrf.mxu0 }
 0x21d   : > { %v2159_v24 = vpop.f32.mrf.mxu1  ;;  %v2041_v11 = vmul.f32 %v9090_v28, %v1994_v54  ;;  %v2050_v28 = vadd.f32 %v2042_v14, %v9303_v21  ;;  %v2044_v21 = vmul.f32 %v9121_v10, %v2033_v13  ;;  %v8115_v14 = vld [vmem:[%s11876_s5 + $0x1f4] sm:$0xf0] }
 0x223   : > { %v2172_v18 = vpop.f32.mrf.mxu2 }
 0x224   : > { %v2185_v25 = vpop.f32.mrf.mxu3  ;;  %v2148_v46 = vpop.f32.mrf.mxu0  ;;  %v2243_v22 = vadd.f32 %v2172_v18, %v2047_v2  ;;  %v2242_v18 = vadd.f32 %v2159_v24, %v2046_v31 }
 0x225   : > { %v2161_v3 = vpop.f32.mrf.mxu1  ;;  %v2244_v53 = vadd.f32 %v2185_v25, %v2048_v20  ;;  %v2049_v46 = vadd.f32 %v2041_v11, %v9301_v43  ;;  %v2043_v43 = vmul.f32 %v9118_v9, %v2020_v49 }
 0x22b   : > { %v2174_v16 = vpop.f32.mrf.mxu2 }
 0x22c   : > { %v2187_v32 = vpop.f32.mrf.mxu3  ;;  %v2198_v33 = vpop.f32.mrf.mxu0 }
 0x22d   : > { %v2211_v41 = vpop.f32.mrf.mxu1  ;;  %v2245_v31 = vadd.f32 %v2198_v33, %v2049_v46  ;;  %v6716_v46 = vld [vmem:[%s11876_s5 + $0x150] sm:$0xf] }
 0x233   : > { %v9313_v8 = vpop.f32.mrf.mxu2 }
 0x234   : > { %v9315_v42 = vpop.f32.mrf.mxu3  ;;  %v2200_v35 = vpop.f32.mrf.mxu0 }
 0x235   : > { %v2213_v30 = vpop.f32.mrf.mxu1 }
 0x23b   : > { %v2226_v44 = vpop.f32.mrf.mxu2 }
 0x23c   : > { %v2239_v27 = vpop.f32.mrf.mxu3  ;;  %v2342_v0 = vpop.f32.mrf.mxu0 }
 0x23d   : > { %v2355_v1 = vpop.f32.mrf.mxu1  ;;  %v2437_v15 = vmul.f32 %v9144_v55, %v2342_v0 }
 0x23e   : > { %v2438_v60 = vmul.f32 %v9147_v56, %v2355_v1 }
 0x240   : > { %v2446_v54 = vadd.f32 %v2438_v60, %v2242_v18  ;;  %v8097_v60 = vld [vmem:[%s11876_s5 + $0x164] sm:$0xf0] }
 0x241   : > { %v8113_v18 = vld [vmem:[%s11876_s5 + $0x1e4] sm:$0xf0] }
 0x242   : > { %v9342_v30 = vadd.f32 %v2457_v61, %v2446_v54  ;;  %v6780_v54 = vld [vmem:[%s11876_s5 + $0x1d0] sm:$0xf] }
 0x243   : > { %v2368_v19 = vpop.f32.mrf.mxu2 }
 0x244   : > { %v2381_v45 = vpop.f32.mrf.mxu3  ;;  %v2439_v57 = vmul.f32 %v9177_v26, %v2368_v19  ;;  %v2344_v39 = vpop.f32.mrf.mxu0  ;;  %v2241_v26 = vadd.f32 %v2146_v36, %v2045_v29  ;;  %v2246_v36 = vadd.f32 %v2211_v41, %v2050_v28  ;;  %v2468_v41 = vmax.f32 %v9342_v30, 0.0  ;;  %v6748_v30 = vld [vmem:[%s11876_s5 + $0x190] sm:$0xf] }
 0x245   : > { %v2440_v58 = vmul.f32 %v9180_v6, %v2381_v45  ;;  %v2357_v7 = vpop.f32.mrf.mxu1 }
 0x246   : > { %v2447_v4 = vadd.f32 %v2439_v57, %v2243_v22  ;;  %v2445_v48 = vadd.f32 %v2437_v15, %v2241_v26  ;;  %v6732_v7 = vld [vmem:[%s11876_s5 + $0x170] sm:$0xf]  ;;  %v6724_v15 = vld [vmem:[%s11876_s5 + $0x160] sm:$0xf] }
 0x247   : > { %v2448_v17 = vadd.f32 %v2440_v58, %v2244_v53  ;;  %v6788_v26 = vld [vmem:[%s11876_s5 + $0x1e0] sm:$0xf]  ;;  %v6725_v28 = vor.u32 %v8097_v60, %v6724_v15 }
 0x248   : > { %v9325_v62 = vadd.f32 %v2457_v61, %v2447_v4  ;;  %v9344_v44 = vadd.f32 %v2457_v61, %v2445_v48  ;;  %v8099_v4 = vld [vmem:[%s11876_s5 + $0x174] sm:$0xf0] }
 0x249   : > { %v9327_v63 = vadd.f32 %v2457_v61, %v2448_v17  ;;  %v6796_v17 = vld [vmem:[%s11876_s5 + $0x1f0] sm:$0xf]  ;;  %v6733_v11 = vor.u32 %v8099_v4, %v6732_v7  ;;  %v8095_v48 = vld [vmem:[%s11876_s5 + $0x154] sm:$0xf0] }
 0x24a   : > { %v2469_v6 = vmax.f32 %v9325_v62, 0.0  ;;  %v2467_v0 = vmax.f32 %v9344_v44, 0.0  ;;  %v6652_v4 = vld [vmem:[%s11876_s5 + $0xd0] sm:$0xf]  ;;  %v8091_v62 = vld [vmem:[%s11876_s5 + $0x134] sm:$0xf0] }
 0x24b   : > { %v2470_v25 = vmax.f32 %v9327_v63, 0.0  ;;  %v2370_v55 = vpop.f32.mrf.mxu2  ;;  %3343 = vmatpush.bf16.msra.mxu2 %v6733_v11  ;;  %v8103_v44 = vld [vmem:[%s11876_s5 + $0x194] sm:$0xf0] }
 0x24c   : > { %v2383_v12 = vpop.f32.mrf.mxu3  ;;  %v2394_v56 = vpop.f32.mrf.mxu0  ;;  %v8111_v55 = vld [vmem:[%s11876_s5 + $0x1d4] sm:$0xf0] }
 0x24d   : > { %v2407_v3 = vpop.f32.mrf.mxu1  ;;  %v8466_v29 = vpack.i.bf16 %v2470_v25, %v2469_v6  ;;  %v2441_v24 = vmul.f32 %v9195_v34, %v2394_v56  ;;  %v2051_v34 = vadd.f32 %v2043_v43, %v9307_v52  ;;  %v6789_v12 = vor.u32 %v8113_v18, %v6788_v26  ;;  %v6604_v56 = vld [vmem:[%s11876_s5 + $0x70] sm:$0xf]  ;;  %v6596_v43 = vld [vmem:[%s11876_s5 + $0x60] sm:$0xf] }
 0x24e   : > { %v2442_v16 = vmul.f32 %v9198_v5, %v2407_v3  ;;  %v2052_v5 = vadd.f32 %v2044_v21, %v9309_v59  ;;  %v8067_v3 = vld [vmem:[%s11876_s5 + $0x74] sm:$0xf0]  ;;  %v6700_v26 = vld [vmem:[%s11876_s5 + $0x130] sm:$0xf] }
 0x24f   : > { %8467 = vrot.lane.b32.xlu1 %v8466_v29, %s11889_s21  ;;  %v2449_v32 = vadd.f32 %v2441_v24, %v2245_v31  ;;  %v2247_v1 = vadd.f32 %v9313_v8, %v2051_v34  ;;  %v6668_v29 = vld [vmem:[%s11876_s5 + $0xf0] sm:$0xf]  ;;  %v6605_v31 = vor.u32 %v8067_v3, %v6604_v56  ;;  %3344 = vmatpush.bf16.msra.mxu2 %v6725_v28  ;;  %v8107_v28 = vld [vmem:[%s11876_s5 + $0x1b4] sm:$0xf0]  ;;  %v8077_v56 = vld [vmem:[%s11876_s5 + $0xc4] sm:$0xf0] }
 0x250   : > { %v2450_v35 = vadd.f32 %v2442_v16, %v2246_v36  ;;  %v2248_v51 = vadd.f32 %v9315_v42, %v2052_v5  ;;  %v8083_v36 = vld [vmem:[%s11876_s5 + $0xf4] sm:$0xf0]  ;;  %v6781_v34 = vor.u32 %v8111_v55, %v6780_v54  ;;  %v8065_v5 = vld [vmem:[%s11876_s5 + $0x64] sm:$0xf0]  ;;  %v6580_v54 = vld [vmem:[%s11876_s5 + $0x40] sm:$0xf]  ;;  %v6701_v3 = vor.u32 %v8091_v62, %v6700_v26 }
 0x251   : > { %v9346_v27 = vadd.f32 %v2457_v61, %v2449_v32  ;;  %v6669_v16 = vor.u32 %v8083_v36, %v6668_v29  ;;  %3317 = vmatpush.bf16.msra.mxu0 %v6605_v31  ;;  %v8061_v55 = vld [vmem:[%s11876_s5 + $0x44] sm:$0xf0]  ;;  %v6988_v62 = vld [vmem:[%s11876_s5 + $0x370] sm:$0xf] }
 0x252   : > { %v9348_v33 = vadd.f32 %v2457_v61, %v2450_v35  ;;  %v6717_v35 = vor.u32 %v8095_v48, %v6716_v46  ;;  %v6764_v46 = vld [vmem:[%s11876_s5 + $0x1b0] sm:$0xf]  ;;  %v8101_v26 = vld [vmem:[%s11876_s5 + $0x184] sm:$0xf0] }
 0x253   : > { %v2471_v9 = vmax.f32 %v9346_v27, 0.0  ;;  %v2420_v49 = vpop.f32.mrf.mxu2  ;;  %3330 = vmatpush.bf16.msra.mxu1 %v6669_v16  ;;  %v6765_v16 = vor.u32 %v8107_v28, %v6764_v46  ;;  %v8087_v27 = vld [vmem:[%s11876_s5 + $0x114] sm:$0xf0]  ;;  %v6556_v28 = vld [vmem:[%s11876_s5 + $0x10] sm:$0xf] }
 0x254   : > { %v2472_v10 = vmax.f32 %v9348_v33, 0.0  ;;  %v2433_v13 = vpop.f32.mrf.mxu3  ;;  %v2443_v50 = vmul.f32 %v9225_v38, %v2420_v49  ;;  %v2396_v59 = vpop.f32.mrf.mxu0  ;;  %v6660_v49 = vld [vmem:[%s11876_s5 + $0xe0] sm:$0xf]  ;;  %3345 = vmatpush.bf16.msra.mxu2 %v6717_v35  ;;  %v8179_v46 = vld [vmem:[%s11876_s5 + $0x3f4] sm:$0xf0] }
 0x255   : > { %v2444_v52 = vmul.f32 %v9228_v40, %v2433_v13  ;;  %v2409_v2 = vpop.f32.mrf.mxu1  ;;  %v8471_v19 = vpack.i.bf16 %v2467_v0, %v2471_v9  ;;  %v8081_v13 = vld [vmem:[%s11876_s5 + $0xe4] sm:$0xf0]  ;;  %v6597_v59 = vor.u32 %v8065_v5, %v6596_v43  ;;  %v6692_v43 = vld [vmem:[%s11876_s5 + $0x120] sm:$0xf]  ;;  %v6572_v5 = vld [vmem:[%s11876_s5 + $0x30] sm:$0xf] }
 0x256   : > { %v8476_v20 = vpack.i.bf16 %v2472_v10, %v2468_v41  ;;  %v2451_v45 = vadd.f32 %v2443_v50, %v2247_v1  ;;  %v6708_v50 = vld [vmem:[%s11876_s5 + $0x140] sm:$0xf] }
 0x257   : > { %v2452_v8 = vadd.f32 %v2444_v52, %v2248_v51  ;;  %8472 = vrot.lane.b32.xlu2 %v8471_v19, %s11889_s21  ;;  %v8093_v52 = vld [vmem:[%s11876_s5 + $0x144] sm:$0xf0]  ;;  %v6772_v2 = vld [vmem:[%s11876_s5 + $0x1c0] sm:$0xf]  ;;  %3318 = vmatpush.bf16.msra.mxu0 %v6597_v59 }
 0x258   : > { %8477 = vrot.lane.b32.xlu1 %v8476_v20, %s11889_s21  ;;  %v9370_v38 = vadd.f32 %v2457_v61, %v2451_v45  ;;  %v6661_v20 = vor.u32 %v8081_v13, %v6660_v49  ;;  %v6709_v60 = vor.u32 %v8093_v52, %v6708_v50  ;;  %v8059_v49 = vld [vmem:[%s11876_s5 + $0x34] sm:$0xf0]  ;;  %v6636_v13 = vld [vmem:[%s11876_s5 + $0xb0] sm:$0xf] }
 0x259   : > { %v9372_v40 = vadd.f32 %v2457_v61, %v2452_v8  ;;  %v6797_v61 = vor.u32 %v8115_v14, %v6796_v17  ;;  %v8109_v8 = vld [vmem:[%s11876_s5 + $0x1c4] sm:$0xf0]  ;;  %v8079_v17 = vld [vmem:[%s11876_s5 + $0xd4] sm:$0xf0] }
 0x25a   : > { %v2473_v42 = vmax.f32 %v9370_v38, 0.0  ;;  %3331 = vmatpush.bf16.msra.mxu1 %v6661_v20  ;;  %v6653_v48 = vor.u32 %v8079_v17, %v6652_v4  ;;  %3346 = vmatpush.bf16.msra.mxu2 %v6709_v60  ;;  %v6749_v17 = vor.u32 %v8103_v44, %v6748_v30  ;;  %v8085_v60 = vld [vmem:[%s11876_s5 + $0x104] sm:$0xf0]  ;;  %v8147_v30 = vld [vmem:[%s11876_s5 + $0x2f4] sm:$0xf0] }
 0x25b   : > { %v2474_v22 = vmax.f32 %v9372_v40, 0.0  ;;  %v2422_v53 = vpop.f32.mrf.mxu2  ;;  %3356 = vmatpush.bf16.msra.mxu3 %v6797_v61  ;;  %v6773_v61 = vor.u32 %v8109_v8, %v6772_v2  ;;  %v6756_v40 = vld [vmem:[%s11876_s5 + $0x1a0] sm:$0xf] }
 0x25c   : > { %v2435_v57 = vpop.f32.mrf.mxu3  ;;  %v6588_v53 = vld [vmem:[%s11876_s5 + $0x50] sm:$0xf] }
 0x25d   : > { %v8481_v58 = vpack.i.bf16 %v2474_v22, %v2473_v42  ;;  %v8063_v57 = vld [vmem:[%s11876_s5 + $0x54] sm:$0xf0] }
 0x25e   : > { %3332 = vmatpush.bf16.msra.mxu1 %v6653_v48  ;;  %3347 = vmatpush.bf16.msra.mxu2 %v6701_v3 }
 0x25f   : > { %8482 = vrot.lane.b32.xlu2 %v8481_v58, %s11889_s21  ;;  %3357 = vmatpush.bf16.msra.mxu3 %v6789_v12  ;;  %v6644_v12 = vld [vmem:[%s11876_s5 + $0xc0] sm:$0xf]  ;;  %s8598_s21 = smov 16  }
 0x263   : > { %3358 = vmatpush.bf16.msra.mxu3 %v6781_v34  ;;  %v6645_v34 = vor.u32 %v8077_v56, %v6644_v12  ;;  %v6620_v12 = vld [vmem:[%s11876_s5 + $0x90] sm:$0xf]  ;;  %v8071_v56 = vld [vmem:[%s11876_s5 + $0x94] sm:$0xf0] }
 0x265   : > { %3333 = vmatpush.bf16.msra.mxu1 %v6645_v34  ;;  %v7036_v34 = vld [vmem:[%s11876_s5 + $0x3d0] sm:$0xf] }
 0x267   : > { %3359 = vmatpush.bf16.msra.mxu3 %v6773_v61  ;;  %v6740_v61 = vld [vmem:[%s11876_s5 + $0x180] sm:$0xf] }
 0x268   : > { %v6741_v3 = vor.u32 %v8101_v26, %v6740_v61  ;;  %v8145_v61 = vld [vmem:[%s11876_s5 + $0x2e4] sm:$0xf0]  ;;  %v6956_v26 = vld [vmem:[%s11876_s5 + $0x330] sm:$0xf] }
 0x26b   : > { %3360 = vmatpush.bf16.msra.mxu3 %v6765_v16 }
 0x2b1   : > { %v9381_v39 = vpop.permute.xlu2 %8472 }
 0x2b2   : > { %v8474_v21 = vunpack.i.l.bf16 %v9381_v39  ;;  %v8475_v11 = vunpack.i.h.bf16 %v9381_v39  ;;  %v6684_v39 = vld [vmem:[%s11876_s5 + $0x110] sm:$0xf] }
 0x2b3   : > { %v6685_v4 = vor.u32 %v8087_v27, %v6684_v39  ;;  %v8131_v27 = vld [vmem:[%s11876_s5 + $0x274] sm:$0xf0] }
 0x2b9   : > { %v9432_v24 = vpop.permute.xlu2 %8482 }
 0x2ba   : > { %v8485_v19 = vunpack.i.h.bf16 %v9432_v24  ;;  %v8484_v45 = vunpack.i.l.bf16 %v9432_v24 }
 0x2bc   : > { %v2492_v63 = vsel %vm2491_vm0, %v8484_v45, %v8485_v19 }
 0x2bd   : > { %v9529_v31 = vmax.f32 %v2473_v42, %v2492_v63  ;;  %v8105_v42 = vld [vmem:[%s11876_s5 + $0x1a4] sm:$0xf0] }
 0x2be   : > { %v6757_v8 = vor.u32 %v8105_v42, %v6756_v40  ;;  %v6621_v40 = vor.u32 %v8071_v56, %v6620_v12  ;;  %v6972_v42 = vld [vmem:[%s11876_s5 + $0x350] sm:$0xf]  ;;  %v6948_v12 = vld [vmem:[%s11876_s5 + $0x320] sm:$0xf]  ;;  %v8153_v56 = vld [vmem:[%s11876_s5 + $0x324] sm:$0xf0] }
 0x2c0   : > { %3361 = vmatpush.bf16.msra.mxu3 %v6757_v8  ;;  %v6860_v8 = vld [vmem:[%s11876_s5 + $0x270] sm:$0xf] }
 0x2c1   : > { %v9438_v32 = vpop.permute.xlu1 %8467  ;;  %v6861_v44 = vor.u32 %v8131_v27, %v6860_v8  ;;  %v8139_v8 = vld [vmem:[%s11876_s5 + $0x2b4] sm:$0xf0]  ;;  %v6932_v27 = vld [vmem:[%s11876_s5 + $0x300] sm:$0xf] }
 0x2c2   : > { %v8470_v1 = vunpack.i.h.bf16 %v9438_v32  ;;  %v8469_v51 = vunpack.i.l.bf16 %v9438_v32  ;;  %v8089_v32 = vld [vmem:[%s11876_s5 + $0x124] sm:$0xf0] }
 0x2c3   : > { %v6693_v59 = vor.u32 %v8089_v32, %v6692_v43  ;;  %v8161_v43 = vld [vmem:[%s11876_s5 + $0x364] sm:$0xf0]  ;;  %v7044_v32 = vld [vmem:[%s11876_s5 + $0x3e0] sm:$0xf] }
 0x2c4   : > { %v2495_v58 = vsel %vm2491_vm0, %v8470_v1, %v8474_v21  ;;  %v2496_v7 = vsel %vm2491_vm0, %v8469_v51, %v8470_v1  ;;  %v8075_v1 = vld [vmem:[%s11876_s5 + $0xb4] sm:$0xf0]  ;;  %3362 = vmatpush.bf16.msra.mxu3 %v6749_v17 }
 0x2c5   : > { %v9486_v14 = vmax.f32 %v2469_v6, %v2496_v7  ;;  %v9490_v15 = vmax.f32 %v2470_v25, %v2495_v58  ;;  %v6589_v6 = vor.u32 %v8063_v57, %v6588_v53  ;;  %v2499_v25 = vsel %vm2491_vm0, %v8485_v19, %v8475_v11  ;;  %v8057_v57 = vld [vmem:[%s11876_s5 + $0x24] sm:$0xf0]  ;;  %v6628_v58 = vld [vmem:[%s11876_s5 + $0xa0] sm:$0xf]  ;;  %3348 = vmatpush.bf16.msra.mxu2 %v6693_v59 }
 0x2c6   : > { %v9533_v36 = vmax.f32 %v2474_v22, %v2499_v25  ;;  %v6581_v22 = vor.u32 %v8061_v55, %v6580_v54  ;;  %v8073_v7 = vld [vmem:[%s11876_s5 + $0xa4] sm:$0xf0]  ;;  %v8055_v55 = vld [vmem:[%s11876_s5 + $0x14] sm:$0xf0] }
 0x2c7   : > { %v8486_v18 = vpack.i.bf16 %v9490_v15, %v9486_v14  ;;  %3319 = vmatpush.bf16.msra.mxu0 %v6589_v6  ;;  %v8163_v6 = vld [vmem:[%s11876_s5 + $0x374] sm:$0xf0]  ;;  %v6629_v25 = vor.u32 %v8073_v7, %v6628_v58  ;;  %v8069_v59 = vld [vmem:[%s11876_s5 + $0x84] sm:$0xf0]  ;;  %v6852_v7 = vld [vmem:[%s11876_s5 + $0x260] sm:$0xf] }
 0x2c8   : > { %v6989_v24 = vor.u32 %v8163_v6, %v6988_v62  ;;  %3363 = vmatpush.bf16.msra.mxu3 %v6741_v3  ;;  %v8173_v58 = vld [vmem:[%s11876_s5 + $0x3c4] sm:$0xf0]  ;;  %v8155_v6 = vld [vmem:[%s11876_s5 + $0x334] sm:$0xf0] }
 0x2c9   : > { %8487 = vrot.lane.b32.xlu0 %v8486_v18, %s11904_s0  ;;  %v7052_v18 = vld [vmem:[%s11876_s5 + $0x3f0] sm:$0xf]  ;;  %3349 = vmatpush.bf16.msra.mxu2 %v6685_v4  ;;  %v8129_v4 = vld [vmem:[%s11876_s5 + $0x264] sm:$0xf0] }
 0x2ca   : > { %v9525_v29 = vpop.permute.xlu1 %8477 }
 0x2cb   : > { %v8480_v35 = vunpack.i.h.bf16 %v9525_v29  ;;  %v8479_v38 = vunpack.i.l.bf16 %v9525_v29  ;;  %3320 = vmatpush.bf16.msra.mxu0 %v6581_v22  ;;  %v7053_v29 = vor.u32 %v8179_v46, %v7052_v18  ;;  %v8159_v22 = vld [vmem:[%s11876_s5 + $0x354] sm:$0xf0]  ;;  %v6957_v18 = vor.u32 %v8155_v6, %v6956_v26  ;;  %v6804_v6 = vld [vmem:[%s11876_s5 + $0x200] sm:$0xf] }
 0x2cc   : > { %v8135_v26 = vld [vmem:[%s11876_s5 + $0x294] sm:$0xf0] }
 0x2cd   : > { %v2497_v50 = vsel %vm2491_vm0, %v8479_v38, %v8469_v51  ;;  %v2498_v52 = vsel %vm2491_vm0, %v8475_v11, %v8479_v38  ;;  %v2494_v2 = vsel %vm2491_vm0, %v8474_v21, %v8480_v35  ;;  %v6564_v21 = vld [vmem:[%s11876_s5 + $0x20] sm:$0xf]  ;;  %v2493_v48 = vsel %vm2491_vm0, %v8480_v35, %v8484_v45  ;;  %v8177_v35 = vld [vmem:[%s11876_s5 + $0x3e4] sm:$0xf0]  ;;  %3408 = vmatpush.bf16.msrb.mxu3 %v7053_v29 }
 0x2ce   : > { %v9571_v20 = vmax.f32 %v2471_v9, %v2494_v2  ;;  %v9575_v19 = vmax.f32 %v2467_v0, %v2498_v52  ;;  %v9579_v51 = vmax.f32 %v2468_v41, %v2497_v50  ;;  %v8496_v9 = vpack.i.bf16 %v9533_v36, %v9529_v31  ;;  %v6676_v11 = vld [vmem:[%s11876_s5 + $0x100] sm:$0xf] }
 0x2cf   : > { %v6573_v41 = vor.u32 %v8059_v49, %v6572_v5  ;;  %v6637_v0 = vor.u32 %v8075_v1, %v6636_v13  ;;  %v6565_v63 = vor.u32 %v8057_v57, %v6564_v21  ;;  %v6677_v54 = vor.u32 %v8085_v60, %v6676_v11  ;;  %v6980_v45 = vld [vmem:[%s11876_s5 + $0x360] sm:$0xf]  ;;  %v8175_v49 = vld [vmem:[%s11876_s5 + $0x3d4] sm:$0xf0]  ;;  %v8053_v1 = vld [vmem:[%s11876_s5 + $0x4] sm:$0xf0] }
 0x2d0   : > { %2516 = vrot.lane.b32.xlu2 %v9571_v20, %s11904_s0  ;;  %v8491_v53 = vpack.i.bf16 %v9579_v51, %v9575_v19  ;;  %v9658_v16 = vmax.f32 %v2472_v10, %v2493_v48  ;;  %v6557_v38 = vor.u32 %v8055_v55, %v6556_v28  ;;  %v6981_v33 = vor.u32 %v8161_v43, %v6980_v45  ;;  %v6548_v13 = vld [vmem:[%s11876_s5] sm:$0xf]  ;;  %v8157_v21 = vld [vmem:[%s11876_s5 + $0x344] sm:$0xf0]  ;;  %v6844_v28 = vld [vmem:[%s11876_s5 + $0x250] sm:$0xf] }
 0x2d1   : > { %8497 = vrot.lane.b32.xlu0 %v8496_v9, %s11904_s0  ;;  %3321 = vmatpush.bf16.msra.mxu0 %v6573_v41  ;;  %v7045_v10 = vor.u32 %v8177_v35, %v7044_v32  ;;  %v6973_v5 = vor.u32 %v8159_v22, %v6972_v42  ;;  %v7037_v50 = vor.u32 %v8175_v49, %v7036_v34  ;;  %v6612_v2 = vld [vmem:[%s11876_s5 + $0x80] sm:$0xf]  ;;  %v6924_v9 = vld [vmem:[%s11876_s5 + $0x2f0] sm:$0xf]  ;;  %v8127_v48 = vld [vmem:[%s11876_s5 + $0x254] sm:$0xf0] }
 0x2d2   : > { %8492 = vrot.lane.b32.xlu1 %v8491_v53, %s11904_s0  ;;  %3334 = vmatpush.bf16.msra.mxu1 %v6637_v0  ;;  %v6549_v52 = vor.u32 %v8053_v1, %v6548_v13  ;;  %v6613_v39 = vor.u32 %v8069_v59, %v6612_v2  ;;  %v6925_v41 = vor.u32 %v8147_v30, %v6924_v9  ;;  %v6964_v0 = vld [vmem:[%s11876_s5 + $0x340] sm:$0xf]  ;;  %v8143_v55 = vld [vmem:[%s11876_s5 + $0x2d4] sm:$0xf0]  ;;  %v8169_v45 = vld [vmem:[%s11876_s5 + $0x3a4] sm:$0xf0] }
 0x2d3   : > { %3350 = vmatpush.bf16.msra.mxu2 %v6677_v54  ;;  %3409 = vmatpush.bf16.msrb.mxu3 %v7045_v10  ;;  %v7028_v53 = vld [vmem:[%s11876_s5 + $0x3c0] sm:$0xf]  ;;  %v6965_v57 = vor.u32 %v8157_v21, %v6964_v0  ;;  %v6853_v11 = vor.u32 %v8129_v4, %v6852_v7  ;;  %v6908_v54 = vld [vmem:[%s11876_s5 + $0x2d0] sm:$0xf]  ;;  %v6845_v3 = vor.u32 %v8127_v48, %v6844_v28  ;;  %v8141_v10 = vld [vmem:[%s11876_s5 + $0x2c4] sm:$0xf0] }
 0x2d4   : > { %v7029_v17 = vor.u32 %v8173_v58, %v7028_v53  ;;  %v6916_v60 = vld [vmem:[%s11876_s5 + $0x2e0] sm:$0xf]  ;;  %v6949_v43 = vor.u32 %v8153_v56, %v6948_v12  ;;  %v6940_v22 = vld [vmem:[%s11876_s5 + $0x310] sm:$0xf]  ;;  %v8151_v34 = vld [vmem:[%s11876_s5 + $0x314] sm:$0xf0] }
 0x2d5   : > { %3322 = vmatpush.bf16.msra.mxu0 %v6565_v63  ;;  %v6917_v62 = vor.u32 %v8145_v61, %v6916_v60  ;;  %v7020_v63 = vld [vmem:[%s11876_s5 + $0x3b0] sm:$0xf]  ;;  %v7012_v29 = vld [vmem:[%s11876_s5 + $0x3a0] sm:$0xf]  ;;  %v6941_v49 = vor.u32 %v8151_v34, %v6940_v22  ;;  %v8167_v13 = vld [vmem:[%s11876_s5 + $0x394] sm:$0xf0] }
 0x2d6   : > { %3335 = vmatpush.bf16.msra.mxu1 %v6629_v25  ;;  %v8171_v25 = vld [vmem:[%s11876_s5 + $0x3b4] sm:$0xf0]  ;;  %v7013_v32 = vor.u32 %v8169_v45, %v7012_v29  ;;  %v6836_v35 = vld [vmem:[%s11876_s5 + $0x240] sm:$0xf]  ;;  %v6892_v2 = vld [vmem:[%s11876_s5 + $0x2b0] sm:$0xf] }
 0x2d7   : > { %3395 = vmatpush.bf16.msrb.mxu2 %v6989_v24  ;;  %3410 = vmatpush.bf16.msrb.mxu3 %v7037_v50  ;;  %v7021_v46 = vor.u32 %v8171_v25, %v7020_v63  ;;  %v6909_v24 = vor.u32 %v8143_v55, %v6908_v54  ;;  %v6828_v50 = vld [vmem:[%s11876_s5 + $0x230] sm:$0xf]  ;;  %v8149_v9 = vld [vmem:[%s11876_s5 + $0x304] sm:$0xf0]  ;;  %v6996_v30 = vld [vmem:[%s11876_s5 + $0x380] sm:$0xf] }
 0x2d8   : > { %v6820_v21 = vld [vmem:[%s11876_s5 + $0x220] sm:$0xf]  ;;  %v8121_v53 = vld [vmem:[%s11876_s5 + $0x224] sm:$0xf0]  ;;  %v6876_v61 = vld [vmem:[%s11876_s5 + $0x290] sm:$0xf] }
 0x2d9   : > { %3323 = vmatpush.bf16.msra.mxu0 %v6557_v38  ;;  %v8125_v38 = vld [vmem:[%s11876_s5 + $0x244] sm:$0xf0]  ;;  %v6821_v58 = vor.u32 %v8121_v53, %v6820_v21  ;;  %v8098_v12 = vld [vmem:[%s11876_s5 + $0x174] sm:$0xf]  ;;  %v6798_v29 = vld [vmem:[%s11876_s5 + $0x1f8] sm:$0xf0] }
 0x2da   : > { %2518 = vrot.lane.b32.xlu1 %v9658_v16, %s11904_s0  ;;  %3336 = vmatpush.bf16.msra.mxu1 %v6621_v40  ;;  %v6900_v40 = vld [vmem:[%s11876_s5 + $0x2c0] sm:$0xf]  ;;  %v8137_v7 = vld [vmem:[%s11876_s5 + $0x2a4] sm:$0xf0]  ;;  %v6726_v22 = vld [vmem:[%s11876_s5 + $0x168] sm:$0xf0] }
 0x2db   : > { %3396 = vmatpush.bf16.msrb.mxu2 %v6981_v33  ;;  %3411 = vmatpush.bf16.msrb.mxu3 %v7029_v17  ;;  %v6837_v33 = vor.u32 %v8125_v38, %v6836_v35  ;;  %v6901_v42 = vor.u32 %v8141_v10, %v6900_v40  ;;  %v6812_v17 = vld [vmem:[%s11876_s5 + $0x210] sm:$0xf]  ;;  %v8117_v63 = vld [vmem:[%s11876_s5 + $0x204] sm:$0xf0]  ;;  %s431_s0 = sand.u32 1, %s8576_s26  }
 0x2dc   : > { %v6805_v25 = vor.u32 %v8117_v63, %v6804_v6  ;;  %v8064_v63 = vld [vmem:[%s11876_s5 + $0x64] sm:$0xf] }
 0x2dd   : > { %3324 = vmatpush.bf16.msra.mxu0 %v6549_v52  ;;  %v8123_v52 = vld [vmem:[%s11876_s5 + $0x234] sm:$0xf0] }
 0x2de   : > { %3337 = vmatpush.bf16.msra.mxu1 %v6613_v39  ;;  %v6829_v59 = vor.u32 %v8123_v52, %v6828_v50  ;;  %v6893_v39 = vor.u32 %v8139_v8, %v6892_v2  ;;  %v6718_v50 = vld [vmem:[%s11876_s5 + $0x158] sm:$0xf0] }
 0x2df   : > { %3397 = vmatpush.bf16.msrb.mxu2 %v6973_v5  ;;  %3412 = vmatpush.bf16.msrb.mxu3 %v7021_v46  ;;  %v7004_v5 = vld [vmem:[%s11876_s5 + $0x390] sm:$0xf]  ;;  %v8133_v46 = vld [vmem:[%s11876_s5 + $0x284] sm:$0xf0]  ;;  %v6782_v8 = vld [vmem:[%s11876_s5 + $0x1d8] sm:$0xf0] }
 0x2e0   : > { %v7005_v1 = vor.u32 %v8167_v13, %v7004_v5 }
 0x2e1   : > { %3369 = vmatpush.bf16.msrb.mxu0 %v6861_v44  ;;  %v6933_v44 = vor.u32 %v8149_v9, %v6932_v27 }
 0x2e2   : > { %3382 = vmatpush.bf16.msrb.mxu1 %v6925_v41  ;;  %v8165_v41 = vld [vmem:[%s11876_s5 + $0x384] sm:$0xf0] }
 0x2e3   : > { %3398 = vmatpush.bf16.msrb.mxu2 %v6965_v57  ;;  %3413 = vmatpush.bf16.msrb.mxu3 %v7013_v32  ;;  %v6997_v0 = vor.u32 %v8165_v41, %v6996_v30  ;;  %v6884_v57 = vld [vmem:[%s11876_s5 + $0x2a0] sm:$0xf]  ;;  %v6606_v30 = vld [vmem:[%s11876_s5 + $0x78] sm:$0xf0] }
 0x2e4   : > { %v6885_v4 = vor.u32 %v8137_v7, %v6884_v57  ;;  %v6670_v41 = vld [vmem:[%s11876_s5 + $0xf8] sm:$0xf0] }
 0x2e5   : > { %3370 = vmatpush.bf16.msrb.mxu0 %v6853_v11  ;;  %v8119_v11 = vld [vmem:[%s11876_s5 + $0x214] sm:$0xf0] }
 0x2e6   : > { %3383 = vmatpush.bf16.msrb.mxu1 %v6917_v62  ;;  %v6813_v60 = vor.u32 %v8119_v11, %v6812_v17  ;;  %v6877_v62 = vor.u32 %v8135_v26, %v6876_v61  ;;  %v8108_v61 = vld [vmem:[%s11876_s5 + $0x1c4] sm:$0xf] }
 0x2e7   : > { %3399 = vmatpush.bf16.msrb.mxu2 %v6957_v18  ;;  %3414 = vmatpush.bf16.msrb.mxu3 %v7005_v1  ;;  %v6868_v18 = vld [vmem:[%s11876_s5 + $0x280] sm:$0xf]  ;;  %v8094_v1 = vld [vmem:[%s11876_s5 + $0x154] sm:$0xf] }
 0x2e8   : > { %v6869_v28 = vor.u32 %v8133_v46, %v6868_v18  ;;  %v6721_v53 = vor.u32 %v8094_v1, %v6718_v50  ;;  %v8080_v18 = vld [vmem:[%s11876_s5 + $0xe4] sm:$0xf]  ;;  %v6662_v46 = vld [vmem:[%s11876_s5 + $0xe8] sm:$0xf0] }
 0x2e9   : > { %3371 = vmatpush.bf16.msrb.mxu0 %v6845_v3  ;;  %v6734_v3 = vld [vmem:[%s11876_s5 + $0x178] sm:$0xf0] }
 0x2ea   : > { %3384 = vmatpush.bf16.msrb.mxu1 %v6909_v24  ;;  %v8114_v24 = vld [vmem:[%s11876_s5 + $0x1f4] sm:$0xf]  ;;  %v6737_v38 = vor.u32 %v8098_v12, %v6734_v3  ;;  %v6702_v3 = vld [vmem:[%s11876_s5 + $0x138] sm:$0xf0] }
 0x2eb   : > { %3400 = vmatpush.bf16.msrb.mxu2 %v6949_v43  ;;  %3415 = vmatpush.bf16.msrb.mxu3 %v6997_v0  ;;  %v6801_v40 = vor.u32 %v8114_v24, %v6798_v29  ;;  %v8106_v24 = vld [vmem:[%s11876_s5 + $0x1b4] sm:$0xf]  ;;  %v6766_v29 = vld [vmem:[%s11876_s5 + $0x1b8] sm:$0xf0] }
 0x2ed   : > { %3372 = vmatpush.bf16.msrb.mxu0 %v6837_v33  ;;  %v8096_v33 = vld [vmem:[%s11876_s5 + $0x164] sm:$0xf] }
 0x2ee   : > { %3385 = vmatpush.bf16.msrb.mxu1 %v6901_v42 }
 0x2ef   : > { %3401 = vmatpush.bf16.msrb.mxu2 %v6941_v49  ;;  %v6729_v49 = vor.u32 %v8096_v33, %v6726_v22  ;;  %v8088_v33 = vld [vmem:[%s11876_s5 + $0x124] sm:$0xf]  ;;  %v6694_v22 = vld [vmem:[%s11876_s5 + $0x128] sm:$0xf0] }
 0x2f1   : > { %3373 = vmatpush.bf16.msrb.mxu0 %v6829_v59  ;;  %v8110_v59 = vld [vmem:[%s11876_s5 + $0x1d4] sm:$0xf] }
 0x2f2   : > { %3386 = vmatpush.bf16.msrb.mxu1 %v6893_v39  ;;  %v8066_v39 = vld [vmem:[%s11876_s5 + $0x74] sm:$0xf]  ;;  %v6785_v7 = vor.u32 %v8110_v59, %v6782_v8  ;;  %v6582_v59 = vld [vmem:[%s11876_s5 + $0x48] sm:$0xf0]  ;;  %v8076_v8 = vld [vmem:[%s11876_s5 + $0xc4] sm:$0xf] }
 0x2f3   : > { %3402 = vmatpush.bf16.msrb.mxu2 %v6933_v44  ;;  %v8082_v44 = vld [vmem:[%s11876_s5 + $0xf4] sm:$0xf]  ;;  %v6609_v17 = vor.u32 %v8066_v39, %v6606_v30  ;;  %v6646_v39 = vld [vmem:[%s11876_s5 + $0xc8] sm:$0xf0] }
 0x2f4   : > { %v6673_v11 = vor.u32 %v8082_v44, %v6670_v41  ;;  %v8086_v41 = vld [vmem:[%s11876_s5 + $0x114] sm:$0xf] }
 0x2f5   : > { %3374 = vmatpush.bf16.msrb.mxu0 %v6821_v58 }
 0x2f6   : > { %3387 = vmatpush.bf16.msrb.mxu1 %v6885_v4  ;;  %v8092_v4 = vld [vmem:[%s11876_s5 + $0x144] sm:$0xf] }
 0x2f9   : > { %3375 = vmatpush.bf16.msrb.mxu0 %v6813_v60  ;;  %v6710_v60 = vld [vmem:[%s11876_s5 + $0x148] sm:$0xf0] }
 0x2fa   : > { %3388 = vmatpush.bf16.msrb.mxu1 %v6877_v62 }
 0x2fd   : > { %3376 = vmatpush.bf16.msrb.mxu0 %v6805_v25  ;;  %v6598_v25 = vld [vmem:[%s11876_s5 + $0x68] sm:$0xf0] }
 0x2fe   : > { %3389 = vmatpush.bf16.msrb.mxu1 %v6869_v28  ;;  %v6713_v28 = vor.u32 %v8092_v4, %v6710_v60  ;;  %v8074_v4 = vld [vmem:[%s11876_s5 + $0xb4] sm:$0xf] }
 0x32a   : > { %v9855_v56 = vpop.permute.xlu2 %2516 }
 0x33b   : > { %v8488_v48 = vpop.permute.xlu0 %8487 }
 0x33c   : > { %v8490_v54 = vunpack.i.h.bf16 %v8488_v48  ;;  %v8489_v55 = vunpack.i.l.bf16 %v8488_v48 }
 0x33e   : > { %v2528_v45 = vsel %vm2524_vm13, %v8490_v54, %v9855_v56  ;;  %v2529_v43 = vsel %vm2524_vm13, %v8489_v55, %v8490_v54  ;;  %v8090_v54 = vld [vmem:[%s11876_s5 + $0x134] sm:$0xf] }
 0x33f   : > { %v2535_v32 = vmax.f32 %v9486_v14, %v2529_v43  ;;  %v2536_v35 = vmax.f32 %v9490_v15, %v2528_v45  ;;  %v8112_v14 = vld [vmem:[%s11876_s5 + $0x1e4] sm:$0xf]  ;;  %v6790_v15 = vld [vmem:[%s11876_s5 + $0x1e8] sm:$0xf0]  ;;  %v8062_v45 = vld [vmem:[%s11876_s5 + $0x54] sm:$0xf] }
 0x340   : > { %v6793_v13 = vor.u32 %v8112_v14, %v6790_v15  ;;  %v6590_v43 = vld [vmem:[%s11876_s5 + $0x58] sm:$0xf0] }
 0x341   : > { %v9876_v10 = vpack.c.bf16 %v2535_v32, %v2535_v32  ;;  %v9878_v42 = vpack.c.bf16 %v2536_v35, %v2536_v35  ;;  %v8078_v32 = vld [vmem:[%s11876_s5 + $0xd4] sm:$0xf]  ;;  %v6654_v35 = vld [vmem:[%s11876_s5 + $0xd8] sm:$0xf0]  ;;  %v6593_v1 = vor.u32 %v8062_v45, %v6590_v43  ;;  %v8160_v45 = vld [vmem:[%s11876_s5 + $0x364] sm:$0xf] }
 0x342   : > { %v6657_v50 = vor.u32 %v8078_v32, %v6654_v35  ;;  %v6982_v43 = vld [vmem:[%s11876_s5 + $0x368] sm:$0xf0] }
 0x343   : > { %v9889_v34 = vpop.permute.xlu0 %8497  ;;  %3351 = vmatmul.bf16.vlgmr.msra.gmra.mxu2 %v9876_v10  ;;  %3364 = vmatmul.bf16.vlgmr.msra.gmra.mxu3 %v9878_v42 }
 0x344   : > { %3447 = vmatpush.bf16.msra.mxu2 %v6737_v38  ;;  %3460 = vmatpush.bf16.msra.mxu3 %v6801_v40  ;;  %v8493_v5 = vpop.permute.xlu1 %8492  ;;  %v8500_v27 = vunpack.i.h.bf16 %v9889_v34  ;;  %v8499_v9 = vunpack.i.l.bf16 %v9889_v34  ;;  %v6705_v38 = vor.u32 %v8090_v54, %v6702_v3  ;;  %v6769_v40 = vor.u32 %v8106_v24, %v6766_v29  ;;  %v8102_v34 = vld [vmem:[%s11876_s5 + $0x194] sm:$0xf]  ;;  %v6630_v3 = vld [vmem:[%s11876_s5 + $0xa8] sm:$0xf0] }
 0x345   : > { %v8495_v52 = vunpack.i.h.bf16 %v8493_v5  ;;  %v8494_v2 = vunpack.i.l.bf16 %v8493_v5 }
 0x347   : > { %v2530_v0 = vsel %vm2524_vm13, %v8495_v52, %v8489_v55  ;;  %v2531_v21 = vsel %vm2524_vm13, %v8494_v2, %v8495_v52  ;;  %v2532_v26 = vsel %vm2524_vm13, %v8500_v27, %v8494_v2  ;;  %v8060_v52 = vld [vmem:[%s11876_s5 + $0x44] sm:$0xf]  ;;  %v6697_v2 = vor.u32 %v8088_v33, %v6694_v22  ;;  %v8054_v33 = vld [vmem:[%s11876_s5 + $0x14] sm:$0xf]  ;;  %v6558_v22 = vld [vmem:[%s11876_s5 + $0x18] sm:$0xf0] }
 0x348   : > { %v2533_v57 = vmax.f32 %v9575_v19, %v2531_v21  ;;  %v2534_v58 = vmax.f32 %v9579_v51, %v2530_v0  ;;  %3448 = vmatpush.bf16.msra.mxu2 %v6729_v49  ;;  %3461 = vmatpush.bf16.msra.mxu3 %v6793_v13  ;;  %v6774_v19 = vld [vmem:[%s11876_s5 + $0x1c8] sm:$0xf0]  ;;  %v2525_v51 = vsel %vm2524_vm13, %v8499_v9, %v8500_v27  ;;  %v8104_v49 = vld [vmem:[%s11876_s5 + $0x1a4] sm:$0xf]  ;;  %v6686_v0 = vld [vmem:[%s11876_s5 + $0x118] sm:$0xf0] }
 0x349   : > { %v6777_v48 = vor.u32 %v8108_v61, %v6774_v19  ;;  %v2539_v55 = vmax.f32 %v9529_v31, %v2525_v51  ;;  %v2540_v12 = vmax.f32 %v9533_v36, %v2532_v26  ;;  %v6601_v31 = vor.u32 %v8064_v63, %v6598_v25  ;;  %v6758_v13 = vld [vmem:[%s11876_s5 + $0x1a8] sm:$0xf0]  ;;  %v8100_v61 = vld [vmem:[%s11876_s5 + $0x184] sm:$0xf]  ;;  %v8162_v51 = vld [vmem:[%s11876_s5 + $0x374] sm:$0xf] }
 0x34a   : > { %v9943_v62 = vpack.c.bf16 %v2533_v57, %v2533_v57  ;;  %v9945_v6 = vpack.c.bf16 %v2534_v58, %v2534_v58  ;;  %v6665_v36 = vor.u32 %v8080_v18, %v6662_v46  ;;  %v6761_v44 = vor.u32 %v8104_v49, %v6758_v13  ;;  %v6742_v19 = vld [vmem:[%s11876_s5 + $0x188] sm:$0xf0]  ;;  %v6990_v26 = vld [vmem:[%s11876_s5 + $0x378] sm:$0xf0]  ;;  %v8178_v18 = vld [vmem:[%s11876_s5 + $0x3f4] sm:$0xf] }
 0x34b   : > { %v9993_v14 = vpack.c.bf16 %v2539_v55, %v2539_v55  ;;  %v9995_v15 = vpack.c.bf16 %v2540_v12, %v2540_v12  ;;  %v6649_v21 = vor.u32 %v8076_v8, %v6646_v39  ;;  %v7054_v46 = vld [vmem:[%s11876_s5 + $0x3f8] sm:$0xf0]  ;;  %v6566_v55 = vld [vmem:[%s11876_s5 + $0x28] sm:$0xf0]  ;;  %v8072_v12 = vld [vmem:[%s11876_s5 + $0xa4] sm:$0xf]  ;;  %v6745_v29 = vor.u32 %v8100_v61, %v6742_v19 }
 0x34c   : > { %3449 = vmatpush.bf16.msra.mxu2 %v6721_v53  ;;  %3462 = vmatpush.bf16.msra.mxu3 %v6785_v7  ;;  %v2519_v5 = vpop.permute.xlu1 %2518  ;;  %v8058_v53 = vld [vmem:[%s11876_s5 + $0x34] sm:$0xf]  ;;  %v6574_v7 = vld [vmem:[%s11876_s5 + $0x38] sm:$0xf0]  ;;  %v6633_v35 = vor.u32 %v8072_v12, %v6630_v3  ;;  %v6985_v13 = vor.u32 %v8160_v45, %v6982_v43  ;;  %v6918_v61 = vld [vmem:[%s11876_s5 + $0x2e8] sm:$0xf0] }
 0x34d   : > { %3325 = vmatmul.bf16.vlgmr.msra.gmra.mxu0 %v9943_v62  ;;  %3338 = vmatmul.bf16.vlgmr.msra.gmra.mxu1 %v9945_v6  ;;  %v2526_v27 = vsel %vm2524_vm13, %v2519_v5, %v8499_v9  ;;  %v2527_v30 = vsel %vm2524_vm13, %v9855_v56, %v2519_v5  ;;  %v6750_v9 = vld [vmem:[%s11876_s5 + $0x198] sm:$0xf0]  ;;  %v6585_v56 = vor.u32 %v8060_v52, %v6582_v59  ;;  %v8070_v5 = vld [vmem:[%s11876_s5 + $0x94] sm:$0xf]  ;;  %v6950_v45 = vld [vmem:[%s11876_s5 + $0x328] sm:$0xf0] }
 0x34e   : > { %3421 = vmatpush.bf16.msra.mxu0 %v6609_v17  ;;  %3434 = vmatpush.bf16.msra.mxu1 %v6673_v11  ;;  %v2537_v57 = vmax.f32 %v9571_v20, %v2527_v30  ;;  %v2538_v58 = vmax.f32 %v9658_v16, %v2526_v27  ;;  %v6638_v17 = vld [vmem:[%s11876_s5 + $0xb8] sm:$0xf0]  ;;  %v6689_v11 = vor.u32 %v8086_v41, %v6686_v0  ;;  %v8084_v20 = vld [vmem:[%s11876_s5 + $0x104] sm:$0xf]  ;;  %v6678_v16 = vld [vmem:[%s11876_s5 + $0x108] sm:$0xf0] }
 0x34f   : > { %v6753_v60 = vor.u32 %v8102_v34, %v6750_v9  ;;  %v6577_v63 = vor.u32 %v8058_v53, %v6574_v7  ;;  %v6641_v25 = vor.u32 %v8074_v4, %v6638_v17  ;;  %v6681_v24 = vor.u32 %v8084_v20, %v6678_v16  ;;  %v6622_v49 = vld [vmem:[%s11876_s5 + $0x98] sm:$0xf0]  ;;  %v8052_v27 = vld [vmem:[%s11876_s5 + $0x4] sm:$0xf]  ;;  %v6550_v30 = vld [vmem:[%s11876_s5 + $0x8] sm:$0xf0] }
 0x350   : > { %3450 = vmatpush.bf16.msra.mxu2 %v6713_v28  ;;  %3463 = vmatpush.bf16.msra.mxu3 %v6777_v48  ;;  %v8056_v28 = vld [vmem:[%s11876_s5 + $0x24] sm:$0xf]  ;;  %v10077_v48 = vpack.c.bf16 %v2537_v57, %v2537_v57  ;;  %v10079_v54 = vpack.c.bf16 %v2538_v58, %v2538_v58  ;;  %v6974_v52 = vld [vmem:[%s11876_s5 + $0x358] sm:$0xf0]  ;;  %v6561_v59 = vor.u32 %v8054_v33, %v6558_v22  ;;  %v6614_v41 = vld [vmem:[%s11876_s5 + $0x88] sm:$0xf0] }
 0x351   : > { %v6569_v32 = vor.u32 %v8056_v28, %v6566_v55  ;;  %v6625_v8 = vor.u32 %v8070_v5, %v6622_v49  ;;  %v7038_v39 = vld [vmem:[%s11876_s5 + $0x3d8] sm:$0xf0]  ;;  %v8130_v0 = vld [vmem:[%s11876_s5 + $0x274] sm:$0xf]  ;;  %v6553_v53 = vor.u32 %v8052_v27, %v6550_v30  ;;  %v6966_v58 = vld [vmem:[%s11876_s5 + $0x348] sm:$0xf0] }
 0x352   : > { %3422 = vmatpush.bf16.msra.mxu0 %v6601_v31  ;;  %3435 = vmatpush.bf16.msra.mxu1 %v6665_v36  ;;  %v6993_v31 = vor.u32 %v8162_v51, %v6990_v26  ;;  %v7057_v36 = vor.u32 %v8178_v18, %v7054_v46  ;;  %v6862_v34 = vld [vmem:[%s11876_s5 + $0x278] sm:$0xf0]  ;;  %v8172_v7 = vld [vmem:[%s11876_s5 + $0x3c4] sm:$0xf]  ;;  %v7030_v4 = vld [vmem:[%s11876_s5 + $0x3c8] sm:$0xf0] }
 0x353   : > { %3403 = vmatmul.bf16.vlgmr.msrb.gmra.mxu2 %v9993_v14  ;;  %3416 = vmatmul.bf16.vlgmr.msrb.gmra.mxu3 %v9995_v15  ;;  %v6865_v17 = vor.u32 %v8130_v0, %v6862_v34  ;;  %v6854_v20 = vld [vmem:[%s11876_s5 + $0x268] sm:$0xf0]  ;;  %v8144_v16 = vld [vmem:[%s11876_s5 + $0x2e4] sm:$0xf]  ;;  %v7033_v51 = vor.u32 %v8172_v7, %v7030_v4  ;;  %v8154_v26 = vld [vmem:[%s11876_s5 + $0x334] sm:$0xf] }
 0x354   : > { %3451 = vmatpush.bf16.msra.mxu2 %v6705_v38  ;;  %3464 = vmatpush.bf16.msra.mxu3 %v6769_v40  ;;  %v8176_v38 = vld [vmem:[%s11876_s5 + $0x3e4] sm:$0xf]  ;;  %v7046_v40 = vld [vmem:[%s11876_s5 + $0x3e8] sm:$0xf0]  ;;  %v7022_v18 = vld [vmem:[%s11876_s5 + $0x3b8] sm:$0xf0]  ;;  %v6921_v28 = vor.u32 %v8144_v16, %v6918_v61 }
 0x355   : > { %v8126_v55 = vld [vmem:[%s11876_s5 + $0x254] sm:$0xf]  ;;  %v6846_v12 = vld [vmem:[%s11876_s5 + $0x258] sm:$0xf0]  ;;  %v8168_v43 = vld [vmem:[%s11876_s5 + $0x3a4] sm:$0xf] }
 0x356   : > { %3423 = vmatpush.bf16.msra.mxu0 %v6593_v1  ;;  %3436 = vmatpush.bf16.msra.mxu1 %v6657_v50  ;;  %v7049_v1 = vor.u32 %v8176_v38, %v7046_v40  ;;  %v8158_v50 = vld [vmem:[%s11876_s5 + $0x354] sm:$0xf]  ;;  %v8140_v40 = vld [vmem:[%s11876_s5 + $0x2c4] sm:$0xf]  ;;  %v6902_v33 = vld [vmem:[%s11876_s5 + $0x2c8] sm:$0xf0] }
 0x357   : > { %v6977_v9 = vor.u32 %v8158_v50, %v6974_v52  ;;  %v8142_v3 = vld [vmem:[%s11876_s5 + $0x2d4] sm:$0xf]  ;;  %v7006_v50 = vld [vmem:[%s11876_s5 + $0x398] sm:$0xf0]  ;;  %v6934_v0 = vld [vmem:[%s11876_s5 + $0x308] sm:$0xf0] }
 0x358   : > { %3452 = vmatpush.bf16.msra.mxu2 %v6697_v2  ;;  %3465 = vmatpush.bf16.msra.mxu3 %v6761_v44  ;;  %v8174_v2 = vld [vmem:[%s11876_s5 + $0x3d4] sm:$0xf]  ;;  %v8068_v44 = vld [vmem:[%s11876_s5 + $0x84] sm:$0xf]  ;;  %v6894_v27 = vld [vmem:[%s11876_s5 + $0x2b8] sm:$0xf0] }
 0x359   : > { %v6617_v57 = vor.u32 %v8068_v44, %v6614_v41  ;;  %v8150_v49 = vld [vmem:[%s11876_s5 + $0x314] sm:$0xf]  ;;  %v8148_v41 = vld [vmem:[%s11876_s5 + $0x304] sm:$0xf]  ;;  %v6878_v16 = vld [vmem:[%s11876_s5 + $0x298] sm:$0xf0] }
 0x35a   : > { %3424 = vmatpush.bf16.msra.mxu0 %v6585_v56  ;;  %3437 = vmatpush.bf16.msra.mxu1 %v6649_v21  ;;  %v7041_v56 = vor.u32 %v8174_v2, %v7038_v39  ;;  %v8156_v21 = vld [vmem:[%s11876_s5 + $0x344] sm:$0xf]  ;;  %v6905_v2 = vor.u32 %v8140_v40, %v6902_v33  ;;  %v8138_v39 = vld [vmem:[%s11876_s5 + $0x2b4] sm:$0xf] }
 0x35b   : > { %v6969_v19 = vor.u32 %v8156_v21, %v6966_v58  ;;  %v8164_v34 = vld [vmem:[%s11876_s5 + $0x384] sm:$0xf]  ;;  %v6822_v21 = vld [vmem:[%s11876_s5 + $0x228] sm:$0xf0]  ;;  %v6937_v58 = vor.u32 %v8148_v41, %v6934_v0 }
 0x35c   : > { %3453 = vmatpush.bf16.msra.mxu2 %v6689_v11  ;;  %3466 = vmatpush.bf16.msra.mxu3 %v6753_v60  ;;  %v8128_v60 = vld [vmem:[%s11876_s5 + $0x264] sm:$0xf] }
 0x35d   : > { %3377 = vmatmul.bf16.vlgmr.msrb.gmra.mxu0 %v10077_v48  ;;  %3390 = vmatmul.bf16.vlgmr.msrb.gmra.mxu1 %v10079_v54  ;;  %v6857_v46 = vor.u32 %v8128_v60, %v6854_v20  ;;  %v6814_v60 = vld [vmem:[%s11876_s5 + $0x218] sm:$0xf0]  ;;  %v8134_v20 = vld [vmem:[%s11876_s5 + $0x294] sm:$0xf] }
 0x35e   : > { %3425 = vmatpush.bf16.msra.mxu0 %v6577_v63  ;;  %3438 = vmatpush.bf16.msra.mxu1 %v6641_v25  ;;  %v6958_v63 = vld [vmem:[%s11876_s5 + $0x338] sm:$0xf0]  ;;  %v8170_v25 = vld [vmem:[%s11876_s5 + $0x3b4] sm:$0xf] }
 0x360   : > { %3454 = vmatpush.bf16.msra.mxu2 %v6681_v24  ;;  %3467 = vmatpush.bf16.msra.mxu3 %v6745_v29  ;;  %v6910_v24 = vld [vmem:[%s11876_s5 + $0x2d8] sm:$0xf0]  ;;  %v6961_v29 = vor.u32 %v8154_v26, %v6958_v63  ;;  %v6806_v26 = vld [vmem:[%s11876_s5 + $0x208] sm:$0xf0]  ;;  %v8132_v63 = vld [vmem:[%s11876_s5 + $0x284] sm:$0xf] }
 0x361   : > { %v6913_v38 = vor.u32 %v8142_v3, %v6910_v24 }
 0x362   : > { %3426 = vmatpush.bf16.msra.mxu0 %v6569_v32  ;;  %3439 = vmatpush.bf16.msra.mxu1 %v6633_v35  ;;  %v7014_v32 = vld [vmem:[%s11876_s5 + $0x3a8] sm:$0xf0]  ;;  %v6849_v35 = vor.u32 %v8126_v55, %v6846_v12 }
 0x363   : > { %3455 = vmatmul.bf16.vlgmr.msra.gmra.mxu2 %v9876_v10  ;;  %3468 = vmatmul.bf16.vlgmr.msra.gmra.mxu3 %v9878_v42  ;;  %v8146_v10 = vld [vmem:[%s11876_s5 + $0x2f4] sm:$0xf]  ;;  %v6926_v42 = vld [vmem:[%s11876_s5 + $0x2f8] sm:$0xf0]  ;;  %v7017_v5 = vor.u32 %v8168_v43, %v7014_v32 }
 0x364   : > { %3499 = vmatpush.bf16.msrb.mxu2 %v6993_v31  ;;  %3512 = vmatpush.bf16.msrb.mxu3 %v7057_v36  ;;  %v6929_v11 = vor.u32 %v8146_v10, %v6926_v42  ;;  %v7025_v31 = vor.u32 %v8170_v25, %v7022_v18  ;;  %v8152_v36 = vld [vmem:[%s11876_s5 + $0x324] sm:$0xf]  ;;  %v6998_v10 = vld [vmem:[%s11876_s5 + $0x388] sm:$0xf0] }
 0x365   : > { %v6953_v22 = vor.u32 %v8152_v36, %v6950_v45  ;;  %v7001_v7 = vor.u32 %v8164_v34, %v6998_v10  ;;  %v6870_v25 = vld [vmem:[%s11876_s5 + $0x288] sm:$0xf0] }
 0x366   : > { %3427 = vmatpush.bf16.msra.mxu0 %v6561_v59  ;;  %3440 = vmatpush.bf16.msra.mxu1 %v6625_v8  ;;  %v8122_v59 = vld [vmem:[%s11876_s5 + $0x234] sm:$0xf]  ;;  %v6830_v8 = vld [vmem:[%s11876_s5 + $0x238] sm:$0xf0] }
 0x367   : > { %v6833_v42 = vor.u32 %v8122_v59, %v6830_v8 }
 0x368   : > { %3500 = vmatpush.bf16.msrb.mxu2 %v6985_v13  ;;  %3513 = vmatpush.bf16.msrb.mxu3 %v7049_v1  ;;  %v6942_v13 = vld [vmem:[%s11876_s5 + $0x318] sm:$0xf0]  ;;  %v8166_v1 = vld [vmem:[%s11876_s5 + $0x394] sm:$0xf] }
 0x369   : > { %v6945_v30 = vor.u32 %v8150_v49, %v6942_v13  ;;  %v7009_v44 = vor.u32 %v8166_v1, %v7006_v50 }
 0x36a   : > { %3428 = vmatpush.bf16.msra.mxu0 %v6553_v53  ;;  %3441 = vmatpush.bf16.msra.mxu1 %v6617_v57  ;;  %v8136_v53 = vld [vmem:[%s11876_s5 + $0x2a4] sm:$0xf]  ;;  %v6886_v57 = vld [vmem:[%s11876_s5 + $0x2a8] sm:$0xf0] }
 0x36c   : > { %3501 = vmatpush.bf16.msrb.mxu2 %v6977_v9  ;;  %3514 = vmatpush.bf16.msrb.mxu3 %v7041_v56  ;;  %v6897_v9 = vor.u32 %v8138_v39, %v6894_v27  ;;  %v8120_v56 = vld [vmem:[%s11876_s5 + $0x224] sm:$0xf] }
 0x36d   : > { %3429 = vmatmul.bf16.vlgmr.msra.gmra.mxu0 %v9943_v62  ;;  %3442 = vmatmul.bf16.vlgmr.msra.gmra.mxu1 %v9945_v6  ;;  %v8124_v62 = vld [vmem:[%s11876_s5 + $0x244] sm:$0xf]  ;;  %v6838_v6 = vld [vmem:[%s11876_s5 + $0x248] sm:$0xf0]  ;;  %v6825_v4 = vor.u32 %v8120_v56, %v6822_v21 }
 0x36e   : > { %3473 = vmatpush.bf16.msrb.mxu0 %v6865_v17  ;;  %3486 = vmatpush.bf16.msrb.mxu1 %v6929_v11  ;;  %v6841_v52 = vor.u32 %v8124_v62, %v6838_v6  ;;  %v6889_v17 = vor.u32 %v8136_v53, %v6886_v57  ;;  %v8118_v11 = vld [vmem:[%s11876_s5 + $0x214] sm:$0xf] }
 0x36f   : > { %v6817_v61 = vor.u32 %v8118_v11, %v6814_v60 }
 0x370   : > { %3502 = vmatpush.bf16.msrb.mxu2 %v6969_v19  ;;  %3515 = vmatpush.bf16.msrb.mxu3 %v7033_v51  ;;  %v6881_v19 = vor.u32 %v8134_v20, %v6878_v16  ;;  %v8116_v51 = vld [vmem:[%s11876_s5 + $0x204] sm:$0xf] }
 0x371   : > { %v6809_v18 = vor.u32 %v8116_v51, %v6806_v26  ;;  %v3875_v51 = vld [vmem:[#allocation3 + $0xc] sm:$0x7] }
 0x372   : > { %3474 = vmatpush.bf16.msrb.mxu0 %v6857_v46  ;;  %3487 = vmatpush.bf16.msrb.mxu1 %v6921_v28  ;;  %v6873_v46 = vor.u32 %v8132_v63, %v6870_v25  ;;  %v3888_v63 = vunpack.c.l.b16 %v3875_v51 }
 0x374   : > { %3503 = vmatpush.bf16.msrb.mxu2 %v6961_v29  ;;  %3516 = vmatpush.bf16.msrb.mxu3 %v7025_v31 }
 0x376   : > { %3475 = vmatpush.bf16.msrb.mxu0 %v6849_v35  ;;  %3488 = vmatpush.bf16.msrb.mxu1 %v6913_v38 }
 0x378   : > { %3504 = vmatpush.bf16.msrb.mxu2 %v6953_v22  ;;  %3517 = vmatpush.bf16.msrb.mxu3 %v7017_v5 }
 0x37a   : > { %3476 = vmatpush.bf16.msrb.mxu0 %v6841_v52  ;;  %3489 = vmatpush.bf16.msrb.mxu1 %v6905_v2 }
 0x37c   : > { %3505 = vmatpush.bf16.msrb.mxu2 %v6945_v30  ;;  %3518 = vmatpush.bf16.msrb.mxu3 %v7009_v44 }
 0x37e   : > { %3477 = vmatpush.bf16.msrb.mxu0 %v6833_v42  ;;  %3490 = vmatpush.bf16.msrb.mxu1 %v6897_v9 }
 0x380   : > { %3506 = vmatpush.bf16.msrb.mxu2 %v6937_v58  ;;  %3519 = vmatpush.bf16.msrb.mxu3 %v7001_v7 }
 0x382   : > { %3478 = vmatpush.bf16.msrb.mxu0 %v6825_v4  ;;  %3491 = vmatpush.bf16.msrb.mxu1 %v6889_v17 }
 0x383   : > { %3507 = vmatmul.bf16.vlgmr.msrb.gmra.mxu2 %v9993_v14  ;;  %3520 = vmatmul.bf16.vlgmr.msrb.gmra.mxu3 %v9995_v15 }
 0x386   : > { %3479 = vmatpush.bf16.msrb.mxu0 %v6817_v61  ;;  %3492 = vmatpush.bf16.msrb.mxu1 %v6881_v19 }
 0x38a   : > { %3480 = vmatpush.bf16.msrb.mxu0 %v6809_v18  ;;  %3493 = vmatpush.bf16.msrb.mxu1 %v6873_v46  ;;  %v3891_v46 = vpack.c.b16 %v3888_v63, %v3888_v63 }
 0x38d   : > { %3481 = vmatmul.bf16.vlgmr.msrb.gmra.mxu0 %v10077_v48  ;;  %3494 = vmatmul.bf16.vlgmr.msrb.gmra.mxu1 %v10079_v54 }
 0x3c6   : > { %v3352_v14 = vpop.f32.mrf.mxu2  ;;  %v3365_v15 = vpop.f32.mrf.mxu3 }
 0x3ca   : > { %v3326_v28 = vpop.f32.mrf.mxu0  ;;  %v3339_v55 = vpop.f32.mrf.mxu1 }
 0x3cb   : > { %v3340_v13 = vadd.f32 %v3339_v55, %v3326_v28  ;;  %v4128_v28 = vld [vmem:[%s11875_s4 + $0x8] sm:$0xf] }
 0x3cd   : > { %v3353_v1 = vadd.f32 %v3352_v14, %v3340_v13 }
 0x3ce   : > { %v3354_v12 = vpop.f32.mrf.mxu2  ;;  %v3367_v3 = vpop.f32.mrf.mxu3 }
 0x3cf   : > { %v3366_v52 = vadd.f32 %v3365_v15, %v3353_v1  ;;  %v7064_v3 = vld [vmem:[%s11874_s3] sm:$0xf] }
 0x3d2   : > { %v3328_v24 = vpop.f32.mrf.mxu0  ;;  %v3341_v29 = vpop.f32.mrf.mxu1 }
 0x3d3   : > { %v8180_v24 = vld [vmem:[%s11874_s3] sm:$0x30] }
 0x3d6   : > { %v3404_v31 = vpop.f32.mrf.mxu2  ;;  %v3417_v36 = vpop.f32.mrf.mxu3 }
 0x3da   : > { %v3378_v45 = vpop.f32.mrf.mxu0  ;;  %v3391_v43 = vpop.f32.mrf.mxu1 }
 0x3db   : > { %v3379_v2 = vadd.f32 %v3378_v45, %v3366_v52 }
 0x3dd   : > { %v3392_v27 = vadd.f32 %v3391_v43, %v3379_v2 }
 0x3de   : > { %v3406_v32 = vpop.f32.mrf.mxu2  ;;  %v3419_v35 = vpop.f32.mrf.mxu3 }
 0x3df   : > { %v3405_v34 = vadd.f32 %v3404_v31, %v3392_v27  ;;  %v7065_v35 = vor.u32 %v8180_v24, %v7064_v3 }
 0x3e1   : > { %v3418_v21 = vadd.f32 %v3417_v36, %v3405_v34 }
 0x3e2   : > { %v3380_v38 = vpop.f32.mrf.mxu0  ;;  %v3393_v62 = vpop.f32.mrf.mxu1 }
 0x3e3   : > { %v7072_v62 = vld [vmem:[%s11874_s3 + $0x8] sm:$0xf] }
 0x3e6   : > { %v3456_v6 = vpop.f32.mrf.mxu2  ;;  %v3469_v48 = vpop.f32.mrf.mxu3 }
 0x3ea   : > { %v3430_v40 = vpop.f32.mrf.mxu0  ;;  %v3443_v54 = vpop.f32.mrf.mxu1 }
 0x3eb   : > { %v3444_v50 = vadd.f32 %v3443_v54, %v3430_v40 }
 0x3ed   : > { %v3457_v59 = vadd.f32 %v3456_v6, %v3444_v50  ;;  %v8181_v6 = vld [vmem:[%s11874_s3 + $0x8] sm:$0x30] }
 0x3ee   : > { %v3458_v33 = vpop.f32.mrf.mxu2  ;;  %v3471_v22 = vpop.f32.mrf.mxu3  ;;  %v7073_v13 = vor.u32 %v8181_v6, %v7072_v62 }
 0x3ef   : > { %v3470_v30 = vadd.f32 %v3469_v48, %v3457_v59 }
 0x3f2   : > { %v3432_v5 = vpop.f32.mrf.mxu0  ;;  %v3445_v49 = vpop.f32.mrf.mxu1 }
 0x406   : > { %v3508_v8 = vpop.f32.mrf.mxu2  ;;  %v3521_v39 = vpop.f32.mrf.mxu3 }
 0x40a   : > { %v3482_v44 = vpop.f32.mrf.mxu0  ;;  %v3495_v41 = vpop.f32.mrf.mxu1 }
 0x40b   : > { %v3483_v0 = vadd.f32 %v3482_v44, %v3470_v30 }
 0x40d   : > { %v3496_v10 = vadd.f32 %v3495_v41, %v3483_v0 }
 0x40e   : > { %v3510_v42 = vpop.f32.mrf.mxu2  ;;  %v3523_v9 = vpop.f32.mrf.mxu3 }
 0x40f   : > { %v3509_v56 = vadd.f32 %v3508_v8, %v3496_v10  ;;  %v7080_v8 = vld [vmem:[%s11874_s3 + $0x10] sm:$0xf] }
 0x411   : > { %v3522_v53 = vadd.f32 %v3521_v39, %v3509_v56  ;;  %v8182_v39 = vld [vmem:[%s11874_s3 + $0x10] sm:$0x30]  ;;  %v7088_v56 = vld [vmem:[%s11874_s3 + $0x18] sm:$0xf] }
 0x412   : > { %v3484_v57 = vpop.f32.mrf.mxu0  ;;  %v3497_v58 = vpop.f32.mrf.mxu1  ;;  %v7081_v10 = vor.u32 %v8182_v39, %v7080_v8  ;;  %v7128_v8 = vld [vmem:[%s11874_s3 + $0x40] sm:$0xf]  ;;  %v8188_v39 = vld [vmem:[%s11874_s3 + $0x40] sm:$0x30] }
 0x413   : > { %v3525_v7 = vpack.c.bf16 %v3522_v53, %v3418_v21  ;;  %v8183_v21 = vld [vmem:[%s11874_s3 + $0x18] sm:$0x30] }
 0x415   : > { %3528 = vst [vmem:[#allocation3 + $0x4] sm:$0x77] %v3525_v7 }
 0x41c   : > { %v3566_v4 = vld [vmem:[#allocation3 + $0x8] sm:$0x7]  ;;  %v3565_v17 = vld [vmem:[#allocation3] sm:$0x77] }
 0x41d   : > { %v3578_v11 = vunpack.c.l.b16 %v3566_v4  ;;  %v3577_v60 = vunpack.c.h.b16 %v3565_v17  ;;  %v3576_v20 = vunpack.c.l.b16 %v3565_v17  ;;  %v3874_v26 = vld [vmem:[#allocation3 + $0x4] sm:$0x77] }
 0x41e   : > { %v3887_v25 = vunpack.c.h.b16 %v3874_v26  ;;  %v3886_v18 = vunpack.c.l.b16 %v3874_v26  ;;  %v3819_v54 = vld [vmem:[#allocation3 + $0x4] sm:$0x77] }
 0x41f   : > { %v3581_v16 = vpack.c.b16 %v3578_v11, %v3578_v11  ;;  %v3580_v61 = vpack.c.b16 %v3577_v60, %v3577_v60  ;;  %v3579_v19 = vpack.c.b16 %v3576_v20, %v3576_v20  ;;  %v3829_v1 = vunpack.c.l.b16 %v3819_v54  ;;  %v7096_v20 = vld [vmem:[%s11874_s3 + $0x20] sm:$0xf] }
 0x420   : > { %v3890_v14 = vpack.c.b16 %v3887_v25, %v3887_v25  ;;  %v3889_v15 = vpack.c.b16 %v3886_v18, %v3886_v18  ;;  %v3830_v50 = vunpack.c.h.b16 %v3819_v54  ;;  %v7089_v60 = vor.u32 %v8183_v21, %v7088_v56 }
 0x421   : > { %3586 = vrot.lane.b32.xlu1 %v3581_v16, %s8597_s17  ;;  %3584 = vrot.lane.b32.xlu0 %v3580_v61, %s8597_s17  ;;  %v3831_v2 = vpack.c.b16 %v3829_v1, %v3829_v1 }
 0x422   : > { %3582 = vrot.lane.b32.xlu2 %v3579_v19, %s8597_s17  ;;  %v3832_v59 = vpack.c.b16 %v3830_v50, %v3830_v50  ;;  %s8542_s17 = scalar_lea.hbm %s11884_s13, 2 }
 0x423   : > { %v3837_v42 = vsel %vm3595_vm15, %v3831_v2, 0 }
 0x424   : > { %v3840_v9 = vsel %vm3595_vm15, %v3832_v59, 0 }
 0x429   : > { %3650 = vrot.lane.b32.xlu1 %v3581_v16, %s8598_s21  ;;  %3648 = vrot.lane.b32.xlu0 %v3580_v61, %s8598_s21 }
 0x42a   : > { %3646 = vrot.lane.b32.xlu2 %v3579_v19, %s8598_s21  ;;  %s6385_s21 = scalar_lea.hbm %s11884_s13, %s8694_s29 }
 0x431   : > { %3708 = vrot.lane.b32.xlu1 %v3581_v16, %s8599_s2  ;;  %3706 = vrot.lane.b32.xlu0 %v3580_v61, %s8599_s2 }
 0x432   : > { %3704 = vrot.lane.b32.xlu2 %v3579_v19, %s8599_s2 }
 0x439   : > { %3770 = vrot.lane.b32.xlu1 %v3581_v16, %s11905_s23  ;;  %3768 = vrot.lane.b32.xlu0 %v3580_v61, %s11905_s23  ;;  %v8184_v16 = vld [vmem:[%s11874_s3 + $0x20] sm:$0x30] }
 0x43a   : > { %3766 = vrot.lane.b32.xlu2 %v3579_v19, %s11905_s23  ;;  %v7097_v18 = vor.u32 %v8184_v16, %v7096_v20  ;;  %v3533_v16 = vand.u32 15, %v8978_v37  ;;  %v7222_v37 = vld [vmem:[%s11878_s7 + $0x90] sm:$0xf] }
 0x43c   : > { %vm3553_vm8 = vcmp.ne.s32.totalorder %v3533_v16, 0  ;;  %vm3559_vm9 = vcmp.ne.s32.totalorder %v3533_v16, 15 }
 0x441   : > { %3896 = vrot.lane.b32.xlu1 %v3891_v46, %s11906_s24  ;;  %3894 = vrot.lane.b32.xlu0 %v3890_v14, %s11906_s24 }
 0x442   : > { %3892 = vrot.lane.b32.xlu2 %v3889_v15, %s11906_s24 }
 0x449   : > { %3957 = vrot.lane.b32.xlu1 %v3891_v46, %s8600_s30  ;;  %3955 = vrot.lane.b32.xlu0 %v3890_v14, %s8600_s30 }
 0x44a   : > { %3953 = vrot.lane.b32.xlu2 %v3889_v15, %s8600_s30 }
 0x451   : > { %4019 = vrot.lane.b32.xlu1 %v3891_v46, %s8601_s15  ;;  %4017 = vrot.lane.b32.xlu0 %v3890_v14, %s8601_s15 }
 0x452   : > { %4015 = vrot.lane.b32.xlu2 %v3889_v15, %s8601_s15 }
 0x459   : > { %4077 = vrot.lane.b32.xlu1 %v3891_v46, %s8602_s20  ;;  %4075 = vrot.lane.b32.xlu0 %v3890_v14, %s8602_s20  ;;  %v4127_v14 = vld [vmem:[%s11875_s4] sm:$0xff] }
 0x45a   : > { %4073 = vrot.lane.b32.xlu2 %v3889_v15, %s8602_s20  ;;  %v7104_v15 = vld [vmem:[%s11874_s3 + $0x28] sm:$0xf]  ;;  %s6377_s20 = scalar_lea.sflag [#allocation5], %s431_s0 }
 0x461   : > { %4136 = vperm.xlu0 %8465, %v4128_v28   ;;  %v8185_v28 = vld [vmem:[%s11874_s3 + $0x28] sm:$0x30] }
 0x462   : > { %4131 = vperm.xlu2 %8501, %v4127_v14  }
 0x47c   : > { %v3583_v55 = vpop.permute.xlu2 %3582 }
 0x484   : > { %v3647_v12 = vpop.permute.xlu2 %3646 }
 0x48c   : > { %v3705_v38 = vpop.permute.xlu2 %3704 }
 0x493   : > { %v3587_v29 = vpop.permute.xlu1 %3586  ;;  %v3585_v31 = vpop.permute.xlu0 %3584 }
 0x494   : > { %v3589_v36 = vsel %vm3588_vm14, %v3583_v55, %v3585_v31  ;;  %v3590_v45 = vsel %vm3588_vm14, %v3585_v31, %v3587_v29  ;;  %v3767_v52 = vpop.permute.xlu2 %3766 }
 0x495   : > { %v3597_v43 = vsel %vm3595_vm15, %v3589_v36, 0  ;;  %v3600_v32 = vsel %vm3595_vm15, %v3590_v45, 0  ;;  %v7105_v36 = vor.u32 %v8185_v28, %v7104_v15 }
 0x496   : > { %3609 = vmatpush.bf16.msra.mxu0 %v3597_v43  ;;  %3623 = vmatpush.bf16.msra.mxu1 %v3600_v32  ;;  %v7112_v43 = vld [vmem:[%s11874_s3 + $0x30] sm:$0xf]  ;;  %v8186_v32 = vld [vmem:[%s11874_s3 + $0x30] sm:$0x30] }
 0x497   : > { %v7113_v54 = vor.u32 %v8186_v32, %v7112_v43 }
 0x499   : > { %7066 = vmatmul.msk.bf16.vlgmr.msra.gmra.mxu0 %vm3591_vm1, %v7065_v35  ;;  %7067 = vmatmul.msk.bf16.vlgmr.msra.gmra.mxu1 %vm3591_vm1, %v7065_v35 }
 0x49b   : > { %v3651_v48 = vpop.permute.xlu1 %3650  ;;  %v3649_v40 = vpop.permute.xlu0 %3648 }
 0x49c   : > { %v3653_v33 = vsel %vm3652_vm2, %v3647_v12, %v3649_v40  ;;  %v3654_v22 = vsel %vm3652_vm2, %v3649_v40, %v3651_v48  ;;  %v3893_v58 = vpop.permute.xlu2 %3892 }
 0x49d   : > { %v3659_v5 = vsel %vm3595_vm15, %v3653_v33, 0  ;;  %v3662_v49 = vsel %vm3595_vm15, %v3654_v22, 0  ;;  %v7120_v22 = vld [vmem:[%s11874_s3 + $0x38] sm:$0xf] }
 0x49e   : > { %3671 = vmatpush.bf16.msra.mxu2 %v3659_v5  ;;  %3685 = vmatpush.bf16.msra.mxu3 %v3662_v49  ;;  %v8187_v5 = vld [vmem:[%s11874_s3 + $0x38] sm:$0x30] }
 0x49f   : > { %v7121_v59 = vor.u32 %v8187_v5, %v7120_v22 }
 0x4a1   : > { %7074 = vmatmul.msk.bf16.vlgmr.msra.gmra.mxu2 %vm3591_vm1, %v7073_v13  ;;  %7075 = vmatmul.msk.bf16.vlgmr.msra.gmra.mxu3 %vm3591_vm1, %v7073_v13 }
 0x4a3   : > { %v3709_v27 = vpop.permute.xlu1 %3708  ;;  %v3707_v30 = vpop.permute.xlu0 %3706 }
 0x4a4   : > { %v3711_v44 = vsel %vm3710_vm3, %v3705_v38, %v3707_v30  ;;  %v3712_v41 = vsel %vm3710_vm3, %v3707_v30, %v3709_v27  ;;  %v3954_v46 = vpop.permute.xlu2 %3953  ;;  %v7129_v27 = vor.u32 %v8188_v39, %v7128_v8 }
 0x4a5   : > { %v3717_v0 = vsel %vm3595_vm15, %v3711_v44, 0  ;;  %v3720_v34 = vsel %vm3595_vm15, %v3712_v41, 0 }
 0x4a6   : > { %3729 = vmatpush.bf16.msrb.mxu0 %v3717_v0  ;;  %3743 = vmatpush.bf16.msrb.mxu1 %v3720_v34 }
 0x4a9   : > { %7082 = vmatmul.msk.bf16.vlgmr.msrb.gmra.mxu0 %vm3591_vm1, %v7081_v10  ;;  %7083 = vmatmul.msk.bf16.vlgmr.msrb.gmra.mxu1 %vm3591_vm1, %v7081_v10 }
 0x4aa   : > { %3849 = vmatpush.bf16.msra.mxu0 %v3837_v42  ;;  %3863 = vmatpush.bf16.msra.mxu1 %v3840_v9 }
 0x4ab   : > { %v3771_v53 = vpop.permute.xlu1 %3770  ;;  %v3769_v57 = vpop.permute.xlu0 %3768 }
 0x4ac   : > { %v3772_v7 = vsel %vm1341_vm5, %v3767_v52, %v3769_v57  ;;  %v3773_v4 = vsel %vm1341_vm5, %v3769_v57, %v3771_v53  ;;  %vm3959_vm5 = vcmask 924672   ;;  %v4016_v45 = vpop.permute.xlu2 %4015 }
 0x4ad   : > { %v3778_v17 = vsel %vm3595_vm15, %v3772_v7, 0  ;;  %v3781_v11 = vsel %vm3595_vm15, %v3773_v4, 0 }
 0x4ae   : > { %3790 = vmatpush.bf16.msrb.mxu2 %v3778_v17  ;;  %3804 = vmatpush.bf16.msrb.mxu3 %v3781_v11  ;;  %v3540_v11 = vand.u32 15, %v8989_v47 }
 0x4b0   : > { %vm3554_vm7 = vcmp.ne.s32.totalorder %v3540_v11, 0  ;;  %vm3560_vm10 = vcmp.ne.s32.totalorder %v3540_v11, 15 }
 0x4b1   : > { %7090 = vmatmul.msk.bf16.vlgmr.msrb.gmra.mxu2 %vm3591_vm1, %v7089_v60  ;;  %7091 = vmatmul.msk.bf16.vlgmr.msrb.gmra.mxu3 %vm3591_vm1, %v7089_v60  ;;  %v10421_v47 = vsel %vm3560_vm10, 1.0, %v8595_v23 }
 0x4b3   : > { %v3897_v61 = vpop.permute.xlu1 %3896  ;;  %v3895_v19 = vpop.permute.xlu0 %3894 }
 0x4b4   : > { %v3898_v51 = vsel %vm1693_vm6, %v3893_v58, %v3895_v19  ;;  %v3899_v26 = vsel %vm1693_vm6, %v3895_v19, %v3897_v61  ;;  %vm4021_vm6 = vcmask 916480   ;;  %v4074_v33 = vpop.permute.xlu2 %4073 }
 0x4b5   : > { %v3904_v63 = vsel %vm3595_vm15, %v3898_v51, 0  ;;  %v3907_v25 = vsel %vm3595_vm15, %v3899_v26, 0  ;;  %v7059_v51 = vsel %vm3554_vm7, 1.0, %v8595_v23 }
 0x4b6   : > { %3916 = vmatpush.bf16.msra.mxu2 %v3904_v63  ;;  %3930 = vmatpush.bf16.msra.mxu3 %v3907_v25  ;;  %v7058_v63 = vsel %vm3553_vm8, 1.0, %v8595_v23  ;;  %v10418_v25 = vsel %vm3559_vm9, 1.0, %v8595_v23 }
 0x4b9   : > { %7098 = vmatmul.msk.bf16.vlgmr.msra.gmra.mxu0 %vm3591_vm1, %v7097_v18  ;;  %7099 = vmatmul.msk.bf16.vlgmr.msra.gmra.mxu1 %vm3591_vm1, %v7097_v18 }
 0x4bb   : > { %v3958_v55 = vpop.permute.xlu1 %3957  ;;  %v3956_v12 = vpop.permute.xlu0 %3955 }
 0x4bc   : > { %v3960_v3 = vsel %vm3959_vm5, %v3954_v46, %v3956_v12  ;;  %v3961_v24 = vsel %vm3959_vm5, %v3956_v12, %v3958_v55 }
 0x4bd   : > { %v3966_v29 = vsel %vm3595_vm15, %v3960_v3, 0  ;;  %v3969_v31 = vsel %vm3595_vm15, %v3961_v24, 0 }
 0x4be   : > { %3978 = vmatpush.bf16.msrb.mxu0 %v3966_v29  ;;  %3992 = vmatpush.bf16.msrb.mxu1 %v3969_v31 }
 0x4c1   : > { %7106 = vmatmul.msk.bf16.vlgmr.msra.gmra.mxu2 %vm3591_vm1, %v7105_v36  ;;  %7107 = vmatmul.msk.bf16.vlgmr.msra.gmra.mxu3 %vm3591_vm1, %v7105_v36 }
 0x4c3   : > { %v4020_v35 = vpop.permute.xlu1 %4019  ;;  %v4018_v38 = vpop.permute.xlu0 %4017 }
 0x4c4   : > { %v4022_v62 = vsel %vm4021_vm6, %v4016_v45, %v4018_v38  ;;  %v4023_v6 = vsel %vm4021_vm6, %v4018_v38, %v4020_v35 }
 0x4c5   : > { %v4028_v48 = vsel %vm3595_vm15, %v4022_v62, 0  ;;  %v4031_v40 = vsel %vm3595_vm15, %v4023_v6, 0 }
 0x4c6   : > { %4040 = vmatpush.bf16.msrb.mxu2 %v4028_v48  ;;  %4054 = vmatpush.bf16.msrb.mxu3 %v4031_v40 }
 0x4c9   : > { %7114 = vmatmul.msk.bf16.vlgmr.msrb.gmra.mxu0 %vm3591_vm1, %v7113_v54  ;;  %7115 = vmatmul.msk.bf16.vlgmr.msrb.gmra.mxu1 %vm3591_vm1, %v7113_v54 }
 0x4cb   : > { %v4078_v49 = vpop.permute.xlu1 %4077  ;;  %v4076_v13 = vpop.permute.xlu0 %4075 }
 0x4cc   : > { %v4080_v1 = vsel %vm4079_vm4, %v4074_v33, %v4076_v13  ;;  %v4081_v50 = vsel %vm4079_vm4, %v4076_v13, %v4078_v49 }
 0x4cd   : > { %v4086_v52 = vsel %vm3595_vm15, %v4080_v1, 0  ;;  %v4089_v2 = vsel %vm3595_vm15, %v4081_v50, 0 }
 0x4ce   : > { %4098 = vmatpush.bf16.msra.mxu0 %v4086_v52  ;;  %4112 = vmatpush.bf16.msra.mxu1 %v4089_v2 }
 0x4d1   : > { %7122 = vmatmul.msk.bf16.vlgmr.msrb.gmra.mxu2 %vm3591_vm1, %v7121_v59  ;;  %7123 = vmatmul.msk.bf16.vlgmr.msrb.gmra.mxu3 %vm3591_vm1, %v7121_v59 }
 0x4d9   : > { %7130 = vmatmul.msk.bf16.vlgmr.msra.gmra.mxu0 %vm3591_vm1, %v7129_v27  ;;  %7131 = vmatmul.msk.bf16.vlgmr.msra.gmra.mxu1 %vm3591_vm1, %v7129_v27 }
 0x516   : > { %v3611_v30 = vpop.f32.mrf.mxu0  ;;  %v3625_v44 = vpop.f32.mrf.mxu1 }
 0x517   : > { %v3631_v26 = vmul.f32 %v7059_v51, %v3625_v44  ;;  %v3630_v28 = vmul.f32 %v7058_v63, %v3611_v30 }
 0x51e   : > { %v3613_v41 = vpop.f32.mrf.mxu0  ;;  %v3627_v0 = vpop.f32.mrf.mxu1 }
 0x51f   : > { %v3633_v24 = vmul.f32 %v7059_v51, %v3627_v0  ;;  %v3632_v32 = vmul.f32 %v7058_v63, %v3613_v41 }
 0x524   : > { %v3673_v34 = vpop.f32.mrf.mxu2  ;;  %v3687_v10 = vpop.f32.mrf.mxu3 }
 0x525   : > { %v3693_v55 = vadd.f32 %v3687_v10, %v3631_v26  ;;  %v3692_v29 = vadd.f32 %v3673_v34, %v3630_v28 }
 0x526   : > { %v3731_v42 = vpop.f32.mrf.mxu0  ;;  %v3745_v9 = vpop.f32.mrf.mxu1 }
 0x527   : > { %v3750_v12 = vmul.f32 %v10418_v25, %v3731_v42  ;;  %v3751_v3 = vmul.f32 %v10421_v47, %v3745_v9 }
 0x529   : > { %v3754_v45 = vadd.f32 %v3750_v12, %v3692_v29  ;;  %v3755_v43 = vadd.f32 %v3751_v3, %v3693_v55 }
 0x52c   : > { %v3675_v56 = vpop.f32.mrf.mxu2  ;;  %v3689_v21 = vpop.f32.mrf.mxu3 }
 0x52d   : > { %v3695_v35 = vadd.f32 %v3689_v21, %v3633_v24  ;;  %v3694_v54 = vadd.f32 %v3675_v56, %v3632_v32 }
 0x52e   : > { %v3733_v53 = vpop.f32.mrf.mxu0  ;;  %v3747_v57 = vpop.f32.mrf.mxu1 }
 0x52f   : > { %v3752_v23 = vmul.f32 %v10418_v25, %v3733_v53  ;;  %v3753_v38 = vmul.f32 %v10421_v47, %v3747_v57 }
 0x531   : > { %v3756_v50 = vadd.f32 %v3752_v23, %v3694_v54  ;;  %v3757_v52 = vadd.f32 %v3753_v38, %v3695_v35  ;;  %v8195_v54 = vld [vmem:[%s11877_s6 + $0x30] sm:$0xff] }
 0x534   : > { %v3792_v58 = vpop.f32.mrf.mxu2  ;;  %v3806_v7 = vpop.f32.mrf.mxu3 }
 0x535   : > { %v3811_v31 = vmul.f32 %v7058_v63, %v3792_v58  ;;  %v3812_v36 = vmul.f32 %v7059_v51, %v3806_v7 }
 0x536   : > { %v3851_v4 = vpop.f32.mrf.mxu0  ;;  %v3865_v17 = vpop.f32.mrf.mxu1 }
 0x537   : > { %v3815_v48 = vadd.f32 %v3811_v31, %v3754_v45  ;;  %v3816_v40 = vadd.f32 %v3812_v36, %v3755_v43  ;;  %v4137_v43 = vpop.permute.xlu0 %4136 }
 0x539   : > { %v3870_v2 = vadd.f32 %v3851_v4, %v3815_v48  ;;  %v3871_v59 = vadd.f32 %v3865_v17, %v3816_v40 }
 0x53c   : > { %v3794_v60 = vpop.f32.mrf.mxu2  ;;  %v3808_v20 = vpop.f32.mrf.mxu3 }
 0x53d   : > { %v3813_v33 = vmul.f32 %v7058_v63, %v3794_v60  ;;  %v3814_v22 = vmul.f32 %v7059_v51, %v3808_v20 }
 0x53e   : > { %v3853_v61 = vpop.f32.mrf.mxu0  ;;  %v3867_v19 = vpop.f32.mrf.mxu1 }
 0x53f   : > { %v3817_v8 = vadd.f32 %v3813_v33, %v3756_v50  ;;  %v3818_v39 = vadd.f32 %v3814_v22, %v3757_v52  ;;  %v8203_v33 = vld [vmem:[%s11877_s6 + $0x70] sm:$0xff]  ;;  %v8194_v22 = vld [vmem:[%s11877_s6 + $0x28] sm:$0xff]  ;;  %v8200_v50 = vld [vmem:[%s11877_s6 + $0x58] sm:$0xff] }
 0x540   : > { %v8191_v52 = vld [vmem:[%s11877_s6 + $0x10] sm:$0xff] }
 0x541   : > { %v3872_v9 = vadd.f32 %v3853_v61, %v3817_v8  ;;  %v3873_v56 = vadd.f32 %v3867_v19, %v3818_v39  ;;  %v4132_v61 = vpop.permute.xlu2 %4131 }
 0x544   : > { %v3918_v18 = vpop.f32.mrf.mxu2  ;;  %v3932_v46 = vpop.f32.mrf.mxu3 }
 0x545   : > { %v3937_v13 = vmul.f32 %v10418_v25, %v3918_v18  ;;  %v3938_v1 = vmul.f32 %v10421_v47, %v3932_v46 }
 0x546   : > { %v3980_v14 = vpop.f32.mrf.mxu0  ;;  %v3994_v15 = vpop.f32.mrf.mxu1 }
 0x547   : > { %v3941_v27 = vadd.f32 %v3937_v13, %v3870_v2  ;;  %v3942_v30 = vadd.f32 %v3938_v1, %v3871_v59  ;;  %v3999_v44 = vmul.f32 %v7058_v63, %v3980_v14  ;;  %v4000_v41 = vmul.f32 %v7059_v51, %v3994_v15  ;;  %v8201_v13 = vld [vmem:[%s11877_s6 + $0x60] sm:$0xff]  ;;  %v8192_v1 = vld [vmem:[%s11877_s6 + $0x18] sm:$0xff]  ;;  %v8199_v2 = vld [vmem:[%s11877_s6 + $0x50] sm:$0xff] }
 0x549   : > { %v4003_v7 = vadd.f32 %v3999_v44, %v3941_v27  ;;  %v4004_v4 = vadd.f32 %v4000_v41, %v3942_v30 }
 0x54c   : > { %v3920_v62 = vpop.f32.mrf.mxu2  ;;  %v3934_v6 = vpop.f32.mrf.mxu3 }
 0x54d   : > { %v3939_v0 = vmul.f32 %v10418_v25, %v3920_v62  ;;  %v3940_v34 = vmul.f32 %v10421_v47, %v3934_v6 }
 0x54e   : > { %v3982_v5 = vpop.f32.mrf.mxu0  ;;  %v3996_v49 = vpop.f32.mrf.mxu1 }
 0x54f   : > { %v3943_v57 = vadd.f32 %v3939_v0, %v3872_v9  ;;  %v3944_v58 = vadd.f32 %v3940_v34, %v3873_v56  ;;  %v4001_v17 = vmul.f32 %v7058_v63, %v3982_v5  ;;  %v4002_v11 = vmul.f32 %v7059_v51, %v3996_v49  ;;  %v8202_v5 = vld [vmem:[%s11877_s6 + $0x68] sm:$0xff]  ;;  %v8193_v49 = vld [vmem:[%s11877_s6 + $0x20] sm:$0xff] }
 0x551   : > { %v4005_v19 = vadd.f32 %v4001_v17, %v3943_v57  ;;  %v4006_v28 = vadd.f32 %v4002_v11, %v3944_v58  ;;  %v8190_v58 = vld [vmem:[%s11877_s6 + $0x8] sm:$0xff]  ;;  %v8197_v17 = vld [vmem:[%s11877_s6 + $0x40] sm:$0xff] }
 0x552   : > { %v8214_v11 = vld [vmem:[%s11878_s7 + $0x4c] sm:$0xf] }
 0x554   : > { %v4042_v10 = vpop.f32.mrf.mxu2  ;;  %v4056_v42 = vpop.f32.mrf.mxu3 }
 0x555   : > { %v4061_v16 = vadd.f32 %v4042_v10, %v4003_v7  ;;  %v4062_v26 = vadd.f32 %v4056_v42, %v4004_v4  ;;  %v8198_v7 = vld [vmem:[%s11877_s6 + $0x48] sm:$0xff]  ;;  %v8189_v4 = vld [vmem:[%s11877_s6] sm:$0xff] }
 0x556   : > { %v4100_v21 = vpop.f32.mrf.mxu0  ;;  %v4114_v53 = vpop.f32.mrf.mxu1 }
 0x557   : > { %v4119_v60 = vmul.f32 %v10418_v25, %v4100_v21  ;;  %v4120_v20 = vmul.f32 %v10421_v47, %v4114_v53 }
 0x559   : > { %v4123_v14 = vadd.f32 %v4119_v60, %v4061_v16  ;;  %v4124_v15 = vadd.f32 %v4120_v20, %v4062_v26  ;;  %v7287_v60 = vld [vmem:[%s11878_s7 + $0x54] sm:$0xf0]  ;;  %v7293_v20 = vld [vmem:[%s11878_s7 + $0x50] sm:$0xf]  ;;  %v8216_v26 = vld [vmem:[%s11878_s7 + $0x58] sm:$0xf0] }
 0x55a   : > { %v7290_v16 = vor.u32 %v8214_v11, %v7287_v60  ;;  %v7198_v11 = vld [vmem:[%s11878_s7 + $0x60] sm:$0xf]  ;;  %v8218_v60 = vld [vmem:[%s11878_s7 + $0x68] sm:$0xf0] }
 0x55b   : > { %v4139_v29 = vadd.f32 %v4132_v61, %v4123_v14  ;;  %v4140_v31 = vadd.f32 %v4132_v61, %v4124_v15  ;;  %v7294_v14 = vor.u32 %v8216_v26, %v7293_v20  ;;  %v7281_v15 = vld [vmem:[%s11878_s7 + $0x38] sm:$0xf]  ;;  %v8213_v61 = vld [vmem:[%s11878_s7 + $0x40] sm:$0xf0]  ;;  %v7200_v26 = vld [vmem:[%s11878_s7 + $0x6c] sm:$0xf0] }
 0x55c   : > { %v4044_v18 = vpop.f32.mrf.mxu2  ;;  %v4058_v46 = vpop.f32.mrf.mxu3  ;;  %v8217_v20 = vld [vmem:[%s11878_s7 + $0x64] sm:$0xf] }
 0x55d   : > { %v4063_v3 = vadd.f32 %v4044_v18, %v4005_v19  ;;  %v4064_v24 = vadd.f32 %v4058_v46, %v4006_v28  ;;  %v4143_v23 = vmax.f32 %v4139_v29, 0.0  ;;  %v4144_v38 = vmax.f32 %v4140_v31, 0.0  ;;  %v8211_v18 = vld [vmem:[%s11878_s7 + $0x34] sm:$0xf]  ;;  %v7275_v46 = vld [vmem:[%s11878_s7 + $0x3c] sm:$0xf0] }
 0x55e   : > { %v4102_v55 = vpop.f32.mrf.mxu0  ;;  %v4116_v12 = vpop.f32.mrf.mxu1  ;;  %v7234_v19 = vld [vmem:[%s11878_s7 + $0xa8] sm:$0xf]  ;;  %v7278_v28 = vor.u32 %v8211_v18, %v7275_v46  ;;  %v8208_v29 = vld [vmem:[%s11878_s7 + $0x1c] sm:$0xf]  ;;  %v7203_v18 = vor.u32 %v8217_v20, %v7200_v26  ;;  %v7332_v46 = vld [vmem:[%s11878_s7 + $0xf8] sm:$0xf] }
 0x55f   : > { %v4121_v63 = vmul.f32 %v10418_v25, %v4102_v55  ;;  %v4122_v51 = vmul.f32 %v10421_v47, %v4116_v12  ;;  %v8196_v25 = vld [vmem:[%s11877_s6 + $0x38] sm:$0xff]  ;;  %v8227_v55 = vld [vmem:[%s11878_s7 + $0xb0] sm:$0xf0]  ;;  %v8226_v12 = vld [vmem:[%s11878_s7 + $0xac] sm:$0xf] }
 0x560   : > { %v8204_v47 = vld [vmem:[%s11877_s6 + $0x78] sm:$0xff]  ;;  %4310 = vmatpush.bf16.msra.mxu2 %v8196_v25  ;;  %v7263_v31 = vld [vmem:[%s11878_s7 + $0x24] sm:$0xf0] }
 0x561   : > { %v4125_v36 = vadd.f32 %v4121_v63, %v4063_v3  ;;  %v4126_v45 = vadd.f32 %v4122_v51, %v4064_v24  ;;  %4324 = vmatpush.bf16.msra.mxu3 %v8204_v47  ;;  %v7236_v3 = vld [vmem:[%s11878_s7 + $0xb4] sm:$0xf0]  ;;  %v7282_v24 = vor.u32 %v8213_v61, %v7281_v15  ;;  %v7235_v63 = vor.u32 %v8227_v55, %v7234_v19  ;;  %v7375_v15 = vld [vmem:[%s11878_s7 + $0x150] sm:$0xf]  ;;  %v8248_v19 = vld [vmem:[%s11878_s7 + $0x158] sm:$0xf0] }
 0x562   : > { %v7239_v51 = vor.u32 %v8226_v12, %v7236_v3  ;;  %v7242_v55 = vld [vmem:[%s11878_s7 + $0xb0] sm:$0xf]  ;;  %v8228_v12 = vld [vmem:[%s11878_s7 + $0xb8] sm:$0xf0]  ;;  %v7285_v3 = vld [vmem:[%s11878_s7 + $0x48] sm:$0xf] }
 0x563   : > { %v4141_v32 = vadd.f32 %v4137_v43, %v4125_v36  ;;  %v4142_v35 = vadd.f32 %v4137_v43, %v4126_v45  ;;  %v7269_v36 = vld [vmem:[%s11878_s7 + $0x20] sm:$0xf]  ;;  %v8210_v45 = vld [vmem:[%s11878_s7 + $0x28] sm:$0xf0]  ;;  %4450 = vmatpush.bf16.msrb.mxu0 %v7235_v63  ;;  %v7266_v43 = vor.u32 %v8208_v29, %v7263_v31  ;;  %v8215_v63 = vld [vmem:[%s11878_s7 + $0x50] sm:$0xf0] }
 0x564   : > { %4311 = vmatpush.bf16.msra.mxu2 %v8195_v54  ;;  %4463 = vmatpush.bf16.msrb.mxu1 %v7239_v51  ;;  %v7286_v51 = vor.u32 %v8215_v63, %v7285_v3  ;;  %v7320_v29 = vld [vmem:[%s11878_s7 + $0xe0] sm:$0xf]  ;;  %v8234_v31 = vld [vmem:[%s11878_s7 + $0xe8] sm:$0xf0]  ;;  %v7338_v20 = vld [vmem:[%s11878_s7 + $0x114] sm:$0xf0] }
 0x565   : > { %v4146_v62 = vmax.f32 %v4142_v35, 0.0  ;;  %v4145_v6 = vmax.f32 %v4141_v32, 0.0  ;;  %4325 = vmatpush.bf16.msra.mxu3 %v8203_v33  ;;  %v7270_v32 = vor.u32 %v8210_v45, %v7269_v36  ;;  %v7363_v36 = vld [vmem:[%s11878_s7 + $0x138] sm:$0xf]  ;;  %v7321_v45 = vor.u32 %v8234_v31, %v7320_v29  ;;  %v7326_v63 = vld [vmem:[%s11878_s7 + $0xfc] sm:$0xf0] }
 0x566   : > { %v7402_v31 = vld [vmem:[%s11878_s7 + $0x180] sm:$0xf] }
 0x567   : > { %v8507_v48 = vpack.i.bf16 %v4146_v62, %v4144_v38  ;;  %v8502_v40 = vpack.i.bf16 %v4145_v6, %v4143_v23 }
 0x568   : > { %4312 = vmatpush.bf16.msra.mxu2 %v8194_v22 }
 0x569   : > { %8508 = vrot.lane.b32.xlu2 %v8507_v48, %s11906_s24  ;;  %8503 = vrot.lane.b32.xlu1 %v8502_v40, %s11906_s24  ;;  %s432_s24 = scalar_lea.vmem [#allocation4], %s431_s0 }
 0x56a   : > { %4326 = vmatpush.bf16.msra.mxu3 %v8202_v5  ;;  %s6387_s30 = sshll.u32 %s432_s24, 4  ;;  %s6388_s30 = int_to_ptr.vmem [resolvable:$true] %s6387_s30 }
 0x56c   : > { %4313 = vmatpush.bf16.msra.mxu2 %v8193_v49 }
 0x56e   : > { %4327 = vmatpush.bf16.msra.mxu3 %v8201_v13 }
 0x570   : > { %4314 = vmatpush.bf16.msra.mxu2 %v8192_v1 }
 0x572   : > { %4328 = vmatpush.bf16.msra.mxu3 %v8200_v50  ;;  %v8224_v50 = vld [vmem:[%s11878_s7 + $0x98] sm:$0xf0] }
 0x574   : > { %4315 = vmatpush.bf16.msra.mxu2 %v8191_v52  ;;  %v8223_v52 = vld [vmem:[%s11878_s7 + $0x94] sm:$0xf] }
 0x576   : > { %4329 = vmatpush.bf16.msra.mxu3 %v8199_v2  ;;  %v7223_v2 = vor.u32 %v8224_v50, %v7222_v37  ;;  %v8209_v37 = vld [vmem:[%s11878_s7 + $0x20] sm:$0xf0] }
 0x578   : > { %4316 = vmatpush.bf16.msra.mxu2 %v8190_v58  ;;  %4451 = vmatpush.bf16.msrb.mxu0 %v7223_v2  ;;  %v7387_v58 = vld [vmem:[%s11878_s7 + $0x168] sm:$0xf]  ;;  %v8219_v2 = vld [vmem:[%s11878_s7 + $0x70] sm:$0xf0] }
 0x57a   : > { %4330 = vmatpush.bf16.msra.mxu3 %v8198_v7 }
 0x57c   : > { %4317 = vmatpush.bf16.msra.mxu2 %v8189_v4  ;;  %v8251_v4 = vld [vmem:[%s11878_s7 + $0x170] sm:$0xf0] }
 0x57e   : > { %4331 = vmatpush.bf16.msra.mxu3 %v8197_v17  ;;  %v7388_v17 = vor.u32 %v8251_v4, %v7387_v58  ;;  %v8259_v58 = vld [vmem:[%s11878_s7 + $0x1b4] sm:$0xf]  ;;  %v7336_v4 = vld [vmem:[%s11878_s7 + $0x108] sm:$0xf] }
 0x580   : > { %4569 = vmatpush.bf16.msrb.mxu2 %v7290_v16  ;;  %v7199_v16 = vor.u32 %v8218_v60, %v7198_v11  ;;  %v8239_v11 = vld [vmem:[%s11878_s7 + $0x110] sm:$0xf0]  ;;  %v8238_v60 = vld [vmem:[%s11878_s7 + $0x10c] sm:$0xf] }
 0x582   : > { %4582 = vmatpush.bf16.msrb.mxu3 %v7294_v14  ;;  %v8237_v14 = vld [vmem:[%s11878_s7 + $0x100] sm:$0xf0] }
 0x583   : > { %v7333_v61 = vor.u32 %v8237_v14, %v7332_v46  ;;  %v8257_v14 = vld [vmem:[%s11878_s7 + $0x1a0] sm:$0xf0] }
 0x584   : > { %4570 = vmatpush.bf16.msrb.mxu2 %v7278_v28  ;;  %v7376_v28 = vor.u32 %v8248_v19, %v7375_v15  ;;  %v8256_v15 = vld [vmem:[%s11878_s7 + $0x19c] sm:$0xf]  ;;  %v7337_v19 = vor.u32 %v8239_v11, %v7336_v4  ;;  %v8247_v11 = vld [vmem:[%s11878_s7 + $0x154] sm:$0xf] }
 0x586   : > { %4583 = vmatpush.bf16.msrb.mxu3 %v7282_v24  ;;  %v7243_v24 = vor.u32 %v8228_v12, %v7242_v55  ;;  %v7324_v55 = vld [vmem:[%s11878_s7 + $0xf0] sm:$0xf]  ;;  %v8236_v12 = vld [vmem:[%s11878_s7 + $0xf8] sm:$0xf0] }
 0x588   : > { %4571 = vmatpush.bf16.msrb.mxu2 %v7266_v43  ;;  %v8245_v43 = vld [vmem:[%s11878_s7 + $0x140] sm:$0xf0] }
 0x58a   : > { %4584 = vmatpush.bf16.msrb.mxu3 %v7270_v32  ;;  %v7364_v32 = vor.u32 %v8245_v43, %v7363_v36  ;;  %v8254_v36 = vld [vmem:[%s11878_s7 + $0x188] sm:$0xf0]  ;;  %v7404_v43 = vld [vmem:[%s11878_s7 + $0x18c] sm:$0xf0] }
 0x5c3   : > { %v8509_v59 = vpop.permute.xlu2 %8508 }
 0x5c4   : > { %v8511_v39 = vunpack.i.h.bf16 %v8509_v59  ;;  %v8510_v27 = vunpack.i.l.bf16 %v8509_v59  ;;  %v7224_v59 = vld [vmem:[%s11878_s7 + $0x9c] sm:$0xf0] }
 0x5db   : > { %v8504_v8 = vpop.permute.xlu1 %8503 }
 0x5dc   : > { %v8506_v30 = vunpack.i.h.bf16 %v8504_v8  ;;  %v8505_v44 = vunpack.i.l.bf16 %v8504_v8  ;;  %v7227_v8 = vor.u32 %v8223_v52, %v7224_v59  ;;  %v7206_v52 = vld [vmem:[%s11878_s7 + $0x68] sm:$0xf] }
 0x5dd   : > { %v7207_v59 = vor.u32 %v8219_v2, %v7206_v52  ;;  %v8271_v2 = vld [vmem:[%s11878_s7 + $0x214] sm:$0xf] }
 0x5de   : > { %v4156_v41 = vsel %vm2491_vm0, %v8506_v30, %v8511_v39  ;;  %v4158_v0 = vsel %vm2491_vm0, %v8511_v39, %v8506_v30  ;;  %v4155_v34 = vsel %vm2491_vm0, %v8505_v44, %v8510_v27  ;;  %v4157_v10 = vsel %vm2491_vm0, %v8510_v27, %v8505_v44  ;;  %v8205_v39 = vld [vmem:[%s11878_s7 + $0x4] sm:$0xf]  ;;  %v7251_v27 = vld [vmem:[%s11878_s7 + $0xc] sm:$0xf0]  ;;  %v7257_v30 = vld [vmem:[%s11878_s7 + $0x8] sm:$0xf]  ;;  %4464 = vmatpush.bf16.msrb.mxu1 %v7227_v8 }
 0x5df   : > { %v10481_v42 = vmax.f32 %v4144_v38, %v4157_v10  ;;  %v10483_v9 = vmax.f32 %v4146_v62, %v4158_v0  ;;  %v4159_v56 = vmax.f32 %v4143_v23, %v4155_v34  ;;  %v4161_v21 = vmax.f32 %v4145_v6, %v4156_v41  ;;  %v8207_v41 = vld [vmem:[%s11878_s7 + $0x10] sm:$0xf0]  ;;  %v7210_v34 = vld [vmem:[%s11878_s7 + $0x78] sm:$0xf]  ;;  %v8221_v10 = vld [vmem:[%s11878_s7 + $0x80] sm:$0xf0] }
 0x5e0   : > { %v7254_v44 = vor.u32 %v8205_v39, %v7251_v27  ;;  %v7258_v0 = vor.u32 %v8207_v41, %v7257_v30  ;;  %v7249_v8 = vld [vmem:[%s11878_s7] sm:$0xf]  ;;  %v8206_v39 = vld [vmem:[%s11878_s7 + $0x8] sm:$0xf0]  ;;  %v7438_v30 = vld [vmem:[%s11878_s7 + $0x1c8] sm:$0xf] }
 0x5e1   : > { %v8517_v53 = vpack.i.bf16 %v10483_v9, %v10481_v42  ;;  %v8512_v57 = vpack.i.bf16 %v4161_v21, %v4159_v56  ;;  %v7250_v27 = vor.u32 %v8206_v39, %v7249_v8  ;;  %v8262_v41 = vld [vmem:[%s11878_s7 + $0x1cc] sm:$0xf]  ;;  %vm6374_vm0 = vcmask 73728  }
 0x5e2   : > { %4572 = vmatpush.bf16.msrb.mxu2 %v7254_v44  ;;  %4585 = vmatpush.bf16.msrb.mxu3 %v7258_v0  ;;  %v8263_v44 = vld [vmem:[%s11878_s7 + $0x1d0] sm:$0xf0]  ;;  %v7440_v0 = vld [vmem:[%s11878_s7 + $0x1d4] sm:$0xf0] }
 0x5e3   : > { %8518 = vrot.lane.b32.xlu1 %v8517_v53, %s8601_s15  ;;  %8513 = vrot.lane.b32.xlu0 %v8512_v57, %s8601_s15  ;;  %v7344_v53 = vld [vmem:[%s11878_s7 + $0x110] sm:$0xf]  ;;  %v8240_v57 = vld [vmem:[%s11878_s7 + $0x118] sm:$0xf0]  ;;  %s6389_s15 = sshll.u32 %s6385_s21, 4  ;;  %s6390_s15 = int_to_ptr.hbm [resolvable:$true] %s6389_s15 }
 0x5e4   : > { %v7345_v7 = vor.u32 %v8240_v57, %v7344_v53  ;;  %v8260_v57 = vld [vmem:[%s11878_s7 + $0x1b8] sm:$0xf0]  ;;  %s8536_s16 = sshra.s32 %s6390_s15, 4  ;;  %s8537_s16 = int_to_ptr.hbm [resolvable:$true] %s8536_s16 }
 0x5e5   : > { %s8538_s22 = scalar_lea.hbm %s8537_s16, 1  ;;  %p8543_p0 = scmp.lt.s32.totalorder %s8537_s16, %s11884_s13 }
 0x5e6   : > { %p8539_p11 = scmp.ne.s32.totalorder %s8537_s16, %s8538_s22  ;;  %p8544_p1 = scmp.lt.s32.totalorder %s8542_s17, %s8538_s22 }
 0x5e8   : > { %p8540_p12 = pnand %p8539_p11, %p8711_p5  ;;  %p8545_p2 = por %p8544_p1, %p8543_p0 }
 0x5ea   : > { %p8541_p13 = pneg %p8540_p12 }
 0x5ec   : > { %p8546_p3 = pnand %p8545_p2, %p8541_p13 }
 0x655   : > { %v8519_v35 = vpop.permute.xlu1 %8518  ;;  %v8514_v23 = vpop.permute.xlu0 %8513 }
 0x656   : > { %v8521_v38 = vunpack.i.h.bf16 %v8519_v35  ;;  %v8520_v62 = vunpack.i.l.bf16 %v8519_v35  ;;  %v8516_v6 = vunpack.i.h.bf16 %v8514_v23  ;;  %v8515_v48 = vunpack.i.l.bf16 %v8514_v23  ;;  %v7230_v35 = vld [vmem:[%s11878_s7 + $0x98] sm:$0xf]  ;;  %v8225_v23 = vld [vmem:[%s11878_s7 + $0xa0] sm:$0xf0] }
 0x658   : > { %v4173_v40 = vsel %vm4171_vm11, %v8516_v6, %v8521_v38  ;;  %v4175_v25 = vsel %vm4171_vm11, %v8521_v38, %v8516_v6  ;;  %v4172_v47 = vsel %vm4171_vm11, %v8515_v48, %v8520_v62  ;;  %v4174_v54 = vsel %vm4171_vm11, %v8520_v62, %v8515_v48  ;;  %v7273_v38 = vld [vmem:[%s11878_s7 + $0x30] sm:$0xf]  ;;  %v8212_v6 = vld [vmem:[%s11878_s7 + $0x38] sm:$0xf0] }
 0x659   : > { %v4178_v33 = vmax.f32 %v4161_v21, %v4173_v40  ;;  %v4179_v22 = vmax.f32 %v10483_v9, %v4175_v25  ;;  %v4176_v5 = vmax.f32 %v4159_v56, %v4172_v47  ;;  %v4177_v49 = vmax.f32 %v10481_v42, %v4174_v54  ;;  %v8220_v42 = vld [vmem:[%s11878_s7 + $0x7c] sm:$0xf]  ;;  %v7212_v56 = vld [vmem:[%s11878_s7 + $0x84] sm:$0xf0]  ;;  %v8231_v25 = vld [vmem:[%s11878_s7 + $0xd0] sm:$0xf0] }
 0x65a   : > { %v7211_v9 = vor.u32 %v8221_v10, %v7210_v34  ;;  %v7215_v21 = vor.u32 %v8220_v42, %v7212_v56  ;;  %v7231_v62 = vor.u32 %v8225_v23, %v7230_v35  ;;  %v7274_v48 = vor.u32 %v8212_v6, %v7273_v38  ;;  %v7308_v40 = vld [vmem:[%s11878_s7 + $0xc8] sm:$0xf]  ;;  %v7351_v47 = vld [vmem:[%s11878_s7 + $0x120] sm:$0xf]  ;;  %v7312_v23 = vld [vmem:[%s11878_s7 + $0xd8] sm:$0xf] }
 0x65b   : > { %v4180_v13 = vpack.c.bf16 %v4178_v33, %v4176_v5  ;;  %v4181_v1 = vpack.c.bf16 %v4179_v22, %v4177_v49  ;;  %v7309_v54 = vor.u32 %v8231_v25, %v7308_v40  ;;  %v8242_v33 = vld [vmem:[%s11878_s7 + $0x128] sm:$0xf0]  ;;  %v7218_v22 = vld [vmem:[%s11878_s7 + $0x80] sm:$0xf]  ;;  %v7443_v56 = vor.u32 %v8262_v41, %v7440_v0  ;;  %v8233_v38 = vld [vmem:[%s11878_s7 + $0xe0] sm:$0xf0] }
 0x65c   : > { %4452 = vmatpush.bf16.msrb.mxu0 %v7211_v9  ;;  %4465 = vmatpush.bf16.msrb.mxu1 %v7215_v21  ;;  %v8222_v5 = vld [vmem:[%s11878_s7 + $0x88] sm:$0xf0]  ;;  %v7352_v49 = vor.u32 %v8242_v33, %v7351_v47  ;;  %v7439_v9 = vor.u32 %v8263_v44, %v7438_v30  ;;  %v7426_v21 = vld [vmem:[%s11878_s7 + $0x1b0] sm:$0xf]  ;;  %v7314_v6 = vld [vmem:[%s11878_s7 + $0xe4] sm:$0xf0] }
 0x65d   : > { %4318 = vmatmul.bf16.vlgmr.msra.gmra.mxu2 %v4180_v13  ;;  %4332 = vmatmul.bf16.vlgmr.msra.gmra.mxu3 %v4181_v1  ;;  %v7219_v13 = vor.u32 %v8222_v5, %v7218_v22  ;;  %v7261_v1 = vld [vmem:[%s11878_s7 + $0x18] sm:$0xf]  ;;  %v8274_v25 = vld [vmem:[%s11878_s7 + $0x22c] sm:$0xf]  ;;  %v8276_v33 = vld [vmem:[%s11878_s7 + $0x238] sm:$0xf0]  ;;  %v7313_v22 = vor.u32 %v8233_v38, %v7312_v23 }
 0x65e   : > { %4705 = vmatpush.bf16.msra.mxu2 %v7345_v7  ;;  %4805 = vmatpush.bf16.msra.mxu3 %v7388_v17  ;;  %v7262_v50 = vor.u32 %v8209_v37, %v7261_v1  ;;  %v7428_v7 = vld [vmem:[%s11878_s7 + $0x1bc] sm:$0xf0]  ;;  %v7491_v47 = vld [vmem:[%s11878_s7 + $0x234] sm:$0xf0]  ;;  %v8229_v1 = vld [vmem:[%s11878_s7 + $0xc4] sm:$0xf] }
 0x65f   : > { %v7431_v26 = vor.u32 %v8259_v58, %v7428_v7  ;;  %v7302_v37 = vld [vmem:[%s11878_s7 + $0xcc] sm:$0xf0]  ;;  %v8273_v30 = vld [vmem:[%s11878_s7 + $0x220] sm:$0xf0]  ;;  %v8250_v0 = vld [vmem:[%s11878_s7 + $0x16c] sm:$0xf] }
 0x660   : > { %4453 = vmatpush.bf16.msrb.mxu0 %v7199_v16  ;;  %4466 = vmatpush.bf16.msrb.mxu1 %v7203_v18  ;;  %v7427_v16 = vor.u32 %v8260_v57, %v7426_v21  ;;  %v7414_v18 = vld [vmem:[%s11878_s7 + $0x198] sm:$0xf]  ;;  %v7305_v41 = vor.u32 %v8229_v1, %v7302_v37  ;;  %v8268_v21 = vld [vmem:[%s11878_s7 + $0x1fc] sm:$0xf]  ;;  %v7467_v57 = vld [vmem:[%s11878_s7 + $0x204] sm:$0xf0] }
 0x661   : > { %v7473_v58 = vld [vmem:[%s11878_s7 + $0x200] sm:$0xf]  ;;  %v8270_v7 = vld [vmem:[%s11878_s7 + $0x208] sm:$0xf0]  ;;  %v8241_v23 = vld [vmem:[%s11878_s7 + $0x124] sm:$0xf] }
 0x662   : > { %4706 = vmatpush.bf16.msra.mxu2 %v7333_v61  ;;  %4806 = vmatpush.bf16.msra.mxu3 %v7376_v28  ;;  %v7416_v61 = vld [vmem:[%s11878_s7 + $0x1a4] sm:$0xf0]  ;;  %v7341_v28 = vor.u32 %v8238_v60, %v7338_v20  ;;  %v7377_v60 = vld [vmem:[%s11878_s7 + $0x15c] sm:$0xf0]  ;;  %v7383_v20 = vld [vmem:[%s11878_s7 + $0x158] sm:$0xf] }
 0x663   : > { %v7419_v29 = vor.u32 %v8256_v15, %v7416_v61  ;;  %v7455_v15 = vld [vmem:[%s11878_s7 + $0x1ec] sm:$0xf0]  ;;  %v7461_v61 = vld [vmem:[%s11878_s7 + $0x1e8] sm:$0xf]  ;;  %v8264_v1 = vld [vmem:[%s11878_s7 + $0x1d8] sm:$0xf0] }
 0x664   : > { %4476 = vmatpush.bf16.msra.mxu0 %v7243_v24  ;;  %4556 = vmatpush.bf16.msra.mxu1 %v7286_v51  ;;  %v8235_v24 = vld [vmem:[%s11878_s7 + $0xf4] sm:$0xf]  ;;  %v7415_v51 = vor.u32 %v8257_v14, %v7414_v18  ;;  %v7474_v18 = vor.u32 %v8270_v7, %v7473_v58  ;;  %v8265_v14 = vld [vmem:[%s11878_s7 + $0x1e4] sm:$0xf]  ;;  %v7353_v38 = vld [vmem:[%s11878_s7 + $0x12c] sm:$0xf0] }
 0x665   : > { %v7329_v35 = vor.u32 %v8235_v24, %v7326_v63  ;;  %v7371_v24 = vld [vmem:[%s11878_s7 + $0x140] sm:$0xf]  ;;  %v8246_v63 = vld [vmem:[%s11878_s7 + $0x148] sm:$0xf0]  ;;  %v7489_v37 = vld [vmem:[%s11878_s7 + $0x228] sm:$0xf] }
 0x666   : > { %4707 = vmatpush.bf16.msra.mxu2 %v7321_v45  ;;  %4807 = vmatpush.bf16.msra.mxu3 %v7364_v32  ;;  %v8253_v45 = vld [vmem:[%s11878_s7 + $0x184] sm:$0xf]  ;;  %v7325_v32 = vor.u32 %v8236_v12, %v7324_v55  ;;  %v7365_v12 = vld [vmem:[%s11878_s7 + $0x144] sm:$0xf0]  ;;  %v8279_v58 = vld [vmem:[%s11878_s7 + $0x250] sm:$0xf0] }
 0x667   : > { %v7407_v40 = vor.u32 %v8253_v45, %v7404_v43  ;;  %v7591_v45 = vld [vmem:[%s11878_s7 + $0x2e8] sm:$0xf]  ;;  %v8299_v43 = vld [vmem:[%s11878_s7 + $0x2f0] sm:$0xf0]  ;;  %v7555_v7 = vld [vmem:[%s11878_s7 + $0x2a0] sm:$0xf] }
 0x668   : > { %4477 = vmatpush.bf16.msra.mxu0 %v7231_v62  ;;  %4557 = vmatpush.bf16.msra.mxu1 %v7274_v48  ;;  %v8232_v62 = vld [vmem:[%s11878_s7 + $0xdc] sm:$0xf]  ;;  %v7403_v48 = vor.u32 %v8254_v36, %v7402_v31  ;;  %v7548_v31 = vld [vmem:[%s11878_s7 + $0x290] sm:$0xf] }
 0x669   : > { %v7317_v5 = vor.u32 %v8232_v62, %v7314_v6  ;;  %v8288_v36 = vld [vmem:[%s11878_s7 + $0x298] sm:$0xf0]  ;;  %v7359_v62 = vld [vmem:[%s11878_s7 + $0x128] sm:$0xf]  ;;  %v8243_v6 = vld [vmem:[%s11878_s7 + $0x130] sm:$0xf0] }
 0x66a   : > { %4708 = vmatpush.bf16.msra.mxu2 %v7309_v54  ;;  %4808 = vmatpush.bf16.msra.mxu3 %v7352_v49  ;;  %v7497_v54 = vld [vmem:[%s11878_s7 + $0x230] sm:$0xf]  ;;  %v7300_v49 = vld [vmem:[%s11878_s7 + $0xc0] sm:$0xf] }
 0x66b   : > { %v7498_v52 = vor.u32 %v8276_v33, %v7497_v54  ;;  %v8285_v54 = vld [vmem:[%s11878_s7 + $0x280] sm:$0xf0]  ;;  %v7579_v33 = vld [vmem:[%s11878_s7 + $0x2d0] sm:$0xf] }
 0x66c   : > { %4478 = vmatpush.bf16.msra.mxu0 %v7219_v13  ;;  %4558 = vmatpush.bf16.msra.mxu1 %v7262_v50  ;;  %v8230_v13 = vld [vmem:[%s11878_s7 + $0xc8] sm:$0xf0]  ;;  %v7494_v50 = vor.u32 %v8274_v25, %v7491_v47  ;;  %v7592_v25 = vor.u32 %v8299_v43, %v7591_v45  ;;  %v7536_v47 = vld [vmem:[%s11878_s7 + $0x278] sm:$0xf]  ;;  %v8308_v45 = vld [vmem:[%s11878_s7 + $0x338] sm:$0xf0] }
 0x66d   : > { %v7301_v44 = vor.u32 %v8230_v13, %v7300_v49  ;;  %v7360_v49 = vor.u32 %v8243_v6, %v7359_v62  ;;  %v7446_v13 = vld [vmem:[%s11878_s7 + $0x1d0] sm:$0xf]  ;;  %v8307_v43 = vld [vmem:[%s11878_s7 + $0x334] sm:$0xf]  ;;  %v8286_v6 = vld [vmem:[%s11878_s7 + $0x28c] sm:$0xf] }
 0x66e   : > { %v8287_v62 = vld [vmem:[%s11878_s7 + $0x290] sm:$0xf0] }
 0x670   : > { %4479 = vmatpush.bf16.msra.mxu0 %v7207_v59  ;;  %4559 = vmatpush.bf16.msra.mxu1 %v7250_v27  ;;  %v7479_v59 = vld [vmem:[%s11878_s7 + $0x21c] sm:$0xf0]  ;;  %v7485_v27 = vld [vmem:[%s11878_s7 + $0x218] sm:$0xf] }
 0x6e0   : > { %v4319_v34 = vpop.f32.mrf.mxu2  ;;  %v4333_v10 = vpop.f32.mrf.mxu3 }
 0x6e1   : > { %v4334_v42 = vadd.f32 %v4333_v10, %v4319_v34  ;;  %v7389_v34 = vld [vmem:[%s11878_s7 + $0x174] sm:$0xf0]  ;;  %v7395_v10 = vld [vmem:[%s11878_s7 + $0x170] sm:$0xf] }
 0x6e2   : > { %v7392_v4 = vor.u32 %v8250_v0, %v7389_v34  ;;  %v7434_v34 = vld [vmem:[%s11878_s7 + $0x1b8] sm:$0xf] }
 0x6e3   : > { %v10711_v53 = vpack.c.bf16 %v4334_v42, %v4334_v42  ;;  %v8252_v42 = vld [vmem:[%s11878_s7 + $0x178] sm:$0xf0] }
 0x6e5   : > { %v4373_v17 = vunpack.c.l.b16 %v10711_v53  ;;  %7296 = vmatmul.msk.bf16.vlgmr.msrb.gmra.mxu2 %vm4442_vm12, %v10711_v53  ;;  %7297 = vmatmul.msk.bf16.vlgmr.msrb.gmra.mxu3 %vm4442_vm12, %v10711_v53 }
 0x6e6   : > { %4931 = vmatpush.bf16.msrb.mxu2 %v7439_v9  ;;  %4944 = vmatpush.bf16.msrb.mxu3 %v7443_v56  ;;  %v7482_v9 = vor.u32 %v8271_v2, %v7479_v59  ;;  %v7486_v56 = vor.u32 %v8273_v30, %v7485_v27  ;;  %v7524_v59 = vld [vmem:[%s11878_s7 + $0x260] sm:$0xf]  ;;  %v8282_v27 = vld [vmem:[%s11878_s7 + $0x268] sm:$0xf0]  ;;  %v7567_v30 = vld [vmem:[%s11878_s7 + $0x2b8] sm:$0xf] }
 0x6e7   : > { %v10742_v46 = vpack.c.b16 %v4373_v17, %v4373_v17  ;;  %v7396_v17 = vor.u32 %v8252_v42, %v7395_v10  ;;  %v8261_v10 = vld [vmem:[%s11878_s7 + $0x1c0] sm:$0xf0]  ;;  %v7477_v42 = vld [vmem:[%s11878_s7 + $0x210] sm:$0xf] }
 0x6e9   : > { %v10760_v3 = vshrl.u32 %v10742_v46, 16  ;;  %v10827_v8 = vrot.slane %v10742_v46, 1 }
 0x6ea   : > { %4932 = vmatpush.bf16.msrb.mxu2 %v7427_v16  ;;  %4945 = vmatpush.bf16.msrb.mxu3 %v7431_v26  ;;  %v8249_v16 = vld [vmem:[%s11878_s7 + $0x160] sm:$0xf0]  ;;  %v7470_v26 = vor.u32 %v8268_v21, %v7467_v57  ;;  %v7512_v57 = vld [vmem:[%s11878_s7 + $0x248] sm:$0xf] }
 0x6eb   : > { %7244 = vmatmul.msk.bf16.vlgmr.msrb.gmra.mxu0 %vm4442_vm12, %v10760_v3  ;;  %7245 = vmatmul.msk.bf16.vlgmr.msrb.gmra.mxu1 %vm4442_vm12, %v10760_v3  ;;  %v10830_v39 = vrot.slane %v10760_v3, 1  ;;  %v7384_v55 = vor.u32 %v8249_v16, %v7383_v20  ;;  %v7465_v20 = vld [vmem:[%s11878_s7 + $0x1f8] sm:$0xf]  ;;  %v8269_v16 = vld [vmem:[%s11878_s7 + $0x200] sm:$0xf0] }
 0x6ec   : > { %4679 = vmatpush.bf16.msrb.mxu0 %v7337_v19  ;;  %4692 = vmatpush.bf16.msrb.mxu1 %v7341_v28  ;;  %v8267_v19 = vld [vmem:[%s11878_s7 + $0x1f0] sm:$0xf0]  ;;  %v7380_v28 = vor.u32 %v8247_v11, %v7377_v60  ;;  %v8258_v60 = vld [vmem:[%s11878_s7 + $0x1a8] sm:$0xf0] }
 0x6ee   : > { %4933 = vmatpush.bf16.msrb.mxu2 %v7415_v51  ;;  %4946 = vmatpush.bf16.msrb.mxu3 %v7419_v29  ;;  %v7458_v51 = vor.u32 %v8265_v14, %v7455_v15  ;;  %v7462_v29 = vor.u32 %v8267_v19, %v7461_v61  ;;  %v7642_v14 = vld [vmem:[%s11878_s7 + $0x348] sm:$0xf]  ;;  %v8311_v15 = vld [vmem:[%s11878_s7 + $0x350] sm:$0xf0]  ;;  %v8310_v61 = vld [vmem:[%s11878_s7 + $0x34c] sm:$0xf] }
 0x6ef   : > { %v7644_v19 = vld [vmem:[%s11878_s7 + $0x354] sm:$0xf0] }
 0x6f0   : > { %4680 = vmatpush.bf16.msrb.mxu0 %v7325_v32  ;;  %4693 = vmatpush.bf16.msrb.mxu1 %v7329_v35  ;;  %v7372_v35 = vor.u32 %v8246_v63, %v7371_v24  ;;  %v7453_v24 = vld [vmem:[%s11878_s7 + $0x1e0] sm:$0xf]  ;;  %v8266_v63 = vld [vmem:[%s11878_s7 + $0x1e8] sm:$0xf0] }
 0x6f2   : > { %4934 = vmatpush.bf16.msrb.mxu2 %v7403_v48  ;;  %4947 = vmatpush.bf16.msrb.mxu3 %v7407_v40  ;;  %v10931_v48 = vrot.slane %v10742_v46, 2  ;;  %v7549_v40 = vor.u32 %v8288_v36, %v7548_v31  ;;  %v7647_v31 = vor.u32 %v8310_v61, %v7644_v19  ;;  %v7630_v36 = vld [vmem:[%s11878_s7 + $0x330] sm:$0xf]  ;;  %v8319_v61 = vld [vmem:[%s11878_s7 + $0x394] sm:$0xf] }
 0x6f3   : > { %v7683_v19 = vld [vmem:[%s11878_s7 + $0x39c] sm:$0xf0] }
 0x6f4   : > { %4681 = vmatpush.bf16.msrb.mxu0 %v7313_v22  ;;  %4694 = vmatpush.bf16.msrb.mxu1 %v7317_v5  ;;  %v8296_v22 = vld [vmem:[%s11878_s7 + $0x2d8] sm:$0xf0]  ;;  %v7356_v5 = vor.u32 %v8241_v23, %v7353_v38  ;;  %v7454_v23 = vor.u32 %v8266_v63, %v7453_v24  ;;  %v7540_v38 = vld [vmem:[%s11878_s7 + $0x288] sm:$0xf]  ;;  %v7599_v24 = vld [vmem:[%s11878_s7 + $0x2f0] sm:$0xf] }
 0x6f5   : > { %7348 = vmatmul.msk.bf16.vlgmr.msra.gmra.mxu2 %vm4442_vm12, %v10827_v8  ;;  %7397 = vmatmul.msk.bf16.vlgmr.msra.gmra.mxu3 %vm4442_vm12, %v10830_v39  ;;  %v7580_v2 = vor.u32 %v8296_v22, %v7579_v33  ;;  %v8305_v33 = vld [vmem:[%s11878_s7 + $0x320] sm:$0xf0]  ;;  %v8304_v22 = vld [vmem:[%s11878_s7 + $0x31c] sm:$0xf] }
 0x6f6   : > { %5070 = vmatpush.bf16.msra.mxu2 %v7494_v50  ;;  %5083 = vmatpush.bf16.msra.mxu3 %v7498_v52  ;;  %v8275_v50 = vld [vmem:[%s11878_s7 + $0x230] sm:$0xf0]  ;;  %v7537_v52 = vor.u32 %v8285_v54, %v7536_v47  ;;  %v7618_v54 = vld [vmem:[%s11878_s7 + $0x318] sm:$0xf]  ;;  %v8300_v63 = vld [vmem:[%s11878_s7 + $0x2f8] sm:$0xf0] }
 0x6f7   : > { %v7490_v0 = vor.u32 %v8275_v50, %v7489_v37  ;;  %v8284_v37 = vld [vmem:[%s11878_s7 + $0x278] sm:$0xf0]  ;;  %v8283_v50 = vld [vmem:[%s11878_s7 + $0x274] sm:$0xf] }
 0x6f8   : > { %4682 = vmatpush.bf16.msrb.mxu0 %v7301_v44  ;;  %4695 = vmatpush.bf16.msrb.mxu1 %v7305_v41  ;;  %v8293_v44 = vld [vmem:[%s11878_s7 + $0x2c0] sm:$0xf0]  ;;  %v7447_v41 = vor.u32 %v8264_v1, %v7446_v13  ;;  %v7528_v1 = vld [vmem:[%s11878_s7 + $0x270] sm:$0xf] }
 0x6f9   : > { %v7568_v21 = vor.u32 %v8293_v44, %v7567_v30  ;;  %v8302_v30 = vld [vmem:[%s11878_s7 + $0x308] sm:$0xf0]  ;;  %v8301_v44 = vld [vmem:[%s11878_s7 + $0x304] sm:$0xf] }
 0x6fa   : > { %5071 = vmatpush.bf16.msra.mxu2 %v7482_v9  ;;  %5084 = vmatpush.bf16.msra.mxu3 %v7486_v56  ;;  %v8272_v9 = vld [vmem:[%s11878_s7 + $0x218] sm:$0xf0]  ;;  %v7525_v56 = vor.u32 %v8282_v27, %v7524_v59  ;;  %v7606_v27 = vld [vmem:[%s11878_s7 + $0x300] sm:$0xf] }
 0x6fb   : > { %7246 = vmatmul.msk.bf16.vlgmr.msra.gmra.mxu0 %vm4442_vm12, %v10760_v3  ;;  %7295 = vmatmul.msk.bf16.vlgmr.msra.gmra.mxu1 %vm4442_vm12, %v10711_v53  ;;  %v8244_v53 = vld [vmem:[%s11878_s7 + $0x13c] sm:$0xf]  ;;  %v7478_v11 = vor.u32 %v8272_v9, %v7477_v42  ;;  %v7518_v9 = vld [vmem:[%s11878_s7 + $0x264] sm:$0xf0] }
 0x6fc   : > { %4818 = vmatpush.bf16.msra.mxu0 %v7392_v4  ;;  %4831 = vmatpush.bf16.msra.mxu1 %v7396_v17  ;;  %v7368_v32 = vor.u32 %v8244_v53, %v7365_v12  ;;  %v8290_v4 = vld [vmem:[%s11878_s7 + $0x2a8] sm:$0xf0]  ;;  %v7435_v17 = vor.u32 %v8261_v10, %v7434_v34  ;;  %v7410_v53 = vld [vmem:[%s11878_s7 + $0x188] sm:$0xf]  ;;  %v8255_v12 = vld [vmem:[%s11878_s7 + $0x190] sm:$0xf0] }
 0x6fd   : > { %v8281_v10 = vld [vmem:[%s11878_s7 + $0x260] sm:$0xf0]  ;;  %v8280_v42 = vld [vmem:[%s11878_s7 + $0x25c] sm:$0xf] }
 0x6fe   : > { %5072 = vmatpush.bf16.msra.mxu2 %v7470_v26  ;;  %5085 = vmatpush.bf16.msra.mxu3 %v7474_v18  ;;  %v7513_v26 = vor.u32 %v8279_v58, %v7512_v57  ;;  %v7556_v18 = vor.u32 %v8290_v4, %v7555_v7  ;;  %v8322_v57 = vld [vmem:[%s11878_s7 + $0x3ac] sm:$0xf]  ;;  %v7695_v58 = vld [vmem:[%s11878_s7 + $0x3b4] sm:$0xf0]  ;;  %v7701_v7 = vld [vmem:[%s11878_s7 + $0x3b0] sm:$0xf] }
 0x6ff   : > { %v8324_v4 = vld [vmem:[%s11878_s7 + $0x3b8] sm:$0xf0] }
 0x700   : > { %4819 = vmatpush.bf16.msra.mxu0 %v7380_v28  ;;  %4832 = vmatpush.bf16.msra.mxu1 %v7384_v55  ;;  %v7466_v55 = vor.u32 %v8269_v16, %v7465_v20  ;;  %v8277_v20 = vld [vmem:[%s11878_s7 + $0x244] sm:$0xf]  ;;  %v7506_v16 = vld [vmem:[%s11878_s7 + $0x24c] sm:$0xf0] }
 0x702   : > { %5073 = vmatpush.bf16.msra.mxu2 %v7458_v51  ;;  %5086 = vmatpush.bf16.msra.mxu3 %v7462_v29  ;;  %v11038_v51 = vrot.slane %v10760_v3, 2  ;;  %v7643_v29 = vor.u32 %v8311_v15, %v7642_v14  ;;  %v7698_v14 = vor.u32 %v8322_v57, %v7695_v58  ;;  %v7702_v15 = vor.u32 %v8324_v4, %v7701_v7  ;;  %v7740_v58 = vld [vmem:[%s11878_s7 + $0x3f8] sm:$0xf]  ;;  %v8333_v4 = vld [vmem:[%s11878_s7 + $0x400] sm:$0xf0] }
 0x704   : > { %4820 = vmatpush.bf16.msra.mxu0 %v7368_v32  ;;  %4833 = vmatpush.bf16.msra.mxu1 %v7372_v35  ;;  %v7632_v32 = vld [vmem:[%s11878_s7 + $0x33c] sm:$0xf0]  ;;  %v7411_v35 = vor.u32 %v8255_v12, %v7410_v53  ;;  %v8298_v53 = vld [vmem:[%s11878_s7 + $0x2ec] sm:$0xf]  ;;  %v7593_v12 = vld [vmem:[%s11878_s7 + $0x2f4] sm:$0xf0] }
 0x705   : > { %7448 = vmatmul.msk.bf16.vlgmr.msrb.gmra.mxu2 %vm4442_vm12, %v10931_v48  ;;  %7449 = vmatmul.msk.bf16.vlgmr.msrb.gmra.mxu3 %vm4442_vm12, %v10931_v48  ;;  %v7635_v47 = vor.u32 %v8307_v43, %v7632_v32  ;;  %v7677_v43 = vld [vmem:[%s11878_s7 + $0x380] sm:$0xf]  ;;  %v8318_v32 = vld [vmem:[%s11878_s7 + $0x388] sm:$0xf0] }
 0x706   : > { %5209 = vmatpush.bf16.msrb.mxu2 %v7549_v40  ;;  %5309 = vmatpush.bf16.msrb.mxu3 %v7592_v25  ;;  %v7542_v40 = vld [vmem:[%s11878_s7 + $0x294] sm:$0xf0]  ;;  %v7631_v25 = vor.u32 %v8308_v45, %v7630_v36  ;;  %v8316_v36 = vld [vmem:[%s11878_s7 + $0x37c] sm:$0xf]  ;;  %v7671_v45 = vld [vmem:[%s11878_s7 + $0x384] sm:$0xf0] }
 0x707   : > { %v7545_v13 = vor.u32 %v8286_v6, %v7542_v40  ;;  %v7587_v6 = vld [vmem:[%s11878_s7 + $0x2d8] sm:$0xf]  ;;  %v8297_v40 = vld [vmem:[%s11878_s7 + $0x2e0] sm:$0xf0] }
 0x708   : > { %4821 = vmatpush.bf16.msra.mxu0 %v7356_v5  ;;  %4834 = vmatpush.bf16.msra.mxu1 %v7360_v49  ;;  %v7620_v5 = vld [vmem:[%s11878_s7 + $0x324] sm:$0xf0]  ;;  %v7541_v49 = vor.u32 %v8287_v62, %v7540_v38  ;;  %v8295_v38 = vld [vmem:[%s11878_s7 + $0x2d4] sm:$0xf]  ;;  %v7581_v62 = vld [vmem:[%s11878_s7 + $0x2dc] sm:$0xf0] }
 0x709   : > { %v7623_v59 = vor.u32 %v8304_v22, %v7620_v5  ;;  %v7665_v22 = vld [vmem:[%s11878_s7 + $0x368] sm:$0xf]  ;;  %v8315_v5 = vld [vmem:[%s11878_s7 + $0x370] sm:$0xf0] }
 0x70a   : > { %5210 = vmatpush.bf16.msrb.mxu2 %v7537_v52  ;;  %5310 = vmatpush.bf16.msrb.mxu3 %v7580_v2  ;;  %v7530_v52 = vld [vmem:[%s11878_s7 + $0x27c] sm:$0xf0]  ;;  %v7619_v2 = vor.u32 %v8305_v33, %v7618_v54  ;;  %v8313_v54 = vld [vmem:[%s11878_s7 + $0x364] sm:$0xf]  ;;  %v7659_v33 = vld [vmem:[%s11878_s7 + $0x36c] sm:$0xf0] }
 0x70b   : > { %7346 = vmatmul.msk.bf16.vlgmr.msrb.gmra.mxu0 %vm4442_vm12, %v10827_v8  ;;  %7347 = vmatmul.msk.bf16.vlgmr.msrb.gmra.mxu1 %vm4442_vm12, %v10827_v8  ;;  %v7422_v8 = vld [vmem:[%s11878_s7 + $0x1a0] sm:$0xf]  ;;  %v7533_v34 = vor.u32 %v8283_v50, %v7530_v52  ;;  %v8294_v52 = vld [vmem:[%s11878_s7 + $0x2c8] sm:$0xf0] }
 0x70c   : > { %4957 = vmatpush.bf16.msrb.mxu0 %v7447_v41  ;;  %5057 = vmatpush.bf16.msrb.mxu1 %v7490_v0  ;;  %v7423_v28 = vor.u32 %v8258_v60, %v7422_v8  ;;  %v7608_v41 = vld [vmem:[%s11878_s7 + $0x30c] sm:$0xf0]  ;;  %v7529_v0 = vor.u32 %v8284_v37, %v7528_v1  ;;  %v7504_v8 = vld [vmem:[%s11878_s7 + $0x240] sm:$0xf]  ;;  %v8278_v60 = vld [vmem:[%s11878_s7 + $0x248] sm:$0xf0]  ;;  %v7588_v1 = vor.u32 %v8297_v40, %v7587_v6 }
 0x70d   : > { %v7569_v37 = vld [vmem:[%s11878_s7 + $0x2c4] sm:$0xf0]  ;;  %v7575_v50 = vld [vmem:[%s11878_s7 + $0x2c0] sm:$0xf]  ;;  %v8306_v40 = vld [vmem:[%s11878_s7 + $0x328] sm:$0xf0] }
 0x70e   : > { %5211 = vmatpush.bf16.msrb.mxu2 %v7525_v56  ;;  %5311 = vmatpush.bf16.msrb.mxu3 %v7568_v21  ;;  %v7607_v56 = vor.u32 %v8302_v30, %v7606_v27  ;;  %v7611_v21 = vor.u32 %v8301_v44, %v7608_v41  ;;  %v7752_v27 = vld [vmem:[%s11878_s7 + $0x410] sm:$0xf]  ;;  %v8336_v44 = vld [vmem:[%s11878_s7 + $0x418] sm:$0xf0]  ;;  %v7795_v41 = vld [vmem:[%s11878_s7 + $0x468] sm:$0xf] }
 0x710   : > { %4958 = vmatpush.bf16.msrb.mxu0 %v7435_v17  ;;  %5058 = vmatpush.bf16.msrb.mxu1 %v7478_v11  ;;  %v7521_v11 = vor.u32 %v8280_v42, %v7518_v9  ;;  %v7557_v42 = vld [vmem:[%s11878_s7 + $0x2ac] sm:$0xf0]  ;;  %v7563_v9 = vld [vmem:[%s11878_s7 + $0x2a8] sm:$0xf] }
 0x712   : > { %5212 = vmatpush.bf16.msrb.mxu2 %v7513_v26  ;;  %5312 = vmatpush.bf16.msrb.mxu3 %v7556_v18  ;;  %v11145_v26 = vrot.slane %v10742_v46, 3  ;;  %v11148_v18 = vrot.slane %v10760_v3, 3  ;;  %v7689_v46 = vld [vmem:[%s11878_s7 + $0x398] sm:$0xf]  ;;  %v8321_v3 = vld [vmem:[%s11878_s7 + $0x3a0] sm:$0xf0] }
 0x714   : > { %4959 = vmatpush.bf16.msrb.mxu0 %v7423_v28  ;;  %5059 = vmatpush.bf16.msrb.mxu1 %v7466_v55  ;;  %v7505_v28 = vor.u32 %v8278_v60, %v7504_v8  ;;  %v7509_v55 = vor.u32 %v8277_v20, %v7506_v16  ;;  %v7650_v20 = vld [vmem:[%s11878_s7 + $0x350] sm:$0xf]  ;;  %v8312_v16 = vld [vmem:[%s11878_s7 + $0x358] sm:$0xf0] }
 0x715   : > { %7500 = vmatmul.msk.bf16.vlgmr.msra.gmra.mxu2 %vm4442_vm12, %v11038_v51  ;;  %7501 = vmatmul.msk.bf16.vlgmr.msra.gmra.mxu3 %vm4442_vm12, %v11038_v51 }
 0x716   : > { %5434 = vmatpush.bf16.msra.mxu2 %v7643_v29  ;;  %5447 = vmatpush.bf16.msra.mxu3 %v7647_v31  ;;  %v7686_v29 = vor.u32 %v8319_v61, %v7683_v19  ;;  %v7690_v31 = vor.u32 %v8321_v3, %v7689_v46  ;;  %v7741_v61 = vor.u32 %v8333_v4, %v7740_v58  ;;  %v7728_v46 = vld [vmem:[%s11878_s7 + $0x3e0] sm:$0xf]  ;;  %v8330_v3 = vld [vmem:[%s11878_s7 + $0x3e8] sm:$0xf0] }
 0x718   : > { %4960 = vmatpush.bf16.msrb.mxu0 %v7411_v35  ;;  %5060 = vmatpush.bf16.msrb.mxu1 %v7454_v23  ;;  %v7596_v35 = vor.u32 %v8298_v53, %v7593_v12  ;;  %v7600_v23 = vor.u32 %v8300_v63, %v7599_v24  ;;  %v7651_v53 = vor.u32 %v8312_v16, %v7650_v20  ;;  %v7638_v24 = vld [vmem:[%s11878_s7 + $0x338] sm:$0xf]  ;;  %v8309_v63 = vld [vmem:[%s11878_s7 + $0x340] sm:$0xf0] }
 0x71a   : > { %5435 = vmatpush.bf16.msra.mxu2 %v7631_v25  ;;  %5448 = vmatpush.bf16.msra.mxu3 %v7635_v47  ;;  %v7674_v25 = vor.u32 %v8316_v36, %v7671_v45  ;;  %v7678_v47 = vor.u32 %v8318_v32, %v7677_v43  ;;  %v7729_v36 = vor.u32 %v8330_v3, %v7728_v46  ;;  %v7716_v43 = vld [vmem:[%s11878_s7 + $0x3c8] sm:$0xf]  ;;  %v7803_v46 = vld [vmem:[%s11878_s7 + $0x470] sm:$0xf]  ;;  %v8348_v3 = vld [vmem:[%s11878_s7 + $0x478] sm:$0xf0] }
 0x71b   : > { %7398 = vmatmul.msk.bf16.vlgmr.msra.gmra.mxu0 %vm4442_vm12, %v10830_v39  ;;  %7399 = vmatmul.msk.bf16.vlgmr.msra.gmra.mxu1 %vm4442_vm12, %v10830_v39  ;;  %v7516_v39 = vld [vmem:[%s11878_s7 + $0x258] sm:$0xf] }
 0x71c   : > { %5183 = vmatpush.bf16.msra.mxu0 %v7541_v49  ;;  %5196 = vmatpush.bf16.msra.mxu1 %v7545_v13  ;;  %v7517_v17 = vor.u32 %v8281_v10, %v7516_v39  ;;  %v4321_v49 = vpop.f32.mrf.mxu2  ;;  %v4335_v13 = vpop.f32.mrf.mxu3  ;;  %v7576_v39 = vor.u32 %v8294_v52, %v7575_v50  ;;  %v8289_v10 = vld [vmem:[%s11878_s7 + $0x2a4] sm:$0xf] }
 0x71d   : > { %v4336_v30 = vadd.f32 %v4335_v13, %v4321_v49  ;;  %v7560_v8 = vor.u32 %v8289_v10, %v7557_v42  ;;  %v7614_v13 = vld [vmem:[%s11878_s7 + $0x308] sm:$0xf]  ;;  %v7734_v10 = vld [vmem:[%s11878_s7 + $0x3fc] sm:$0xf0] }
 0x71e   : > { %5436 = vmatpush.bf16.msra.mxu2 %v7619_v2  ;;  %5449 = vmatpush.bf16.msra.mxu3 %v7623_v59  ;;  %v7662_v2 = vor.u32 %v8313_v54, %v7659_v33  ;;  %v7666_v59 = vor.u32 %v8315_v5, %v7665_v22 }
 0x71f   : > { %v11257_v7 = vpack.c.bf16 %v4336_v30, %v4336_v30  ;;  %v7746_v30 = vld [vmem:[%s11878_s7 + $0x414] sm:$0xf0] }
 0x720   : > { %5184 = vmatpush.bf16.msra.mxu0 %v7529_v0  ;;  %5197 = vmatpush.bf16.msra.mxu1 %v7533_v34  ;;  %v8347_v0 = vld [vmem:[%s11878_s7 + $0x470] sm:$0xf0] }
 0x721   : > { %v7796_v57 = vor.u32 %v8347_v0, %v7795_v41  ;;  %v5489_v32 = vunpack.c.l.b16 %v11257_v7  ;;  %v7732_v0 = vld [vmem:[%s11878_s7 + $0x3f0] sm:$0xf] }
 0x722   : > { %5437 = vmatpush.bf16.msra.mxu2 %v7607_v56  ;;  %5450 = vmatpush.bf16.msra.mxu3 %v7611_v21  ;;  %v8291_v56 = vld [vmem:[%s11878_s7 + $0x2b0] sm:$0xf0]  ;;  %v7753_v21 = vor.u32 %v8336_v44, %v7752_v27  ;;  %v8334_v27 = vld [vmem:[%s11878_s7 + $0x40c] sm:$0xf] }
 0x723   : > { %v7564_v60 = vor.u32 %v8291_v56, %v7563_v9  ;;  %v5490_v22 = vpack.c.b16 %v5489_v32, %v5489_v32  ;;  %v7749_v41 = vor.u32 %v8334_v27, %v7746_v30  ;;  %v7720_v56 = vld [vmem:[%s11878_s7 + $0x3d8] sm:$0xf] }
 0x724   : > { %5185 = vmatpush.bf16.msra.mxu0 %v7517_v17  ;;  %5198 = vmatpush.bf16.msra.mxu1 %v7521_v11  ;;  %v7783_v17 = vld [vmem:[%s11878_s7 + $0x450] sm:$0xf]  ;;  %v8344_v11 = vld [vmem:[%s11878_s7 + $0x458] sm:$0xf0] }
 0x725   : > { %7552 = vmatmul.msk.bf16.vlgmr.msrb.gmra.mxu2 %vm4442_vm12, %v11145_v26  ;;  %7601 = vmatmul.msk.bf16.vlgmr.msrb.gmra.mxu3 %vm4442_vm12, %v11148_v18  ;;  %v7784_v19 = vor.u32 %v8344_v11, %v7783_v17  ;;  %v7708_v17 = vld [vmem:[%s11878_s7 + $0x3c0] sm:$0xf]  ;;  %v8326_v11 = vld [vmem:[%s11878_s7 + $0x3c8] sm:$0xf0]  ;;  %v5619_v20 = vrot.slane %v5490_v22, 1 }
 0x726   : > { %5578 = vmatpush.bf16.msrb.mxu2 %v7698_v14  ;;  %5591 = vmatpush.bf16.msrb.mxu3 %v7702_v15  ;;  %v7693_v14 = vld [vmem:[%s11878_s7 + $0x3a8] sm:$0xf]  ;;  %v8323_v15 = vld [vmem:[%s11878_s7 + $0x3b0] sm:$0xf0] }
 0x727   : > { %v7694_v12 = vor.u32 %v8323_v15, %v7693_v14  ;;  %v7709_v14 = vor.u32 %v8326_v11, %v7708_v17 }
 0x728   : > { %5186 = vmatpush.bf16.msra.mxu0 %v7505_v28  ;;  %5199 = vmatpush.bf16.msra.mxu1 %v7509_v55  ;;  %v7771_v28 = vld [vmem:[%s11878_s7 + $0x438] sm:$0xf]  ;;  %v8341_v55 = vld [vmem:[%s11878_s7 + $0x440] sm:$0xf0] }
 0x729   : > { %v7772_v45 = vor.u32 %v8341_v55, %v7771_v28  ;;  %v7804_v55 = vor.u32 %v8348_v3, %v7803_v46 }
 0x72a   : > { %5579 = vmatpush.bf16.msrb.mxu2 %v7686_v29  ;;  %5592 = vmatpush.bf16.msrb.mxu3 %v7690_v31  ;;  %v7681_v29 = vld [vmem:[%s11878_s7 + $0x390] sm:$0xf]  ;;  %v8320_v31 = vld [vmem:[%s11878_s7 + $0x398] sm:$0xf0] }
 0x72b   : > { %7450 = vmatmul.msk.bf16.vlgmr.msrb.gmra.mxu0 %vm4442_vm12, %v10931_v48  ;;  %7499 = vmatmul.msk.bf16.vlgmr.msrb.gmra.mxu1 %vm4442_vm12, %v11038_v51  ;;  %v7584_v48 = vor.u32 %v8295_v38, %v7581_v62  ;;  %v8292_v51 = vld [vmem:[%s11878_s7 + $0x2bc] sm:$0xf]  ;;  %v8338_v38 = vld [vmem:[%s11878_s7 + $0x428] sm:$0xf0]  ;;  %v7639_v62 = vor.u32 %v8309_v63, %v7638_v24  ;;  %v7682_v6 = vor.u32 %v8320_v31, %v7681_v29  ;;  %v7791_v24 = vld [vmem:[%s11878_s7 + $0x458] sm:$0xf] }
 0x72c   : > { %5322 = vmatpush.bf16.msrb.mxu0 %v7596_v35  ;;  %5335 = vmatpush.bf16.msrb.mxu1 %v7600_v23  ;;  %v7572_v34 = vor.u32 %v8292_v51, %v7569_v37  ;;  %v8327_v35 = vld [vmem:[%s11878_s7 + $0x3d0] sm:$0xf0]  ;;  %v7759_v23 = vld [vmem:[%s11878_s7 + $0x420] sm:$0xf]  ;;  %v8314_v51 = vld [vmem:[%s11878_s7 + $0x368] sm:$0xf0] }
 0x72d   : > { %v7717_v54 = vor.u32 %v8327_v35, %v7716_v43  ;;  %v7760_v33 = vor.u32 %v8338_v38, %v7759_v23  ;;  %v5492_v37 = vshrl.u32 %v5490_v22, 16  ;;  %v8345_v63 = vld [vmem:[%s11878_s7 + $0x460] sm:$0xf0]  ;;  %v7779_v43 = vld [vmem:[%s11878_s7 + $0x440] sm:$0xf] }
 0x72e   : > { %5580 = vmatpush.bf16.msrb.mxu2 %v7674_v25  ;;  %5593 = vmatpush.bf16.msrb.mxu3 %v7678_v47  ;;  %v7669_v25 = vld [vmem:[%s11878_s7 + $0x378] sm:$0xf]  ;;  %v8317_v47 = vld [vmem:[%s11878_s7 + $0x380] sm:$0xf0]  ;;  %v7792_v31 = vor.u32 %v8345_v63, %v7791_v24  ;;  %v7761_v38 = vld [vmem:[%s11878_s7 + $0x42c] sm:$0xf0] }
 0x72f   : > { %v7670_v49 = vor.u32 %v8317_v47, %v7669_v25  ;;  %v5745_v16 = vrot.slane %v5492_v37, 1  ;;  %v8337_v23 = vld [vmem:[%s11878_s7 + $0x424] sm:$0xf] }
 0x730   : > { %5323 = vmatpush.bf16.msrb.mxu0 %v7584_v48  ;;  %5336 = vmatpush.bf16.msrb.mxu1 %v7588_v1  ;;  %v8303_v48 = vld [vmem:[%s11878_s7 + $0x310] sm:$0xf0]  ;;  %v7657_v1 = vld [vmem:[%s11878_s7 + $0x360] sm:$0xf] }
 0x731   : > { %v7615_v50 = vor.u32 %v8303_v48, %v7614_v13  ;;  %v7658_v52 = vor.u32 %v8314_v51, %v7657_v1 }
 0x732   : > { %5581 = vmatpush.bf16.msrb.mxu2 %v7662_v2  ;;  %5594 = vmatpush.bf16.msrb.mxu3 %v7666_v59  ;;  %v7744_v2 = vld [vmem:[%s11878_s7 + $0x408] sm:$0xf]  ;;  %v8335_v59 = vld [vmem:[%s11878_s7 + $0x410] sm:$0xf0] }
 0x733   : > { %v7745_v44 = vor.u32 %v8335_v59, %v7744_v2 }
 0x734   : > { %5324 = vmatpush.bf16.msrb.mxu0 %v7572_v34  ;;  %5337 = vmatpush.bf16.msrb.mxu1 %v7576_v39  ;;  %v8332_v34 = vld [vmem:[%s11878_s7 + $0x3f8] sm:$0xf0]  ;;  %v8331_v39 = vld [vmem:[%s11878_s7 + $0x3f4] sm:$0xf] }
 0x735   : > { %7652 = vmatmul.msk.bf16.vlgmr.msra.gmra.mxu2 %vm4442_vm12, %v11257_v7  ;;  %7653 = vmatmul.msk.bf16.vlgmr.msra.gmra.mxu3 %vm4442_vm12, %v11257_v7  ;;  %v7733_v42 = vor.u32 %v8332_v34, %v7732_v0  ;;  %v7737_v9 = vor.u32 %v8331_v39, %v7734_v10 }
 0x736   : > { %5717 = vmatpush.bf16.msra.mxu2 %v7753_v21  ;;  %5817 = vmatpush.bf16.msra.mxu3 %v7796_v57  ;;  %v8329_v21 = vld [vmem:[%s11878_s7 + $0x3e0] sm:$0xf0]  ;;  %v8328_v57 = vld [vmem:[%s11878_s7 + $0x3dc] sm:$0xf] }
 0x737   : > { %v7721_v58 = vor.u32 %v8329_v21, %v7720_v56 }
 0x738   : > { %5325 = vmatpush.bf16.msrb.mxu0 %v7560_v8  ;;  %5338 = vmatpush.bf16.msrb.mxu1 %v7564_v60  ;;  %v8325_v8 = vld [vmem:[%s11878_s7 + $0x3c4] sm:$0xf]  ;;  %v7710_v60 = vld [vmem:[%s11878_s7 + $0x3cc] sm:$0xf0] }
 0x739   : > { %v7713_v15 = vor.u32 %v8325_v8, %v7710_v60 }
 0x73a   : > { %5718 = vmatpush.bf16.msra.mxu2 %v7741_v61  ;;  %5818 = vmatpush.bf16.msra.mxu3 %v7784_v19  ;;  %v8346_v61 = vld [vmem:[%s11878_s7 + $0x46c] sm:$0xf]  ;;  %v7797_v19 = vld [vmem:[%s11878_s7 + $0x474] sm:$0xf0] }
 0x73b   : > { %7550 = vmatmul.msk.bf16.vlgmr.msra.gmra.mxu0 %vm4442_vm12, %v11145_v26  ;;  %7551 = vmatmul.msk.bf16.vlgmr.msra.gmra.mxu1 %vm4442_vm12, %v11145_v26  ;;  %v7626_v26 = vld [vmem:[%s11878_s7 + $0x320] sm:$0xf]  ;;  %v7800_v28 = vor.u32 %v8346_v61, %v7797_v19 }
 0x73c   : > { %5460 = vmatpush.bf16.msra.mxu0 %v7651_v53  ;;  %5565 = vmatpush.bf16.msra.mxu1 %v7694_v12  ;;  %v7627_v5 = vor.u32 %v8306_v40, %v7626_v26  ;;  %v8343_v53 = vld [vmem:[%s11878_s7 + $0x454] sm:$0xf]  ;;  %v7785_v12 = vld [vmem:[%s11878_s7 + $0x45c] sm:$0xf0]  ;;  %v7764_v26 = vor.u32 %v8337_v23, %v7761_v38  ;;  %v8360_v23 = vld [vmem:[%s11880_s9 + $0x54] sm:$0xf0] }
 0x73d   : > { %v7788_v29 = vor.u32 %v8343_v53, %v7785_v12 }
 0x73e   : > { %5719 = vmatpush.bf16.msra.mxu2 %v7729_v36  ;;  %5819 = vmatpush.bf16.msra.mxu3 %v7772_v45  ;;  %v8340_v36 = vld [vmem:[%s11878_s7 + $0x43c] sm:$0xf]  ;;  %v7773_v45 = vld [vmem:[%s11878_s7 + $0x444] sm:$0xf0] }
 0x73f   : > { %v7776_v32 = vor.u32 %v8340_v36, %v7773_v45 }
 0x740   : > { %5461 = vmatpush.bf16.msra.mxu0 %v7639_v62  ;;  %5566 = vmatpush.bf16.msra.mxu1 %v7682_v6  ;;  %v7767_v62 = vld [vmem:[%s11878_s7 + $0x428] sm:$0xf]  ;;  %v8339_v6 = vld [vmem:[%s11878_s7 + $0x430] sm:$0xf0] }
 0x741   : > { %v7768_v40 = vor.u32 %v8339_v6, %v7767_v62 }
 0x742   : > { %5720 = vmatpush.bf16.msra.mxu2 %v7717_v54  ;;  %5820 = vmatpush.bf16.msra.mxu3 %v7760_v33 }
 0x744   : > { %5462 = vmatpush.bf16.msra.mxu0 %v7627_v5  ;;  %5567 = vmatpush.bf16.msra.mxu1 %v7670_v49 }
 0x745   : > { %7704 = vmatmul.msk.bf16.vlgmr.msrb.gmra.mxu2 %vm4442_vm12, %v5492_v37  ;;  %7705 = vmatmul.msk.bf16.vlgmr.msrb.gmra.mxu3 %vm4442_vm12, %v5492_v37 }
 0x748   : > { %5463 = vmatpush.bf16.msra.mxu0 %v7615_v50  ;;  %5568 = vmatpush.bf16.msra.mxu1 %v7658_v52 }
 0x74b   : > { %7602 = vmatmul.msk.bf16.vlgmr.msrb.gmra.mxu0 %vm4442_vm12, %v11148_v18  ;;  %7603 = vmatmul.msk.bf16.vlgmr.msrb.gmra.mxu1 %vm4442_vm12, %v11148_v18  ;;  %v7722_v18 = vld [vmem:[%s11878_s7 + $0x3e4] sm:$0xf0] }
 0x74c   : > { %5691 = vmatpush.bf16.msrb.mxu0 %v7745_v44  ;;  %5704 = vmatpush.bf16.msrb.mxu1 %v7749_v41  ;;  %v7725_v4 = vor.u32 %v8328_v57, %v7722_v18 }
 0x750   : > { %5692 = vmatpush.bf16.msrb.mxu0 %v7733_v42  ;;  %5705 = vmatpush.bf16.msrb.mxu1 %v7737_v9 }
 0x754   : > { %5693 = vmatpush.bf16.msrb.mxu0 %v7721_v58  ;;  %5706 = vmatpush.bf16.msrb.mxu1 %v7725_v4 }
 0x755   : > { %7756 = vmatmul.msk.bf16.vlgmr.msra.gmra.mxu2 %vm4442_vm12, %v5619_v20  ;;  %7805 = vmatmul.msk.bf16.vlgmr.msra.gmra.mxu3 %vm4442_vm12, %v5745_v16 }
 0x758   : > { %5694 = vmatpush.bf16.msrb.mxu0 %v7709_v14  ;;  %5707 = vmatpush.bf16.msrb.mxu1 %v7713_v15 }
 0x75b   : > { %7654 = vmatmul.msk.bf16.vlgmr.msra.gmra.mxu0 %vm4442_vm12, %v11257_v7  ;;  %7703 = vmatmul.msk.bf16.vlgmr.msra.gmra.mxu1 %vm4442_vm12, %v5492_v37  ;;  %v8342_v7 = vld [vmem:[%s11878_s7 + $0x448] sm:$0xf0] }
 0x75c   : > { %5830 = vmatpush.bf16.msra.mxu0 %v7800_v28  ;;  %5843 = vmatpush.bf16.msra.mxu1 %v7804_v55  ;;  %v7780_v35 = vor.u32 %v8342_v7, %v7779_v43  ;;  %v7866_v28 = vld [vmem:[%s11880_s9 + $0x70] sm:$0xf]  ;;  %v8364_v55 = vld [vmem:[%s11880_s9 + $0x74] sm:$0xf0]  ;;  %v7858_v43 = vld [vmem:[%s11880_s9 + $0x60] sm:$0xf] }
 0x75d   : > { %v7867_v53 = vor.u32 %v8364_v55, %v7866_v28  ;;  %v8362_v7 = vld [vmem:[%s11880_s9 + $0x64] sm:$0xf0]  ;;  %v7994_v28 = vld [vmem:[%s11880_s9 + $0x170] sm:$0xf]  ;;  %v8396_v55 = vld [vmem:[%s11880_s9 + $0x174] sm:$0xf0] }
 0x75f   : > { %6166 = vmatpush.bf16.msrb.mxu2 %v7867_v53  ;;  %v7995_v53 = vor.u32 %v8396_v55, %v7994_v28  ;;  %v7908_v28 = vld [vmem:[%s11880_s9 + $0xc8] sm:$0xf0] }
 0x760   : > { %5831 = vmatpush.bf16.msra.mxu0 %v7788_v29  ;;  %5844 = vmatpush.bf16.msra.mxu1 %v7792_v31 }
 0x764   : > { %5832 = vmatpush.bf16.msra.mxu0 %v7776_v32  ;;  %5845 = vmatpush.bf16.msra.mxu1 %v7780_v35  ;;  %v7850_v32 = vld [vmem:[%s11880_s9 + $0x50] sm:$0xf]  ;;  %v7859_v35 = vor.u32 %v8362_v7, %v7858_v43  ;;  %v7932_v43 = vld [vmem:[%s11880_s9 + $0xf8] sm:$0xf0] }
 0x765   : > { %v7851_v6 = vor.u32 %v8360_v23, %v7850_v32  ;;  %v7836_v23 = vld [vmem:[%s11880_s9 + $0x38] sm:$0xf0] }
 0x766   : > { %6167 = vmatpush.bf16.msrb.mxu2 %v7859_v35  ;;  %v8355_v35 = vld [vmem:[%s11880_s9 + $0x34] sm:$0xf] }
 0x768   : > { %v4455_v25 = vpop.f32.mrf.mxu0  ;;  %v4468_v47 = vpop.f32.mrf.mxu1  ;;  %5833 = vmatpush.bf16.msra.mxu0 %v7764_v26  ;;  %5846 = vmatpush.bf16.msra.mxu1 %v7768_v40 }
 0x769   : > { %v4574_v54 = vpop.f32.mrf.mxu2  ;;  %v4587_v33 = vpop.f32.mrf.mxu3 }
 0x76a   : > { %v4575_v22 = vadd.f32 %v4574_v54, %v4468_v47  ;;  %v8358_v47 = vld [vmem:[%s11880_s9 + $0x44] sm:$0xf0]  ;;  %v8363_v54 = vld [vmem:[%s11880_s9 + $0x74] sm:$0xf]  ;;  %6168 = vmatpush.bf16.msrb.mxu2 %v7851_v6  ;;  %v7898_v6 = vld [vmem:[%s11880_s9 + $0xb0] sm:$0xf] }
 0x76b   : > { %7754 = vmatmul.msk.bf16.vlgmr.msrb.gmra.mxu0 %vm4442_vm12, %v5619_v20  ;;  %7755 = vmatmul.msk.bf16.vlgmr.msrb.gmra.mxu1 %vm4442_vm12, %v5619_v20 }
 0x76c   : > { %6192 = vmatpush.bf16.msrb.mxu0 %v7995_v53  ;;  %v7874_v53 = vld [vmem:[%s11880_s9 + $0x80] sm:$0xf] }
 0x770   : > { %v4457_v5 = vpop.f32.mrf.mxu0  ;;  %v4470_v49 = vpop.f32.mrf.mxu1 }
 0x771   : > { %v4576_v13 = vpop.f32.mrf.mxu2  ;;  %v4589_v48 = vpop.f32.mrf.mxu3  ;;  %v8380_v5 = vld [vmem:[%s11880_s9 + $0xf4] sm:$0xf0] }
 0x778   : > { %v4481_v1 = vpop.f32.mrf.mxu0  ;;  %v4561_v51 = vpop.f32.mrf.mxu1 }
 0x779   : > { %v4588_v37 = vadd.f32 %v4587_v33, %v4481_v1  ;;  %v4562_v50 = vadd.f32 %v4561_v51, %v4455_v25  ;;  %v4710_v52 = vpop.f32.mrf.mxu2  ;;  %v4810_v2 = vpop.f32.mrf.mxu3  ;;  %v7842_v25 = vld [vmem:[%s11880_s9 + $0x40] sm:$0xf]  ;;  %v7868_v33 = vld [vmem:[%s11880_s9 + $0x78] sm:$0xf0]  ;;  %v7834_v1 = vld [vmem:[%s11880_s9 + $0x30] sm:$0xf] }
 0x77a   : > { %v7871_v49 = vor.u32 %v8363_v54, %v7868_v33  ;;  %v7843_v48 = vor.u32 %v8358_v47, %v7842_v25  ;;  %v8356_v51 = vld [vmem:[%s11880_s9 + $0x34] sm:$0xf0]  ;;  %v7839_v33 = vor.u32 %v8355_v35, %v7836_v23 }
 0x77b   : > { %v4716_v59 = vadd.f32 %v4710_v52, %v4588_v37  ;;  %7806 = vmatmul.msk.bf16.vlgmr.msra.gmra.mxu0 %vm4442_vm12, %v5745_v16  ;;  %7807 = vmatmul.msk.bf16.vlgmr.msra.gmra.mxu1 %vm4442_vm12, %v5745_v16  ;;  %v7835_v52 = vor.u32 %v8356_v51, %v7834_v1  ;;  %v8377_v1 = vld [vmem:[%s11880_s9 + $0xe4] sm:$0xf] }
 0x77c   : > { %6205 = vmatpush.bf16.msrb.mxu1 %v7871_v49  ;;  %6169 = vmatpush.bf16.msrb.mxu2 %v7843_v48  ;;  %v7828_v48 = vld [vmem:[%s11880_s9 + $0x28] sm:$0xf0] }
 0x780   : > { %v4483_v27 = vpop.f32.mrf.mxu0  ;;  %v4563_v30 = vpop.f32.mrf.mxu1  ;;  %6170 = vmatpush.bf16.msrb.mxu2 %v7835_v52  ;;  %v7924_v52 = vld [vmem:[%s11880_s9 + $0xe8] sm:$0xf0] }
 0x781   : > { %v4712_v44 = vpop.f32.mrf.mxu2  ;;  %v4812_v41 = vpop.f32.mrf.mxu3  ;;  %v8361_v27 = vld [vmem:[%s11880_s9 + $0x64] sm:$0xf]  ;;  %v7860_v30 = vld [vmem:[%s11880_s9 + $0x68] sm:$0xf0] }
 0x782   : > { %v7922_v44 = vld [vmem:[%s11880_s9 + $0xe0] sm:$0xf]  ;;  %v7863_v41 = vor.u32 %v8361_v27, %v7860_v30  ;;  %v8370_v30 = vld [vmem:[%s11880_s9 + $0xa4] sm:$0xf0] }
 0x783   : > { %v7890_v27 = vld [vmem:[%s11880_s9 + $0xa0] sm:$0xf] }
 0x784   : > { %6206 = vmatpush.bf16.msrb.mxu1 %v7863_v41 }
 0x788   : > { %v4684_v0 = vpop.f32.mrf.mxu0  ;;  %v4697_v34 = vpop.f32.mrf.mxu1 }
 0x789   : > { %v4714_v39 = vadd.f32 %v4684_v0, %v4562_v50  ;;  %v4715_v10 = vadd.f32 %v4697_v34, %v4575_v22  ;;  %v4936_v42 = vpop.f32.mrf.mxu2  ;;  %v4949_v9 = vpop.f32.mrf.mxu3  ;;  %v7930_v22 = vld [vmem:[%s11880_s9 + $0xf0] sm:$0xf]  ;;  %v8378_v0 = vld [vmem:[%s11880_s9 + $0xe4] sm:$0xf0]  ;;  %v7826_v34 = vld [vmem:[%s11880_s9 + $0x20] sm:$0xf] }
 0x78a   : > { %v7931_v13 = vor.u32 %v8380_v5, %v7930_v22 }
 0x78b   : > { %v4840_v56 = vadd.f32 %v4810_v2, %v4714_v39  ;;  %v8354_v39 = vld [vmem:[%s11880_s9 + $0x24] sm:$0xf0] }
 0x78c   : > { %6179 = vmatpush.bf16.msrb.mxu3 %v7931_v13  ;;  %v8353_v13 = vld [vmem:[%s11880_s9 + $0x24] sm:$0xf] }
 0x78d   : > { %v11460_v21 = vadd.f32 %v4936_v42, %v4840_v56  ;;  %v7827_v42 = vor.u32 %v8354_v39, %v7826_v34  ;;  %v7852_v56 = vld [vmem:[%s11880_s9 + $0x58] sm:$0xf0]  ;;  %v7831_v51 = vor.u32 %v8353_v13, %v7828_v48  ;;  %v7891_v34 = vor.u32 %v8370_v30, %v7890_v27  ;;  %v7978_v39 = vld [vmem:[%s11880_s9 + $0x150] sm:$0xf] }
 0x78f   : > { %6171 = vmatpush.bf16.msrb.mxu2 %v7827_v42 }
 0x790   : > { %v4686_v57 = vpop.f32.mrf.mxu0  ;;  %v4699_v18 = vpop.f32.mrf.mxu1 }
 0x791   : > { %v4938_v58 = vpop.f32.mrf.mxu2  ;;  %v4951_v4 = vpop.f32.mrf.mxu3  ;;  %v7914_v57 = vld [vmem:[%s11880_s9 + $0xd0] sm:$0xf] }
 0x798   : > { %v4823_v17 = vpop.f32.mrf.mxu0  ;;  %v4836_v11 = vpop.f32.mrf.mxu1 }
 0x799   : > { %v4841_v8 = vadd.f32 %v4823_v17, %v4715_v10  ;;  %v4842_v60 = vadd.f32 %v4836_v11, %v4716_v59  ;;  %v5075_v20 = vpop.f32.mrf.mxu2  ;;  %v5088_v16 = vpop.f32.mrf.mxu3  ;;  %v7923_v10 = vor.u32 %v8378_v0, %v7922_v44  ;;  %v8376_v17 = vld [vmem:[%s11880_s9 + $0xd4] sm:$0xf0]  ;;  %v7818_v11 = vld [vmem:[%s11880_s9 + $0x10] sm:$0xf]  ;;  %v7927_v0 = vor.u32 %v8377_v1, %v7924_v52 }
 0x79b   : > { %v4967_v14 = vadd.f32 %v4949_v9, %v4841_v8  ;;  %v8359_v9 = vld [vmem:[%s11880_s9 + $0x54] sm:$0xf]  ;;  %v8352_v8 = vld [vmem:[%s11880_s9 + $0x14] sm:$0xf0]  ;;  %6180 = vmatpush.bf16.msrb.mxu3 %v7923_v10 }
 0x79c   : > { %v7855_v4 = vor.u32 %v8359_v9, %v7852_v56  ;;  %v8392_v10 = vld [vmem:[%s11880_s9 + $0x154] sm:$0xf0] }
 0x79d   : > { %v11462_v15 = vadd.f32 %v5075_v20, %v4967_v14  ;;  %v7819_v14 = vor.u32 %v8352_v8, %v7818_v11  ;;  %v7979_v56 = vor.u32 %v8392_v10, %v7978_v39  ;;  %v7882_v11 = vld [vmem:[%s11880_s9 + $0x90] sm:$0xf]  ;;  %v8368_v8 = vld [vmem:[%s11880_s9 + $0x94] sm:$0xf0]  ;;  %v8391_v10 = vld [vmem:[%s11880_s9 + $0x154] sm:$0xf] }
 0x79e   : > { %6207 = vmatpush.bf16.msrb.mxu1 %v7855_v4 }
 0x79f   : > { %6172 = vmatpush.bf16.msrb.mxu2 %v7819_v14  ;;  %v8390_v14 = vld [vmem:[%s11880_s9 + $0x144] sm:$0xf0] }
 0x7a0   : > { %v4825_v61 = vpop.f32.mrf.mxu0  ;;  %v4838_v19 = vpop.f32.mrf.mxu1 }
 0x7a1   : > { %v5077_v46 = vpop.f32.mrf.mxu2  ;;  %v5090_v3 = vpop.f32.mrf.mxu3  ;;  %v8357_v61 = vld [vmem:[%s11880_s9 + $0x44] sm:$0xf]  ;;  %v7844_v19 = vld [vmem:[%s11880_s9 + $0x48] sm:$0xf0] }
 0x7a2   : > { %v7906_v46 = vld [vmem:[%s11880_s9 + $0xc0] sm:$0xf]  ;;  %v8374_v3 = vld [vmem:[%s11880_s9 + $0xc4] sm:$0xf0] }
 0x7a3   : > { %v7907_v7 = vor.u32 %v8374_v3, %v7906_v46  ;;  %v7812_v46 = vld [vmem:[%s11880_s9 + $0x8] sm:$0xf0]  ;;  %v8373_v3 = vld [vmem:[%s11880_s9 + $0xc4] sm:$0xf] }
 0x7a8   : > { %v4962_v12 = vpop.f32.mrf.mxu0  ;;  %v11470_v24 = vpop.f32.mrf.mxu1 }
 0x7a9   : > { %v4968_v63 = vadd.f32 %v4962_v12, %v4842_v60  ;;  %v5214_v29 = vpop.f32.mrf.mxu2  ;;  %v11472_v31 = vpop.f32.mrf.mxu3  ;;  %v7810_v12 = vld [vmem:[%s11880_s9] sm:$0xf] }
 0x7ab   : > { %v5094_v36 = vadd.f32 %v5088_v16, %v4968_v63  ;;  %v7915_v16 = vor.u32 %v8376_v17, %v7914_v57  ;;  %v8350_v63 = vld [vmem:[%s11880_s9 + $0x4] sm:$0xf0]  ;;  %v8351_v57 = vld [vmem:[%s11880_s9 + $0x14] sm:$0xf]  ;;  %v7916_v17 = vld [vmem:[%s11880_s9 + $0xd8] sm:$0xf0] }
 0x7ac   : > { %v7811_v32 = vor.u32 %v8350_v63, %v7810_v12  ;;  %v8366_v12 = vld [vmem:[%s11880_s9 + $0x84] sm:$0xf0]  ;;  %v7962_v63 = vld [vmem:[%s11880_s9 + $0x130] sm:$0xf] }
 0x7ad   : > { %v11474_v45 = vadd.f32 %v5214_v29, %v5094_v36  ;;  %v7847_v29 = vor.u32 %v8357_v61, %v7844_v19  ;;  %v8379_v36 = vld [vmem:[%s11880_s9 + $0xf4] sm:$0xf]  ;;  %6181 = vmatpush.bf16.msrb.mxu3 %v7915_v16  ;;  %v7970_v16 = vld [vmem:[%s11880_s9 + $0x140] sm:$0xf]  ;;  %v8349_v61 = vld [vmem:[%s11880_s9 + $0x4] sm:$0xf] }
 0x7ae   : > { %6173 = vmatpush.bf16.msrb.mxu2 %v7811_v32  ;;  %v7971_v19 = vor.u32 %v8390_v14, %v7970_v16  ;;  %v7815_v55 = vor.u32 %v8349_v61, %v7812_v46  ;;  %v7996_v32 = vld [vmem:[%s11880_s9 + $0x178] sm:$0xf0]  ;;  %v8365_v14 = vld [vmem:[%s11880_s9 + $0x84] sm:$0xf]  ;;  %v7876_v61 = vld [vmem:[%s11880_s9 + $0x88] sm:$0xf0] }
 0x7af   : > { %6208 = vmatpush.bf16.msrb.mxu1 %v7847_v29  ;;  %v7911_v29 = vor.u32 %v8373_v3, %v7908_v28  ;;  %v7964_v46 = vld [vmem:[%s11880_s9 + $0x138] sm:$0xf0]  ;;  %v5855_v28 = vld [vmem:[%s11879_s8] sm:$0x7] }
 0x7b0   : > { %v4964_v38 = vpop.f32.mrf.mxu0  ;;  %v5064_v62 = vpop.f32.mrf.mxu1 }
 0x7b1   : > { %v5216_v26 = vpop.f32.mrf.mxu2  ;;  %v5316_v40 = vpop.f32.mrf.mxu3  ;;  %v7986_v38 = vld [vmem:[%s11880_s9 + $0x160] sm:$0xf]  ;;  %v7935_v62 = vor.u32 %v8379_v36, %v7932_v43  ;;  %6182 = vmatpush.bf16.msrb.mxu3 %v7907_v7  ;;  %v7875_v36 = vor.u32 %v8366_v12, %v7874_v53  ;;  %v8388_v43 = vld [vmem:[%s11880_s9 + $0x134] sm:$0xf0]  ;;  %v8395_v7 = vld [vmem:[%s11880_s9 + $0x174] sm:$0xf] }
 0x7b2   : > { %v8372_v26 = vld [vmem:[%s11880_s9 + $0xb4] sm:$0xf0]  ;;  %v8394_v40 = vld [vmem:[%s11880_s9 + $0x164] sm:$0xf0]  ;;  %v7963_v35 = vor.u32 %v8388_v43, %v7962_v63  ;;  %v7999_v23 = vor.u32 %v8395_v7, %v7996_v32  ;;  %v5857_v7 = vperm.slane %v5855_v28, 0 }
 0x7b3   : > { %v7987_v25 = vor.u32 %v8394_v40, %v7986_v38  ;;  %v7899_v49 = vor.u32 %v8372_v26, %v7898_v6  ;;  %6218 = vmatpush.bf16.msra.mxu2 %v7935_v62  ;;  %6209 = vmatpush.bf16.msrb.mxu1 %v7839_v33  ;;  %v8371_v38 = vld [vmem:[%s11880_s9 + $0xb4] sm:$0xf]  ;;  %v7900_v62 = vld [vmem:[%s11880_s9 + $0xb8] sm:$0xf0]  ;;  %v7954_v6 = vld [vmem:[%s11880_s9 + $0x120] sm:$0xf] }
 0x7b4   : > { %v8393_v33 = vld [vmem:[%s11880_s9 + $0x164] sm:$0xf]  ;;  %v7903_v1 = vor.u32 %v8371_v38, %v7900_v62 }
 0x7b5   : > { %6193 = vmatpush.bf16.msrb.mxu0 %v7987_v25  ;;  %6183 = vmatpush.bf16.msrb.mxu3 %v7899_v49  ;;  %v8386_v25 = vld [vmem:[%s11880_s9 + $0x124] sm:$0xf0]  ;;  %v7988_v49 = vld [vmem:[%s11880_s9 + $0x168] sm:$0xf0] }
 0x7b6   : > { %v7955_v52 = vor.u32 %v8386_v25, %v7954_v6  ;;  %v7991_v27 = vor.u32 %v8393_v33, %v7988_v49  ;;  %v7948_v25 = vld [vmem:[%s11880_s9 + $0x118] sm:$0xf0] }
 0x7b7   : > { %6210 = vmatpush.bf16.msrb.mxu1 %v7831_v51  ;;  %6219 = vmatpush.bf16.msra.mxu2 %v7927_v0  ;;  %v5092_v51 = vadd.f32 %v11470_v24, %v11460_v21  ;;  %v7946_v21 = vld [vmem:[%s11880_s9 + $0x110] sm:$0xf]  ;;  %v8384_v24 = vld [vmem:[%s11880_s9 + $0x114] sm:$0xf0] }
 0x7b8   : > { %v11512_v37 = vpop.f32.mrf.mxu0  ;;  %v11514_v50 = vpop.f32.mrf.mxu1  ;;  %v7947_v39 = vor.u32 %v8384_v24, %v7946_v21 }
 0x7b9   : > { %v11516_v2 = vpop.f32.mrf.mxu2  ;;  %v11518_v59 = vpop.f32.mrf.mxu3  ;;  %6184 = vmatpush.bf16.msrb.mxu3 %v7891_v34  ;;  %6194 = vmatpush.bf16.msrb.mxu0 %v7979_v56  ;;  %v5218_v30 = vadd.f32 %v11512_v37, %v5092_v51  ;;  %v5219_v32 = vadd.f32 %v11514_v50, %v11462_v15 }
 0x7bb   : > { %v5344_v56 = vadd.f32 %v11472_v31, %v5218_v30  ;;  %v8389_v31 = vld [vmem:[%s11880_s9 + $0x144] sm:$0xf] }
 0x7bd   : > { %6195 = vmatpush.bf16.msrb.mxu0 %v7971_v19  ;;  %v8387_v19 = vld [vmem:[%s11880_s9 + $0x134] sm:$0xf]  ;;  %v5469_v3 = vadd.f32 %v11516_v2, %v5344_v56  ;;  %v7956_v2 = vld [vmem:[%s11880_s9 + $0x128] sm:$0xf0] }
 0x7be   : > { %v7967_v12 = vor.u32 %v8387_v19, %v7964_v46  ;;  %v5920_v19 = vld [vmem:[%s11881_s10] sm:$0x3] }
 0x7c0   : > { %v5190_v18 = vpop.f32.mrf.mxu0  ;;  %v5203_v58 = vpop.f32.mrf.mxu1 }
 0x7c1   : > { %v5441_v60 = vpop.f32.mrf.mxu2  ;;  %v5454_v20 = vpop.f32.mrf.mxu3  ;;  %v7820_v18 = vld [vmem:[%s11880_s9 + $0x18] sm:$0xf0]  ;;  %v8375_v58 = vld [vmem:[%s11880_s9 + $0xd4] sm:$0xf]  ;;  %6196 = vmatpush.bf16.msrb.mxu0 %v7963_v35 }
 0x7c2   : > { %v7823_v4 = vor.u32 %v8351_v57, %v7820_v18  ;;  %v7919_v60 = vor.u32 %v8375_v58, %v7916_v17  ;;  %v7883_v20 = vor.u32 %v8368_v8, %v7882_v11  ;;  %v7938_v17 = vld [vmem:[%s11880_s9 + $0x100] sm:$0xf]  ;;  %v8382_v11 = vld [vmem:[%s11880_s9 + $0x104] sm:$0xf0] }
 0x7c4   : > { %6211 = vmatpush.bf16.msrb.mxu1 %v7823_v4  ;;  %6220 = vmatpush.bf16.msra.mxu2 %v7919_v60  ;;  %v7884_v4 = vld [vmem:[%s11880_s9 + $0x98] sm:$0xf0]  ;;  %v7972_v60 = vld [vmem:[%s11880_s9 + $0x148] sm:$0xf0] }
 0x7c5   : > { %6185 = vmatpush.bf16.msrb.mxu3 %v7883_v20  ;;  %6197 = vmatpush.bf16.msrb.mxu0 %v7955_v52  ;;  %v7939_v20 = vor.u32 %v8382_v11, %v7938_v17  ;;  %v7975_v16 = vor.u32 %v8389_v31, %v7972_v60  ;;  %v8398_v17 = vld [vmem:[%s11882_s11 + $0x8] sm:$0xff]  ;;  %v8408_v11 = vld [vmem:[%s11882_s11 + $0x58] sm:$0xff]  ;;  %v8407_v31 = vld [vmem:[%s11882_s11 + $0x50] sm:$0xff] }
 0x7c8   : > { %v11604_v47 = vpop.f32.mrf.mxu0  ;;  %v11606_v54 = vpop.f32.mrf.mxu1  ;;  %6212 = vmatpush.bf16.msrb.mxu1 %v7815_v55  ;;  %6221 = vmatpush.bf16.msra.mxu2 %v7911_v29  ;;  %v7879_v55 = vor.u32 %v8365_v14, %v7876_v61  ;;  %v8406_v14 = vld [vmem:[%s11882_s11 + $0x48] sm:$0xff]  ;;  %v8405_v61 = vld [vmem:[%s11882_s11 + $0x40] sm:$0xff] }
 0x7c9   : > { %v11608_v22 = vpop.f32.mrf.mxu2  ;;  %v11610_v5 = vpop.f32.mrf.mxu3  ;;  %6186 = vmatpush.bf16.msrb.mxu3 %v7875_v36  ;;  %6198 = vmatpush.bf16.msrb.mxu0 %v7947_v39  ;;  %v8385_v36 = vld [vmem:[%s11880_s9 + $0x124] sm:$0xf]  ;;  %v5345_v38 = vadd.f32 %v11604_v47, %v5219_v32  ;;  %v5346_v62 = vadd.f32 %v11606_v54, %v11474_v45  ;;  %v7940_v54 = vld [vmem:[%s11880_s9 + $0x108] sm:$0xf0]  ;;  %v6163_v32 = vperm.slane %v5920_v19, 1 }
 0x7ca   : > { %v8381_v45 = vld [vmem:[%s11880_s9 + $0x104] sm:$0xf] }
 0x7cb   : > { %v5470_v47 = vadd.f32 %v11518_v59, %v5345_v38  ;;  %v7943_v52 = vor.u32 %v8381_v45, %v7940_v54 }
 0x7cc   : > { %6222 = vmatpush.bf16.msra.mxu2 %v7903_v1  ;;  %6365 = vmatpush.bf16.msra.mxu1 %v8408_v11 }
 0x7cd   : > { %6231 = vmatpush.bf16.msra.mxu3 %v7999_v23  ;;  %6199 = vmatpush.bf16.msrb.mxu0 %v7939_v20  ;;  %v7959_v23 = vor.u32 %v8385_v36, %v7956_v2  ;;  %v5601_v59 = vadd.f32 %v11608_v22, %v5470_v47  ;;  %v8403_v22 = vld [vmem:[%s11882_s11 + $0x30] sm:$0xff] }
 0x7d0   : > { %v5329_v44 = vpop.f32.mrf.mxu0  ;;  %v5342_v41 = vpop.f32.mrf.mxu1  ;;  %6366 = vmatpush.bf16.msra.mxu1 %v8407_v31 }
 0x7d1   : > { %v5585_v42 = vpop.f32.mrf.mxu2  ;;  %v5598_v9 = vpop.f32.mrf.mxu3  ;;  %v8369_v44 = vld [vmem:[%s11880_s9 + $0xa4] sm:$0xf]  ;;  %v7892_v41 = vld [vmem:[%s11880_s9 + $0xa8] sm:$0xf0]  ;;  %6232 = vmatpush.bf16.msra.mxu3 %v7991_v27 }
 0x7d2   : > { %v7895_v0 = vor.u32 %v8369_v44, %v7892_v41  ;;  %v7980_v42 = vld [vmem:[%s11880_s9 + $0x158] sm:$0xf0]  ;;  %v8367_v9 = vld [vmem:[%s11880_s9 + $0x94] sm:$0xf]  ;;  %v5858_v44 = vperm.slane %v5855_v28, 1  ;;  %v5859_v41 = vperm.slane %v5855_v28, 2 }
 0x7d3   : > { %v7983_v58 = vor.u32 %v8391_v10, %v7980_v42  ;;  %v7887_v8 = vor.u32 %v8367_v9, %v7884_v4  ;;  %v8399_v4 = vld [vmem:[%s11882_s11 + $0x10] sm:$0xff]  ;;  %v6162_v28 = vperm.slane %v5920_v19, 0 }
 0x7d4   : > { %6223 = vmatpush.bf16.msra.mxu2 %v7895_v0  ;;  %6367 = vmatpush.bf16.msra.mxu1 %v8406_v14 }
 0x7d5   : > { %6233 = vmatpush.bf16.msra.mxu3 %v7983_v58  ;;  %v8400_v58 = vld [vmem:[%s11882_s11 + $0x18] sm:$0xff] }
 0x7d8   : > { %v11699_v26 = vpop.f32.mrf.mxu0  ;;  %v5570_v40 = vpop.f32.mrf.mxu1  ;;  %6224 = vmatpush.bf16.msra.mxu2 %v7887_v8  ;;  %v8397_v8 = vld [vmem:[%s11882_s11] sm:$0xff]  ;;  %6368 = vmatpush.bf16.msra.mxu1 %v8405_v61 }
 0x7d9   : > { %v11710_v13 = vpop.f32.mrf.mxu2  ;;  %v5822_v48 = vpop.f32.mrf.mxu3  ;;  %v5600_v53 = vadd.f32 %v5570_v40, %v5469_v3  ;;  %6234 = vmatpush.bf16.msra.mxu3 %v7975_v16  ;;  %v8383_v40 = vld [vmem:[%s11880_s9 + $0x114] sm:$0xf]  ;;  %v5471_v33 = vadd.f32 %v11699_v26, %v5346_v62  ;;  %v8404_v26 = vld [vmem:[%s11882_s11 + $0x38] sm:$0xff] }
 0x7da   : > { %6348 = vmatpush.bf16.msra.mxu0 %v8404_v26 }
 0x7db   : > { %v5602_v51 = vadd.f32 %v11610_v5, %v5471_v33 }
 0x7dc   : > { %6225 = vmatpush.bf16.msra.mxu2 %v7879_v55 }
 0x7dd   : > { %6235 = vmatpush.bf16.msra.mxu3 %v7967_v12  ;;  %v5728_v27 = vadd.f32 %v11710_v13, %v5602_v51  ;;  %v8402_v13 = vld [vmem:[%s11882_s11 + $0x28] sm:$0xff] }
 0x7de   : > { %6349 = vmatpush.bf16.msra.mxu0 %v8403_v22 }
 0x7e0   : > { %v5467_v37 = vpop.f32.mrf.mxu0  ;;  %v5572_v34 = vpop.f32.mrf.mxu1 }
 0x7e1   : > { %v5724_v57 = vpop.f32.mrf.mxu2  ;;  %v5824_v18 = vpop.f32.mrf.mxu3  ;;  %6236 = vmatpush.bf16.msra.mxu3 %v7959_v23 }
 0x7e2   : > { %6350 = vmatpush.bf16.msra.mxu0 %v8402_v13  ;;  %v8401_v18 = vld [vmem:[%s11882_s11 + $0x20] sm:$0xff] }
 0x7e6   : > { %6351 = vmatpush.bf16.msra.mxu0 %v8401_v18 }
 0x7e8   : > { %v5696_v63 = vpop.f32.mrf.mxu0  ;;  %v5709_v29 = vpop.f32.mrf.mxu1 }
 0x7e9   : > { %v5726_v43 = vadd.f32 %v5696_v63, %v5600_v53  ;;  %v5727_v30 = vadd.f32 %v5709_v29, %v5601_v59 }
 0x7ea   : > { %6352 = vmatpush.bf16.msra.mxu0 %v8400_v58 }
 0x7eb   : > { %v5852_v35 = vadd.f32 %v5822_v48, %v5726_v43  ;;  %v7951_v48 = vor.u32 %v8383_v40, %v7948_v25 }
 0x7ed   : > { %v5863_v6 = vadd.f32 %v5857_v7, %v5852_v35  ;;  %6237 = vmatpush.bf16.msra.mxu3 %v7951_v48 }
 0x7ee   : > { %6353 = vmatpush.bf16.msra.mxu0 %v8399_v4 }
 0x7ef   : > { %v5866_v15 = vmax.f32 %v5863_v6, 0.0 }
 0x7f0   : > { %v5698_v50 = vpop.f32.mrf.mxu0  ;;  %v5711_v49 = vpop.f32.mrf.mxu1 }
 0x7f1   : > { %v5869_v1 = vpack.c.bf16 %v5866_v15, %v5866_v15  ;;  %6238 = vmatpush.bf16.msra.mxu3 %v7943_v52  ;;  %v6272_v49 = vld [vmem:[%s11883_s12] sm:$0x1] }
 0x7f2   : > { %6354 = vmatpush.bf16.msra.mxu0 %v8398_v17 }
 0x7f3   : > { %6174 = vmatmul.bf16.vlgmr.msrb.gmra.mxu2 %v5869_v1  ;;  %6213 = vmatmul.bf16.vlgmr.msrb.gmra.mxu1 %v5869_v1 }
 0x7f6   : > { %6355 = vmatpush.bf16.msra.mxu0 %v8397_v8 }
 0x7f8   : > { %v5835_v0 = vpop.f32.mrf.mxu0  ;;  %v5848_v21 = vpop.f32.mrf.mxu1 }
 0x7f9   : > { %v5853_v24 = vadd.f32 %v5835_v0, %v5727_v30  ;;  %v5854_v37 = vadd.f32 %v5848_v21, %v5728_v27 }
 0x7fb   : > { %v5864_v34 = vadd.f32 %v5858_v44, %v5853_v24  ;;  %v5865_v39 = vadd.f32 %v5859_v41, %v5854_v37 }
 0x7fd   : > { %v5867_v5 = vmax.f32 %v5864_v34, 0.0  ;;  %v5868_v10 = vmax.f32 %v5865_v39, 0.0 }
 0x7ff   : > { %v5870_v42 = vpack.c.bf16 %v5867_v5, %v5867_v5  ;;  %v5871_v9 = vpack.c.bf16 %v5868_v10, %v5868_v10 }
 0x800   : > { %v5837_v56 = vpop.f32.mrf.mxu0  ;;  %v5850_v57 = vpop.f32.mrf.mxu1 }
 0x801   : > { %6187 = vmatmul.bf16.vlgmr.msrb.gmra.mxu3 %v5870_v42  ;;  %6200 = vmatmul.bf16.vlgmr.msrb.gmra.mxu0 %v5871_v9 }
 0x803   : > { %6226 = vmatmul.bf16.vlgmr.msra.gmra.mxu2 %v5870_v42 }
 0x811   : > { %6239 = vmatmul.bf16.vlgmr.msra.gmra.mxu3 %v5871_v9 }
 0x870   : > { %v6214_v60 = vpop.f32.mrf.mxu1 }
 0x871   : > { %v6215_v23 = vadd.f32 %v6214_v60, %v6163_v32 }
 0x876   : > { %v6175_v20 = vpop.f32.mrf.mxu2 }
 0x877   : > { %v6176_v55 = vadd.f32 %v6175_v20, %v6162_v28 }
 0x878   : > { %v6216_v16 = vpop.f32.mrf.mxu1 }
 0x87e   : > { %v6177_v46 = vpop.f32.mrf.mxu2  ;;  %v6201_v3 = vpop.f32.mrf.mxu0 }
 0x884   : > { %v6188_v53 = vpop.f32.mrf.mxu3 }
 0x885   : > { %v6189_v12 = vadd.f32 %v6188_v53, %v6176_v55 }
 0x886   : > { %v6203_v63 = vpop.f32.mrf.mxu0  ;;  %v6227_v29 = vpop.f32.mrf.mxu2 }
 0x887   : > { %v6202_v36 = vadd.f32 %v6201_v3, %v6189_v12  ;;  %v6228_v38 = vadd.f32 %v6227_v29, %v6215_v23 }
 0x889   : > { %v6244_v2 = vmax.f32 %v6202_v36, 0.0 }
 0x88b   : > { %v6246_v43 = vpack.c.bf16 %v6244_v2, %v6244_v2 }
 0x88c   : > { %v6190_v7 = vpop.f32.mrf.mxu3 }
 0x88d   : > { %6356 = vmatmul.bf16.vlgmr.msra.gmra.mxu0 %v6246_v43 }
 0x88e   : > { %v6229_v35 = vpop.f32.mrf.mxu2 }
 0x894   : > { %v6240_v62 = vpop.f32.mrf.mxu3 }
 0x895   : > { %v6241_v6 = vadd.f32 %v6240_v62, %v6228_v38 }
 0x897   : > { %v6245_v40 = vmax.f32 %v6241_v6, 0.0 }
 0x899   : > { %v6247_v25 = vpack.c.bf16 %v6245_v40, %v6245_v40 }
 0x89b   : > { %8048 = vmatmul.msk.bf16.vlgmr.msra.gmra.mxu1 %vm4442_vm12, %v6247_v25 }
 0x89c   : > { %v6242_v33 = vpop.f32.mrf.mxu3 }
 0x90a   : > { %v6357_v15 = vpop.f32.mrf.mxu0 }
 0x90b   : > { %v6358_v48 = vadd.f32 %v6357_v15, %v6272_v49 }
 0x912   : > { %v6359_v50 = vpop.f32.mrf.mxu0 }
 0x918   : > { %v6370_v47 = vpop.f32.mrf.mxu1 }
 0x919   : > { %v6371_v1 = vadd.f32 %v6370_v47, %v6358_v48 }
 0x91b   : > { %6375 = vst.msk [vmem:[%s432_s24] sm:$0x1] %vm6374_vm0, %v6371_v1 }
 0x91c   : > { %8549 = shalt.err (!%p8546_p3)
}
 0x91d   : > { %8409 = dma.vmem_to_hbm [thread:$0]  (%p8711_p5), %s6388_s30, 16, %s6390_s15, %s6377_s20  }
 0x920   : > { %v6372_v45 = vpop.f32.mrf.mxu1 }
 0x921 PF: > { %p8415_p4 = scmp.ge.s32.totalorder %s8584_s28, 2  ;;  %s6401_s0 = sand.u32 1, %s8572_s25  }
 0x922   : > { %s6402_s23 = scalar_lea.sflag [#allocation5], %s6401_s0 }
 0x923   : > { %p8412_p7 = pnand %p8415_p4, %p8715_p6 }
 0x925   : > { %p8413_p8 = pneg %p8412_p7 }
 0x927   : > { %8567 = dma.done.wait (%p8413_p8), %s6402_s23, 16  }
 0x928   : > { %8569 = vsyncadd (%p8413_p8), %s6402_s23, 4294967280  ;;  %s11907_s24 = sld [smem:[#allocation7_spill]]  ;;  %p23_p9 = scmp.ge.s32.totalorder %s8698_s14, 4  }
 0x929   : > { %s11908_s25 = smov %s8576_s26  ;;  %s11909_s26 = smov %s8580_s27 }
 0x92a   : > { %s11911_s28 = smov %s8698_s14  ;;  %25 = sbr.rel (!%p23_p9) target bundleno = 7 (0x7), region = 135 }
 0x92e   : > { %s11910_s27 = smov %s11907_s24 }
 0x92f   :  { %6407 = vsyncpa [#allocation5], 1 }
 0x930   :  { %6409 = vsyncpa [#allocation5 + $0x1], 1 }

</bundles_post_ra>
